<compile_context>
chip_gen: v6e
topology: v6e:2x2x1
jax: 0.10.0
libtpu: 0.0.40
codegen_flags: <defaults>
</compile_context>

<pallas_src>
import functools

import jax
import jax.numpy as jnp
from jax.experimental import pallas as pl
from jax.experimental.pallas import tpu as pltpu


# ----------------------------- Pallas kernels -----------------------------

def _conv_gemm_kernel(w_ref, b_ref, p_ref, o_ref, *, relu):
    # w: (Cout, K)  b: (Cout, 1)  p: (K, tp)  o: (Cout, tp)  -- lane-dense on tp
    acc = jnp.dot(w_ref[...], p_ref[...], preferred_element_type=jnp.float32)
    acc = acc + b_ref[...]
    if relu:
        acc = jnp.maximum(acc, 0.0)
    o_ref[...] = acc.astype(o_ref.dtype)


def _conv1_gemm_kernel(w_ref, b_ref, p_ref, add_ref, o_ref):
    # Same as above plus a per-pixel additive term (the analytic mu*rw*cw
    # channel), followed by ReLU.
    acc = jnp.dot(w_ref[...], p_ref[...], preferred_element_type=jnp.float32)
    acc = acc + add_ref[...] + b_ref[...]
    o_ref[...] = jnp.maximum(acc, 0.0).astype(o_ref.dtype)


def _tail_kernel(*refs, n_blocks):
    # Fused: c4 (8x8 conv -> 1x1 output) + (tmp,x,y,t) concat + full mnet MLP.
    # All activations kept transposed, shape (features, B).
    p4_ref, xyt_ref, w4_ref, b4_ref, w1a_ref, w1b_ref, b1_ref = refs[:7]
    blk = refs[7:7 + 6 * n_blocks]
    wf_ref, bf_ref, o_ref = refs[7 + 6 * n_blocks:]

    def dot(a, b):
        return jnp.dot(a, b, preferred_element_type=jnp.float32)

    # c4: full contraction over (Cin, 8, 8); no activation (encoder ends in Conv2d)
    t4 = dot(w4_ref[...], p4_ref[...]) + b4_ref[...]                    # (48, B)

    # mnet first Linear + ReLU; torch.cat((tmp, x, y, t)) folded into split w1.
    h = dot(w1a_ref[...], t4) + dot(w1b_ref[...], xyt_ref[...]) + b1_ref[...]
    h = jnp.maximum(h, 0.0)                                             # (H, B)

    eps = 1e-5
    for j in range(n_blocks):                                           # lblocks
        wa, ba, wb, bb, g, be = blk[6 * j:6 * j + 6]
        z = jnp.maximum(dot(wa[...], h) + ba[...], 0.0)
        z = dot(wb[...], z) + bb[...]
        mean = jnp.mean(z, axis=0, keepdims=True)          # LayerNorm over features
        var = jnp.mean((z - mean) ** 2, axis=0, keepdims=True)
        zn = (z - mean) * jax.lax.rsqrt(var + eps)
        h = zn * g[...] + be[...] + h                      # ln(net(x)) + x

    o_ref[...] = (dot(wf_ref[...], h) + bf_ref[...]).astype(o_ref.dtype)


# ----------------------------- wrappers ------------------------------------

_TP_MAX = 2048   # pixel-axis tile (multiple of 128); ~1 MB patch block at K=128


def conv_gemm(patchesT, w, b, relu, extra=None):
    """Lane-dense conv GEMM: out (Cout, P) = w(Cout,K) @ patchesT(K,P) [+ extra] + b."""
    Cout = w.shape[0]
    K, P = patchesT.shape
    wr = w.reshape(Cout, K)
    tp = P if P <= _TP_MAX else _TP_MAX        # ragged last block handled by Pallas
    in_specs = [
        pl.BlockSpec((Cout, K), lambda i: (0, 0)),
        pl.BlockSpec((Cout, 1), lambda i: (0, 0)),
        pl.BlockSpec((K, tp), lambda i: (0, i)),
    ]
    args = [wr, b.reshape(Cout, 1), patchesT]
    if extra is not None:
        in_specs.append(pl.BlockSpec((Cout, tp), lambda i: (0, i)))
        args.append(extra)
        kern = _conv1_gemm_kernel                     # extra term implies ReLU (c1)
    else:
        kern = functools.partial(_conv_gemm_kernel, relu=relu)
    return pl.pallas_call(
        kern,
        out_shape=jax.ShapeDtypeStruct((Cout, P), jnp.float32),
        grid=(pl.cdiv(P, tp),),
        in_specs=in_specs,
        out_specs=pl.BlockSpec((Cout, tp), lambda i: (0, i)),
        compiler_params=pltpu.CompilerParams(dimension_semantics=("parallel",)),
    )(*args)


def im2col_cbhw(x, kh, kw, stride):
    """x: (C, B, H, W) -> patches^T (C*kh*kw, B*OH*OW).
    Row order (c, i, j); column order (b, oy, ox). No transpose needed."""
    C, B, H, W = x.shape
    oh = (H - kh) // stride + 1
    ow = (W - kw) // stride + 1
    cols = [x[:, :, i:i + stride * oh:stride, j:j + stride * ow:stride]
            for i in range(kh) for j in range(kw)]
    p = jnp.stack(cols, axis=1)                           # (C, kh*kw, B, oh, ow)
    return p.reshape(C * kh * kw, B * oh * ow), oh, ow


def fused_tail(p4, xytT, params, n_blocks):
    B = xytT.shape[1]
    nf = params["c4_w"].shape[0]                          # 48 encoder features
    args = [p4, xytT,
            params["c4_w"].reshape(nf, -1), params["c4_b"].reshape(nf, 1),
            params["w1"][:nf].T, params["w1"][nf:].T, params["b1"].T]
    for j in range(n_blocks):
        args += [params[f"wa{j}"].T, params[f"ba{j}"].T,
                 params[f"wb{j}"].T, params[f"bb{j}"].T,
                 params[f"g{j}"].T, params[f"be{j}"].T]
    args += [params["wf"].T, params["bf"].T]
    dout = params["wf"].shape[1]
    out_t = pl.pallas_call(
        functools.partial(_tail_kernel, n_blocks=n_blocks),
        out_shape=jax.ShapeDtypeStruct((dout, B), jnp.float32),
    )(*args)
    return out_t.T


@jax.jit
def pinno_forward(params, x, y, t, u0, mu):
    hp = jax.lax.Precision.HIGHEST
    B = u0.shape[0]

    # ---- c1 patches from the u0 channels only (K-major) ----
    c1_w = params["c1_w"]                                  # (6, 3, 8, 8)
    k1 = c1_w.shape[2]
    s1 = 3
    u0_cb = u0.transpose(1, 0, 2, 3)                       # (2, B, 257, 257) CBHW
    p_u0, oh, ow = im2col_cbhw(u0_cb, k1, k1, s1)          # (2*k1*k1, B*oh*ow)

    # ---- mu*rw*cw channel folded analytically: contribution = mu[b]*S[co,oy,ox] ----
    rw = params["rw"][:, 0]                                # (257,)
    cw = params["cw"][0, :]                                # (257,)
    rw_d = jnp.stack([rw[i:i + s1 * oh:s1] for i in range(k1)])   # (k1, oh)
    cw_d = jnp.stack([cw[j:j + s1 * ow:s1] for j in range(k1)])   # (k1, ow)
    w_mu = c1_w[:, 2, :, :]                                # (6, k1, k1)
    A = jnp.einsum('oij,jx->oix', w_mu, cw_d, precision=hp)       # (6, k1, ow)
    S = jnp.einsum('oix,iy->oyx', A, rw_d, precision=hp)          # (6, oh, ow)
    mu_S = (mu.reshape(B, 1, 1, 1) * S[None]).transpose(1, 0, 2, 3)
    mu_S = mu_S.reshape(c1_w.shape[0], B * oh * ow)        # (6, B*oh*ow)

    # ---- encoder convs as lane-dense GEMMs (activations stay CBHW) ----
    w_u0 = c1_w[:, :2, :, :]                               # u0 part of the kernel
    h = conv_gemm(p_u0, w_u0, params["c1_b"], relu=True, extra=mu_S)   # (6, B*84*84)
    h = h.reshape(c1_w.shape[0], B, oh, ow)

    k2 = params["c2_w"].shape[2]
    p2, oh, ow = im2col_cbhw(h, k2, k2, 3)
    h = conv_gemm(p2, params["c2_w"], params["c2_b"], relu=True)   # (12, B*27*27)
    h = h.reshape(params["c2_w"].shape[0], B, oh, ow)

    k3 = params["c3_w"].shape[2]
    p3, oh, ow = im2col_cbhw(h, k3, k3, 3)
    h = conv_gemm(p3, params["c3_w"], params["c3_b"], relu=True)   # (24, B*8*8)

    # ---- fused tail: c4 + concat + mnet in one kernel ----
    c3o = params["c3_w"].shape[0]
    p4 = (h.reshape(c3o, B, oh * ow).transpose(0, 2, 1)
           .reshape(c3o * oh * ow, B))                     # (24*64, B) c4 patches
    xytT = jnp.concatenate([x, y, t], axis=1).T            # (3, B)
    n_blocks = sum(1 for k in params if k.startswith("wa"))
    return fused_tail(p4, xytT, params, n_blocks)          # (B, layers[-1])


# ----------------------------- parameters ----------------------------------

def init_params(key, layers):
    ks = iter(jax.random.split(key, 64))

    def W(shape, scale=0.1):
        return scale * jax.random.normal(next(ks), shape, jnp.float32)

    p = {}
    # row/column weight parameters (as in torch.randn)
    p["rw"] = jax.random.normal(next(ks), (257, 1), jnp.float32)
    p["cw"] = jax.random.normal(next(ks), (1, 257), jnp.float32)
    # encoder: Conv2d(3,6,8,s3) Conv2d(6,12,6,s3) Conv2d(12,24,6,s3) Conv2d(24,48,8)
    for n, (co, ci, k) in enumerate([(6, 3, 8), (12, 6, 6), (24, 12, 6), (48, 24, 8)], 1):
        p[f"c{n}_w"] = W((co, ci, k, k))
        p[f"c{n}_b"] = W((co,), 0.01)
    # mnet: Linear(51,H), ReLU, lblock(H) x (len(layers)-2), Linear(H, layers[-1])
    H = layers[1]
    p["w1"] = W((layers[0], H))
    p["b1"] = W((1, H), 0.01)
    for j in range(len(layers) - 2):
        p[f"wa{j}"] = W((H, H))
        p[f"ba{j}"] = W((1, H), 0.01)
        p[f"wb{j}"] = W((H, H))
        p[f"bb{j}"] = W((1, H), 0.01)
        p[f"g{j}"] = jnp.ones((1, H), jnp.float32)     # LayerNorm default affine
        p[f"be{j}"] = jnp.zeros((1, H), jnp.float32)
    p["wf"] = W((layers[-2], layers[-1]))
    p["bf"] = W((1, layers[-1]), 0.01)
    return p


# ----------------------------- pure-JAX reference ---------------------------

@jax.jit
def reference_forward(params, x, y, t, u0, mu):
    hp = jax.lax.Precision.HIGHEST
    B = u0.shape[0]
    rwcw = mu * (params["rw"] @ params["cw"])[None, None, :, :]    # (B,1,257,257)
    h = jnp.concatenate([u0, rwcw], axis=1)
    for n, s in zip(range(1, 5), (3, 3, 3, 1)):
        h = jax.lax.conv_general_dilated(
            h, params[f"c{n}_w"], (s, s), "VALID",
            dimension_numbers=("NCHW", "OIHW", "NCHW"), precision=hp)
        h = h + params[f"c{n}_b"].reshape(1, -1, 1, 1)
        if n < 4:
            h = jnp.maximum(h, 0.0)
    tmp = h.reshape(B, -1)
    inp = jnp.concatenate([tmp, x, y, t], axis=1)
    hh = jnp.maximum(jnp.dot(inp, params["w1"], precision=hp) + params["b1"], 0.0)
    n_blocks = sum(1 for k in params if k.startswith("wa"))
    for j in range(n_blocks):
        z = jnp.maximum(jnp.dot(hh, params[f"wa{j}"], precision=hp) + params[f"ba{j}"], 0.0)
        z = jnp.dot(z, params[f"wb{j}"], precision=hp) + params[f"bb{j}"]
        mean = z.mean(-1, keepdims=True)
        var = ((z - mean) ** 2).mean(-1, keepdims=True)
        zn = (z - mean) * jax.lax.rsqrt(var + 1e-5)
        hh = zn * params[f"g{j}"] + params[f"be{j}"] + hh
    return jnp.dot(hh, params["wf"], precision=hp) + params["bf"]


# ----------------------------- main -----------------------------------------

if __name__ == "__main__":
    # layers[0] = 48 encoder features + x + y + t = 51 (rw/cw fix 257x257 input)
    layers = [51, 32, 32, 1]
    key = jax.random.PRNGKey(0)
    kp, kx, ky, kt, ku, km = jax.random.split(key, 6)
    params = init_params(kp, layers)

    B = 2
    x = jax.random.normal(kx, (B, 1), jnp.float32)
    y = jax.random.normal(ky, (B, 1), jnp.float32)
    t = jax.random.normal(kt, (B, 1), jnp.float32)
    u0 = jax.random.normal(ku, (B, 2, 257, 257), jnp.float32)
    mu = jax.random.normal(km, (B, 1, 1, 1), jnp.float32)

    out = pinno_forward(params, x, y, t, u0, mu)
    jax.block_until_ready(out)
    assert out.shape == (B, layers[-1]), out.shape

    ref = reference_forward(params, x, y, t, u0, mu)
    err = float(jnp.max(jnp.abs(out - ref)))
    assert jnp.allclose(out, ref, rtol=5e-2, atol=5e-2), f"max abs err {err}"

    print("KERNEL_OK")
</pallas_src>

<mosaic_0001>
module attributes {stable_mosaic.version = 11 : i64} {
  func.func @_conv1_gemm_kernel(%arg0: i32, %arg1: memref<6x128xf32, #tpu.memory_space<vmem>>, %arg2: memref<6x1xf32, #tpu.memory_space<vmem>>, %arg3: memref<128x2048xf32, #tpu.memory_space<vmem>>, %arg4: memref<6x2048xf32, #tpu.memory_space<vmem>>, %arg5: memref<6x2048xf32, #tpu.memory_space<vmem>>) attributes {dimension_semantics = [#tpu.dimension_semantics<parallel>], iteration_bounds = array<i64: 7>, scalar_prefetch = 0 : i64, scratch_operands = 0 : i64, tpu.core_type = #tpu.core_type<tc>, window_params = [{pipeline_mode = #tpu.pipeline_mode<synchronous>, transform_indices = @transform_0, window_bounds = array<i64: 6, 128>}, {pipeline_mode = #tpu.pipeline_mode<synchronous>, transform_indices = @transform_1, window_bounds = array<i64: 6, 1>}, {transform_indices = @transform_2, window_bounds = array<i64: 128, 2048>}, {transform_indices = @transform_3, window_bounds = array<i64: 6, 2048>}, {transform_indices = @transform_4, window_bounds = array<i64: 6, 2048>}]} {
    %c0 = arith.constant 0 : index
    %c0_0 = arith.constant 0 : index
    %0 = vector.load %arg1[%c0, %c0_0] : memref<6x128xf32, #tpu.memory_space<vmem>>, vector<6x128xf32>
    %c0_1 = arith.constant 0 : index
    %c0_2 = arith.constant 0 : index
    %1 = vector.load %arg3[%c0_1, %c0_2] : memref<128x2048xf32, #tpu.memory_space<vmem>>, vector<128x2048xf32>
    %cst = arith.constant dense<0.000000e+00> : vector<6x2048xf32>
    %2 = tpu.matmul %0, %1, %cst {dimension_numbers = #tpu.dot_dimension_numbers<[1], [0], [0], [1], [0, 0, 1, 1], [], []>} : vector<6x128xf32>, vector<128x2048xf32>, vector<6x2048xf32> -> vector<6x2048xf32>
    %c0_3 = arith.constant 0 : index
    %c0_4 = arith.constant 0 : index
    %3 = vector.load %arg4[%c0_3, %c0_4] : memref<6x2048xf32, #tpu.memory_space<vmem>>, vector<6x2048xf32>
    %4 = arith.addf %2, %3 : vector<6x2048xf32>
    %c0_5 = arith.constant 0 : index
    %c0_6 = arith.constant 0 : index
    %5 = vector.load %arg2[%c0_5, %c0_6] : memref<6x1xf32, #tpu.memory_space<vmem>>, vector<6x1xf32>
    %6 = vector.broadcast %5 : vector<6x1xf32> to vector<6x2048xf32>
    %7 = arith.addf %4, %6 : vector<6x2048xf32>
    %cst_7 = arith.constant 0.000000e+00 : f32
    %8 = vector.broadcast %cst_7 : f32 to vector<6x2048xf32>
    %9 = arith.maximumf %7, %8 : vector<6x2048xf32>
    %c0_8 = arith.constant 0 : index
    %c0_9 = arith.constant 0 : index
    %10 = vector.load %arg5[%c0_8, %c0_9] : memref<6x2048xf32, #tpu.memory_space<vmem>>, vector<6x2048xf32>
    tpu.vector_store %arg5[%c0_8, %c0_9], %9 {strides = array<i32>} : memref<6x2048xf32, #tpu.memory_space<vmem>>, vector<6x2048xf32>,
    return
  }
  func.func @transform_0(%arg0: i32) -> (i32, i32) {
    %c0_i32 = arith.constant 0 : i32
    %c0_i32_0 = arith.constant 0 : i32
    %c0_i32_1 = arith.constant 0 : i32
    return %c0_i32, %c0_i32_0 : i32, i32
  }
  func.func @transform_1(%arg0: i32) -> (i32, i32) {
    %c0_i32 = arith.constant 0 : i32
    %c0_i32_0 = arith.constant 0 : i32
    %c0_i32_1 = arith.constant 0 : i32
    return %c0_i32, %c0_i32_0 : i32, i32
  }
  func.func @transform_2(%arg0: i32) -> (i32, i32) {
    %c0_i32 = arith.constant 0 : i32
    %c0_i32_0 = arith.constant 0 : i32
    return %c0_i32, %arg0 : i32, i32
  }
  func.func @transform_3(%arg0: i32) -> (i32, i32) {
    %c0_i32 = arith.constant 0 : i32
    %c0_i32_0 = arith.constant 0 : i32
    return %c0_i32, %arg0 : i32, i32
  }
  func.func @transform_4(%arg0: i32) -> (i32, i32) {
    %c0_i32 = arith.constant 0 : i32
    %c0_i32_0 = arith.constant 0 : i32
    return %c0_i32, %arg0 : i32, i32
  }
}

module attributes {stable_mosaic.version = 11 : i64} {
  func.func @_conv_gemm_kernel(%arg0: i32, %arg1: memref<12x216xf32, #tpu.memory_space<vmem>>, %arg2: memref<12x1xf32, #tpu.memory_space<vmem>>, %arg3: memref<216x1458xf32, #tpu.memory_space<vmem>>, %arg4: memref<12x1458xf32, #tpu.memory_space<vmem>>) attributes {dimension_semantics = [#tpu.dimension_semantics<parallel>], iteration_bounds = array<i64: 1>, scalar_prefetch = 0 : i64, scratch_operands = 0 : i64, tpu.core_type = #tpu.core_type<tc>, window_params = [{pipeline_mode = #tpu.pipeline_mode<synchronous>, transform_indices = @transform_0, window_bounds = array<i64: 12, 216>}, {pipeline_mode = #tpu.pipeline_mode<synchronous>, transform_indices = @transform_1, window_bounds = array<i64: 12, 1>}, {transform_indices = @transform_2, window_bounds = array<i64: 216, 1458>}, {transform_indices = @transform_3, window_bounds = array<i64: 12, 1458>}]} {
    %c0 = arith.constant 0 : index
    %c0_0 = arith.constant 0 : index
    %0 = vector.load %arg1[%c0, %c0_0] : memref<12x216xf32, #tpu.memory_space<vmem>>, vector<12x216xf32>
    %c0_1 = arith.constant 0 : index
    %c0_2 = arith.constant 0 : index
    %1 = vector.load %arg3[%c0_1, %c0_2] : memref<216x1458xf32, #tpu.memory_space<vmem>>, vector<216x1458xf32>
    %cst = arith.constant dense<0.000000e+00> : vector<12x1458xf32>
    %2 = tpu.matmul %0, %1, %cst {dimension_numbers = #tpu.dot_dimension_numbers<[1], [0], [0], [1], [0, 0, 1, 1], [], []>} : vector<12x216xf32>, vector<216x1458xf32>, vector<12x1458xf32> -> vector<12x1458xf32>
    %c0_3 = arith.constant 0 : index
    %c0_4 = arith.constant 0 : index
    %3 = vector.load %arg2[%c0_3, %c0_4] : memref<12x1xf32, #tpu.memory_space<vmem>>, vector<12x1xf32>
    %4 = vector.broadcast %3 : vector<12x1xf32> to vector<12x1458xf32>
    %5 = arith.addf %2, %4 : vector<12x1458xf32>
    %cst_5 = arith.constant 0.000000e+00 : f32
    %6 = vector.broadcast %cst_5 : f32 to vector<12x1458xf32>
    %7 = arith.maximumf %5, %6 : vector<12x1458xf32>
    %c0_6 = arith.constant 0 : index
    %c0_7 = arith.constant 0 : index
    %8 = vector.load %arg4[%c0_6, %c0_7] : memref<12x1458xf32, #tpu.memory_space<vmem>>, vector<12x1458xf32>
    tpu.vector_store %arg4[%c0_6, %c0_7], %7 {strides = array<i32>} : memref<12x1458xf32, #tpu.memory_space<vmem>>, vector<12x1458xf32>,
    return
  }
  func.func @transform_0(%arg0: i32) -> (i32, i32) {
    %c0_i32 = arith.constant 0 : i32
    %c0_i32_0 = arith.constant 0 : i32
    %c0_i32_1 = arith.constant 0 : i32
    return %c0_i32, %c0_i32_0 : i32, i32
  }
  func.func @transform_1(%arg0: i32) -> (i32, i32) {
    %c0_i32 = arith.constant 0 : i32
    %c0_i32_0 = arith.constant 0 : i32
    %c0_i32_1 = arith.constant 0 : i32
    return %c0_i32, %c0_i32_0 : i32, i32
  }
  func.func @transform_2(%arg0: i32) -> (i32, i32) {
    %c0_i32 = arith.constant 0 : i32
    %c0_i32_0 = arith.constant 0 : i32
    return %c0_i32, %arg0 : i32, i32
  }
  func.func @transform_3(%arg0: i32) -> (i32, i32) {
    %c0_i32 = arith.constant 0 : i32
    %c0_i32_0 = arith.constant 0 : i32
    return %c0_i32, %arg0 : i32, i32
  }
}

module attributes {stable_mosaic.version = 11 : i64} {
  func.func @_conv_gemm_kernel(%arg0: i32, %arg1: memref<24x432xf32, #tpu.memory_space<vmem>>, %arg2: memref<24x1xf32, #tpu.memory_space<vmem>>, %arg3: memref<432x128xf32, #tpu.memory_space<vmem>>, %arg4: memref<24x128xf32, #tpu.memory_space<vmem>>) attributes {dimension_semantics = [#tpu.dimension_semantics<parallel>], iteration_bounds = array<i64: 1>, scalar_prefetch = 0 : i64, scratch_operands = 0 : i64, tpu.core_type = #tpu.core_type<tc>, window_params = [{pipeline_mode = #tpu.pipeline_mode<synchronous>, transform_indices = @transform_0, window_bounds = array<i64: 24, 432>}, {pipeline_mode = #tpu.pipeline_mode<synchronous>, transform_indices = @transform_1, window_bounds = array<i64: 24, 1>}, {transform_indices = @transform_2, window_bounds = array<i64: 432, 128>}, {transform_indices = @transform_3, window_bounds = array<i64: 24, 128>}]} {
    %c0 = arith.constant 0 : index
    %c0_0 = arith.constant 0 : index
    %0 = vector.load %arg1[%c0, %c0_0] : memref<24x432xf32, #tpu.memory_space<vmem>>, vector<24x432xf32>
    %c0_1 = arith.constant 0 : index
    %c0_2 = arith.constant 0 : index
    %1 = vector.load %arg3[%c0_1, %c0_2] : memref<432x128xf32, #tpu.memory_space<vmem>>, vector<432x128xf32>
    %cst = arith.constant dense<0.000000e+00> : vector<24x128xf32>
    %2 = tpu.matmul %0, %1, %cst {dimension_numbers = #tpu.dot_dimension_numbers<[1], [0], [0], [1], [0, 0, 1, 1], [], []>} : vector<24x432xf32>, vector<432x128xf32>, vector<24x128xf32> -> vector<24x128xf32>
    %c0_3 = arith.constant 0 : index
    %c0_4 = arith.constant 0 : index
    %3 = vector.load %arg2[%c0_3, %c0_4] : memref<24x1xf32, #tpu.memory_space<vmem>>, vector<24x1xf32>
    %4 = vector.broadcast %3 : vector<24x1xf32> to vector<24x128xf32>
    %5 = arith.addf %2, %4 : vector<24x128xf32>
    %cst_5 = arith.constant 0.000000e+00 : f32
    %6 = vector.broadcast %cst_5 : f32 to vector<24x128xf32>
    %7 = arith.maximumf %5, %6 : vector<24x128xf32>
    %c0_6 = arith.constant 0 : index
    %c0_7 = arith.constant 0 : index
    %8 = vector.load %arg4[%c0_6, %c0_7] : memref<24x128xf32, #tpu.memory_space<vmem>>, vector<24x128xf32>
    tpu.vector_store %arg4[%c0_6, %c0_7], %7 {strides = array<i32>} : memref<24x128xf32, #tpu.memory_space<vmem>>, vector<24x128xf32>,
    return
  }
  func.func @transform_0(%arg0: i32) -> (i32, i32) {
    %c0_i32 = arith.constant 0 : i32
    %c0_i32_0 = arith.constant 0 : i32
    %c0_i32_1 = arith.constant 0 : i32
    return %c0_i32, %c0_i32_0 : i32, i32
  }
  func.func @transform_1(%arg0: i32) -> (i32, i32) {
    %c0_i32 = arith.constant 0 : i32
    %c0_i32_0 = arith.constant 0 : i32
    %c0_i32_1 = arith.constant 0 : i32
    return %c0_i32, %c0_i32_0 : i32, i32
  }
  func.func @transform_2(%arg0: i32) -> (i32, i32) {
    %c0_i32 = arith.constant 0 : i32
    %c0_i32_0 = arith.constant 0 : i32
    return %c0_i32, %arg0 : i32, i32
  }
  func.func @transform_3(%arg0: i32) -> (i32, i32) {
    %c0_i32 = arith.constant 0 : i32
    %c0_i32_0 = arith.constant 0 : i32
    return %c0_i32, %arg0 : i32, i32
  }
}

module attributes {stable_mosaic.version = 11 : i64} {
  func.func @_tail_kernel(%arg0: memref<1536x2xf32, #tpu.memory_space<vmem>>, %arg1: memref<3x2xf32, #tpu.memory_space<vmem>>, %arg2: memref<48x1536xf32, #tpu.memory_space<vmem>>, %arg3: memref<48x1xf32, #tpu.memory_space<vmem>>, %arg4: memref<32x48xf32, #tpu.memory_space<vmem>>, %arg5: memref<32x3xf32, #tpu.memory_space<vmem>>, %arg6: memref<32x1xf32, #tpu.memory_space<vmem>>, %arg7: memref<32x32xf32, #tpu.memory_space<vmem>>, %arg8: memref<32x1xf32, #tpu.memory_space<vmem>>, %arg9: memref<32x32xf32, #tpu.memory_space<vmem>>, %arg10: memref<32x1xf32, #tpu.memory_space<vmem>>, %arg11: memref<32x1xf32, #tpu.memory_space<vmem>>, %arg12: memref<32x1xf32, #tpu.memory_space<vmem>>, %arg13: memref<32x32xf32, #tpu.memory_space<vmem>>, %arg14: memref<32x1xf32, #tpu.memory_space<vmem>>, %arg15: memref<32x32xf32, #tpu.memory_space<vmem>>, %arg16: memref<32x1xf32, #tpu.memory_space<vmem>>, %arg17: memref<32x1xf32, #tpu.memory_space<vmem>>, %arg18: memref<32x1xf32, #tpu.memory_space<vmem>>, %arg19: memref<1x32xf32, #tpu.memory_space<vmem>>, %arg20: memref<1x1xf32, #tpu.memory_space<vmem>>, %arg21: memref<1x2xf32, #tpu.memory_space<vmem>>) attributes {dimension_semantics = [], scalar_prefetch = 0 : i64, scratch_operands = 0 : i64, tpu.core_type = #tpu.core_type<tc>} {
    %c0 = arith.constant 0 : index
    %c0_0 = arith.constant 0 : index
    %0 = vector.load %arg2[%c0, %c0_0] : memref<48x1536xf32, #tpu.memory_space<vmem>>, vector<48x1536xf32>
    %c0_1 = arith.constant 0 : index
    %c0_2 = arith.constant 0 : index
    %1 = vector.load %arg0[%c0_1, %c0_2] : memref<1536x2xf32, #tpu.memory_space<vmem>>, vector<1536x2xf32>
    %cst = arith.constant dense<0.000000e+00> : vector<48x2xf32>
    %2 = tpu.matmul %0, %1, %cst {dimension_numbers = #tpu.dot_dimension_numbers<[1], [0], [0], [1], [0, 0, 1, 1], [], []>} : vector<48x1536xf32>, vector<1536x2xf32>, vector<48x2xf32> -> vector<48x2xf32>
    %c0_3 = arith.constant 0 : index
    %c0_4 = arith.constant 0 : index
    %3 = vector.load %arg3[%c0_3, %c0_4] : memref<48x1xf32, #tpu.memory_space<vmem>>, vector<48x1xf32>
    %4 = vector.broadcast %3 : vector<48x1xf32> to vector<48x2xf32>
    %5 = arith.addf %2, %4 : vector<48x2xf32>
    %c0_5 = arith.constant 0 : index
    %c0_6 = arith.constant 0 : index
    %6 = vector.load %arg4[%c0_5, %c0_6] : memref<32x48xf32, #tpu.memory_space<vmem>>, vector<32x48xf32>
    %cst_7 = arith.constant dense<0.000000e+00> : vector<32x2xf32>
    %7 = tpu.matmul %6, %5, %cst_7 {dimension_numbers = #tpu.dot_dimension_numbers<[1], [0], [0], [1], [0, 0, 1, 1], [], []>} : vector<32x48xf32>, vector<48x2xf32>, vector<32x2xf32> -> vector<32x2xf32>
    %c0_8 = arith.constant 0 : index
    %c0_9 = arith.constant 0 : index
    %8 = vector.load %arg5[%c0_8, %c0_9] : memref<32x3xf32, #tpu.memory_space<vmem>>, vector<32x3xf32>
    %c0_10 = arith.constant 0 : index
    %c0_11 = arith.constant 0 : index
    %9 = vector.load %arg1[%c0_10, %c0_11] : memref<3x2xf32, #tpu.memory_space<vmem>>, vector<3x2xf32>
    %cst_12 = arith.constant dense<0.000000e+00> : vector<32x2xf32>
    %10 = tpu.matmul %8, %9, %cst_12 {dimension_numbers = #tpu.dot_dimension_numbers<[1], [0], [0], [1], [0, 0, 1, 1], [], []>} : vector<32x3xf32>, vector<3x2xf32>, vector<32x2xf32> -> vector<32x2xf32>
    %11 = arith.addf %7, %10 : vector<32x2xf32>
    %c0_13 = arith.constant 0 : index
    %c0_14 = arith.constant 0 : index
    %12 = vector.load %arg6[%c0_13, %c0_14] : memref<32x1xf32, #tpu.memory_space<vmem>>, vector<32x1xf32>
    %13 = vector.broadcast %12 : vector<32x1xf32> to vector<32x2xf32>
    %14 = arith.addf %11, %13 : vector<32x2xf32>
    %cst_15 = arith.constant 0.000000e+00 : f32
    %15 = vector.broadcast %cst_15 : f32 to vector<32x2xf32>
    %16 = arith.maximumf %14, %15 : vector<32x2xf32>
    %c0_16 = arith.constant 0 : index
    %c0_17 = arith.constant 0 : index
    %17 = vector.load %arg7[%c0_16, %c0_17] : memref<32x32xf32, #tpu.memory_space<vmem>>, vector<32x32xf32>
    %cst_18 = arith.constant dense<0.000000e+00> : vector<32x2xf32>
    %18 = tpu.matmul %17, %16, %cst_18 {dimension_numbers = #tpu.dot_dimension_numbers<[1], [0], [0], [1], [0, 0, 1, 1], [], []>} : vector<32x32xf32>, vector<32x2xf32>, vector<32x2xf32> -> vector<32x2xf32>
    %c0_19 = arith.constant 0 : index
    %c0_20 = arith.constant 0 : index
    %19 = vector.load %arg8[%c0_19, %c0_20] : memref<32x1xf32, #tpu.memory_space<vmem>>, vector<32x1xf32>
    %20 = vector.broadcast %19 : vector<32x1xf32> to vector<32x2xf32>
    %21 = arith.addf %18, %20 : vector<32x2xf32>
    %cst_21 = arith.constant 0.000000e+00 : f32
    %22 = vector.broadcast %cst_21 : f32 to vector<32x2xf32>
    %23 = arith.maximumf %21, %22 : vector<32x2xf32>
    %c0_22 = arith.constant 0 : index
    %c0_23 = arith.constant 0 : index
    %24 = vector.load %arg9[%c0_22, %c0_23] : memref<32x32xf32, #tpu.memory_space<vmem>>, vector<32x32xf32>
    %cst_24 = arith.constant dense<0.000000e+00> : vector<32x2xf32>
    %25 = tpu.matmul %24, %23, %cst_24 {dimension_numbers = #tpu.dot_dimension_numbers<[1], [0], [0], [1], [0, 0, 1, 1], [], []>} : vector<32x32xf32>, vector<32x2xf32>, vector<32x2xf32> -> vector<32x2xf32>
    %c0_25 = arith.constant 0 : index
    %c0_26 = arith.constant 0 : index
    %26 = vector.load %arg10[%c0_25, %c0_26] : memref<32x1xf32, #tpu.memory_space<vmem>>, vector<32x1xf32>
    %27 = vector.broadcast %26 : vector<32x1xf32> to vector<32x2xf32>
    %28 = arith.addf %25, %27 : vector<32x2xf32>
    %cst_27 = arith.constant dense<0.000000e+00> : vector<2xf32>
    %29 = vector.multi_reduction <add>, %28, %cst_27 [0] : vector<32x2xf32> to vector<2xf32>
    %30 = vector.shape_cast %29 : vector<2xf32> to vector<1x2xf32>
    %cst_28 = arith.constant 3.200000e+01 : f32
    %31 = vector.broadcast %cst_28 : f32 to vector<1x2xf32>
    %32 = arith.divf %30, %31 : vector<1x2xf32>
    %33 = vector.broadcast %32 : vector<1x2xf32> to vector<32x2xf32>
    %34 = arith.subf %28, %33 : vector<32x2xf32>
    %35 = arith.mulf %34, %34 : vector<32x2xf32>
    %cst_29 = arith.constant dense<0.000000e+00> : vector<2xf32>
    %36 = vector.multi_reduction <add>, %35, %cst_29 [0] : vector<32x2xf32> to vector<2xf32>
    %37 = vector.shape_cast %36 : vector<2xf32> to vector<1x2xf32>
    %cst_30 = arith.constant 3.200000e+01 : f32
    %38 = vector.broadcast %cst_30 : f32 to vector<1x2xf32>
    %39 = arith.divf %37, %38 : vector<1x2xf32>
    %40 = vector.broadcast %32 : vector<1x2xf32> to vector<32x2xf32>
    %41 = arith.subf %28, %40 : vector<32x2xf32>
    %cst_31 = arith.constant 9.99999974E-6 : f32
    %42 = vector.broadcast %cst_31 : f32 to vector<1x2xf32>
    %43 = arith.addf %39, %42 : vector<1x2xf32>
    %44 = math.rsqrt %43 : vector<1x2xf32>
    %45 = vector.broadcast %44 : vector<1x2xf32> to vector<32x2xf32>
    %46 = arith.mulf %41, %45 : vector<32x2xf32>
    %c0_32 = arith.constant 0 : index
    %c0_33 = arith.constant 0 : index
    %47 = vector.load %arg11[%c0_32, %c0_33] : memref<32x1xf32, #tpu.memory_space<vmem>>, vector<32x1xf32>
    %48 = vector.broadcast %47 : vector<32x1xf32> to vector<32x2xf32>
    %49 = arith.mulf %46, %48 : vector<32x2xf32>
    %c0_34 = arith.constant 0 : index
    %c0_35 = arith.constant 0 : index
    %50 = vector.load %arg12[%c0_34, %c0_35] : memref<32x1xf32, #tpu.memory_space<vmem>>, vector<32x1xf32>
    %51 = vector.broadcast %50 : vector<32x1xf32> to vector<32x2xf32>
    %52 = arith.addf %49, %51 : vector<32x2xf32>
    %53 = arith.addf %52, %16 : vector<32x2xf32>
    %c0_36 = arith.constant 0 : index
    %c0_37 = arith.constant 0 : index
    %54 = vector.load %arg13[%c0_36, %c0_37] : memref<32x32xf32, #tpu.memory_space<vmem>>, vector<32x32xf32>
    %cst_38 = arith.constant dense<0.000000e+00> : vector<32x2xf32>
    %55 = tpu.matmul %54, %53, %cst_38 {dimension_numbers = #tpu.dot_dimension_numbers<[1], [0], [0], [1], [0, 0, 1, 1], [], []>} : vector<32x32xf32>, vector<32x2xf32>, vector<32x2xf32> -> vector<32x2xf32>
    %c0_39 = arith.constant 0 : index
    %c0_40 = arith.constant 0 : index
    %56 = vector.load %arg14[%c0_39, %c0_40] : memref<32x1xf32, #tpu.memory_space<vmem>>, vector<32x1xf32>
    %57 = vector.broadcast %56 : vector<32x1xf32> to vector<32x2xf32>
    %58 = arith.addf %55, %57 : vector<32x2xf32>
    %cst_41 = arith.constant 0.000000e+00 : f32
    %59 = vector.broadcast %cst_41 : f32 to vector<32x2xf32>
    %60 = arith.maximumf %58, %59 : vector<32x2xf32>
    %c0_42 = arith.constant 0 : index
    %c0_43 = arith.constant 0 : index
    %61 = vector.load %arg15[%c0_42, %c0_43] : memref<32x32xf32, #tpu.memory_space<vmem>>, vector<32x32xf32>
    %cst_44 = arith.constant dense<0.000000e+00> : vector<32x2xf32>
    %62 = tpu.matmul %61, %60, %cst_44 {dimension_numbers = #tpu.dot_dimension_numbers<[1], [0], [0], [1], [0, 0, 1, 1], [], []>} : vector<32x32xf32>, vector<32x2xf32>, vector<32x2xf32> -> vector<32x2xf32>
    %c0_45 = arith.constant 0 : index
    %c0_46 = arith.constant 0 : index
    %63 = vector.load %arg16[%c0_45, %c0_46] : memref<32x1xf32, #tpu.memory_space<vmem>>, vector<32x1xf32>
    %64 = vector.broadcast %63 : vector<32x1xf32> to vector<32x2xf32>
    %65 = arith.addf %62, %64 : vector<32x2xf32>
    %cst_47 = arith.constant dense<0.000000e+00> : vector<2xf32>
    %66 = vector.multi_reduction <add>, %65, %cst_47 [0] : vector<32x2xf32> to vector<2xf32>
    %67 = vector.shape_cast %66 : vector<2xf32> to vector<1x2xf32>
    %cst_48 = arith.constant 3.200000e+01 : f32
    %68 = vector.broadcast %cst_48 : f32 to vector<1x2xf32>
    %69 = arith.divf %67, %68 : vector<1x2xf32>
    %70 = vector.broadcast %69 : vector<1x2xf32> to vector<32x2xf32>
    %71 = arith.subf %65, %70 : vector<32x2xf32>
    %72 = arith.mulf %71, %71 : vector<32x2xf32>
    %cst_49 = arith.constant dense<0.000000e+00> : vector<2xf32>
    %73 = vector.multi_reduction <add>, %72, %cst_49 [0] : vector<32x2xf32> to vector<2xf32>
    %74 = vector.shape_cast %73 : vector<2xf32> to vector<1x2xf32>
    %cst_50 = arith.constant 3.200000e+01 : f32
    %75 = vector.broadcast %cst_50 : f32 to vector<1x2xf32>
    %76 = arith.divf %74, %75 : vector<1x2xf32>
    %77 = vector.broadcast %69 : vector<1x2xf32> to vector<32x2xf32>
    %78 = arith.subf %65, %77 : vector<32x2xf32>
    %cst_51 = arith.constant 9.99999974E-6 : f32
    %79 = vector.broadcast %cst_51 : f32 to vector<1x2xf32>
    %80 = arith.addf %76, %79 : vector<1x2xf32>
    %81 = math.rsqrt %80 : vector<1x2xf32>
    %82 = vector.broadcast %81 : vector<1x2xf32> to vector<32x2xf32>
    %83 = arith.mulf %78, %82 : vector<32x2xf32>
    %c0_52 = arith.constant 0 : index
    %c0_53 = arith.constant 0 : index
    %84 = vector.load %arg17[%c0_52, %c0_53] : memref<32x1xf32, #tpu.memory_space<vmem>>, vector<32x1xf32>
    %85 = vector.broadcast %84 : vector<32x1xf32> to vector<32x2xf32>
    %86 = arith.mulf %83, %85 : vector<32x2xf32>
    %c0_54 = arith.constant 0 : index
    %c0_55 = arith.constant 0 : index
    %87 = vector.load %arg18[%c0_54, %c0_55] : memref<32x1xf32, #tpu.memory_space<vmem>>, vector<32x1xf32>
    %88 = vector.broadcast %87 : vector<32x1xf32> to vector<32x2xf32>
    %89 = arith.addf %86, %88 : vector<32x2xf32>
    %90 = arith.addf %89, %53 : vector<32x2xf32>
    %c0_56 = arith.constant 0 : index
    %c0_57 = arith.constant 0 : index
    %91 = vector.load %arg19[%c0_56, %c0_57] : memref<1x32xf32, #tpu.memory_space<vmem>>, vector<1x32xf32>
    %cst_58 = arith.constant dense<0.000000e+00> : vector<1x2xf32>
    %92 = tpu.matmul %91, %90, %cst_58 {dimension_numbers = #tpu.dot_dimension_numbers<[1], [0], [0], [1], [0, 0, 1, 1], [], []>} : vector<1x32xf32>, vector<32x2xf32>, vector<1x2xf32> -> vector<1x2xf32>
    %c0_59 = arith.constant 0 : index
    %c0_60 = arith.constant 0 : index
    %93 = vector.load %arg20[%c0_59, %c0_60] : memref<1x1xf32, #tpu.memory_space<vmem>>, vector<1x1xf32>
    %94 = vector.broadcast %93 : vector<1x1xf32> to vector<1x2xf32>
    %95 = arith.addf %92, %94 : vector<1x2xf32>
    %c0_61 = arith.constant 0 : index
    %c0_62 = arith.constant 0 : index
    %96 = vector.load %arg21[%c0_61, %c0_62] : memref<1x2xf32, #tpu.memory_space<vmem>>, vector<1x2xf32>
    tpu.vector_store %arg21[%c0_61, %c0_62], %95 {strides = array<i32>} : memref<1x2xf32, #tpu.memory_space<vmem>>, vector<1x2xf32>,
    return
  }
}

</mosaic_0001>

<bundles_post_ra>
// kernel: pinno_forward.4
= control target key start
LH: loop header
LB: loop body
LE: loop exit
PB: predicated region body
PF: predicated region fallthrough
CT: control target
= control target key end

     0   :  { %s2997_s15 = smov 0   ;;  %s2999_s16 = smov 0   ;;  %s4477_s0 = inlined_call_operand.vmem [shape: f32[6,128], index: 0, kind: input, shape index: {}]   ;;  %s4478_s1 = inlined_call_operand.vmem [shape: f32[6,1], index: 1, kind: input, shape index: {}]   ;;  %s4479_s2 = inlined_call_operand.vmem [shape: f32[128,14112], index: 2, kind: input, shape index: {}]   ;;  %s4480_s3 = inlined_call_operand.vmem [shape: f32[6,14112], index: 3, kind: input, shape index: {}]   ;;  %s4481_s4 = inlined_call_operand.vmem [shape: f32[6,14112], index: 4, kind: output, shape index: {}]  }
   0x1   :  { %s3001_s17 = smov 0  }
   0x2 LB: > { %s3013_s18 = sadd.s32 4294967295, %s2836_s17   ;;  %s3016_s19 = sadd.s32 1, %s2836_s17   ;;  %s2836_s17 = sphi %s3001_s17, %s4511_s17   ;;  %s2832_s16 = sphi %s2999_s16, %s4510_s16   ;;  %s2828_s15 = sphi %s2997_s15, %s4509_s15  }
   0x3   : > { %s60_s20 = ssub.s32 %s2836_s17, %s3016_s19  ;;  %s63_s21 = sadd.s32 1, %s2832_s16 }
   0x4   : > { %p61_p0 = scmp.eq.s32.totalorder %s60_s20, 0  ;;  %p70_p1 = scmp.ne.s32.totalorder %s2832_s16, %s2828_s15 }
   0x5   : > { %p71_p2 = scmp.eq.s32.totalorder %s2836_s17, 0  ;;  %p126_p3 = scmp.eq.s32.totalorder %s3013_s18, 6 }
   0x6   : > { %s3026_s22 = scalar_select %p61_p0, %s2832_s16, %s63_s21  }
   0x7   : > { %p72_p4 = por %p71_p2, %p70_p1  ;;  %p3028_p5 = por %p126_p3, %p70_p1 }
   0x8   : > { %p2323_p6 = scmp.ge.s32.totalorder %s2836_s17, 7 }
   0xa   : > { %154 = sbr.rel (%p2323_p6) target bundleno = 198 (0xc6), region = 24 }
   0xf   : > { %157 = sbr.rel (!%p72_p4) target bundleno = 198 (0xc6), region = 28  ;;  %s159_s24 = sand.u32 (%p72_p4), 1, %s2832_s16  }
  0x10   : > { %s2325_s25 = sshll.u32 (%p72_p4), %s2836_s17, 4  ;;  %s2324_s26 = sshll.u32 (%p72_p4), %s159_s24, 11 }
  0x11   : > { %s163_s27 = ssub.s32 (%p72_p4), 111, %s2325_s25  ;;  %s2389_s28 = sshll.u32 (%p72_p4), %s2836_s17, 7 }
  0x12   : > { %p164_p7 = scmp.lt.s32.totalorder (%p72_p4), %s163_s27, 16  ;;  %s3039_s5 = scalar_lea.vmem (%p72_p4), %s4479_s2, %s2389_s28  }
  0x13   : > { %s3043_s8 = scalar_lea.vmem (%p72_p4), [#allocation2], %s2324_s26  }
  0x14   : > { %s4513_s27 = smov (!%p164_p7, %s163_s27), 16 }
  0x15   : > { %s2326_s6 = sshll.u32 %s4513_s27, 11  ;;  %s3041_s7 = sshll.u32 %s4513_s27, 3 }
  0x16   : > { %p2330_p8 = scmp.eq.s32.totalorder %s2326_s6, 0 }
  0x17   : > { %p174_p9 = scmp.lt.u32.totalorder (!%p2330_p8), %s3041_s7, 8 }
  0x18   : > { %173 = sbr.rel (%p2330_p8) target bundleno = 198 (0xc6), region = 32 }
  0x1d   : > { %177 = sbr.rel (%p174_p9) target bundleno = 175 (0xaf), region = 36  ;;  %s3047_s9 = sand.u32 (!%p174_p9), 7, %s3041_s7  }
  0x1e   : > { %p224_p10 = scmp.eq.s32.totalorder (!%p174_p9), %s3047_s9, 0  ;;  %p2331_p11 = scmp.ne.s32.totalorder (!%p174_p9), %s3047_s9, 0 }
  0x22   : > { %227 = sbr.rel (%p2331_p11) target bundleno = 95 (0x5f), region = 51  ;;  %s228_s10 = sshrl.u32 (!%p2331_p11), %s3041_s7, 3 }
  0x23   : > { %s3054_s11 = sshrl.u32 (!%p2331_p11), %s228_s10, 2 }
  0x24   : > { %p2332_p12 = scmp.le.s32.totalorder (!%p2331_p11), %s3054_s11, 0 }
  0x27   : > { %2187 = sbr.rel (%p2332_p12) target bundleno = 77 (0x4d), region = 236  ;;  %s4483_s12 = smov (!%p2332_p12), %s3043_s8 }
  0x28   : > { %s4484_s13 = smov (!%p2332_p12), %s3039_s5  ;;  %s3063_s14 = smov (!%p2332_p12), 0  }
  0x29   : > { %s3065_s20 = smov (!%p2332_p12), 0  }
  0x2c LB: >> { %v241_v0 = vld [vmem:[%s2844_s13] sm:$0xff]  ;;  %v243_v1 = vld [vmem:[%s2844_s13 + $0x8] sm:$0xff]  ;;  %v245_v2 = vld [vmem:[%s2844_s13 + $0x10] sm:$0xff]  ;;  %s369_s21 = sadd.s32 1, %s2848_s14  ;;  %s235_s20 = sadd.s32 1, %s2852_s20   ;;  %s2852_s20 = sphi %s3065_s20, %s235_s20   ;;  %s2848_s14 = sphi %s3063_s14, %s4487_s14   ;;  %s2844_s13 = sphi %s4484_s13, %s4486_s13   ;;  %s2840_s12 = sphi %s4483_s12, %s4485_s12  }
  0x2d   : >> { %242 = vst [vmem:[%s2840_s12] sm:$0xff] %v241_v0  ;;  %244 = vst [vmem:[%s2840_s12 + $0x8] sm:$0xff] %v243_v1  ;;  %v247_v3 = vld [vmem:[%s2844_s13 + $0x18] sm:$0xff]  ;;  %v251_v5 = vld [vmem:[%s2844_s13 + $0x380] sm:$0xff]  ;;  %p370_p13 = scmp.ge.s32.totalorder %s369_s21, %s3054_s11  ;;  %p234_p0 = scmp.ge.s32.totalorder %s235_s20, %s3054_s11 }
  0x2e   : >> { %246 = vst [vmem:[%s2840_s12 + $0x10] sm:$0xff] %v245_v2  ;;  %v249_v4 = vld [vmem:[%s2844_s13 + $0x378] sm:$0xff]  ;;  %248 = vst [vmem:[%s2840_s12 + $0x18] sm:$0xff] %v247_v3  ;;  %v253_v6 = vld [vmem:[%s2844_s13 + $0x388] sm:$0xff] }
  0x2f   : >> { %250 = vst [vmem:[%s2840_s12 + $0x80] sm:$0xff] %v249_v4  ;;  %252 = vst [vmem:[%s2840_s12 + $0x88] sm:$0xff] %v251_v5  ;;  %v255_v7 = vld [vmem:[%s2844_s13 + $0x390] sm:$0xff]  ;;  %v259_v9 = vld [vmem:[%s2844_s13 + $0x6f8] sm:$0xff]  ;;  %s4515_s21 = smov (%p370_p13, %s369_s21), 0 }
  0x30   : >> { %v257_v8 = vld [vmem:[%s2844_s13 + $0x6f0] sm:$0xff]  ;;  %254 = vst [vmem:[%s2840_s12 + $0x90] sm:$0xff] %v253_v6  ;;  %256 = vst [vmem:[%s2840_s12 + $0x98] sm:$0xff] %v255_v7  ;;  %v261_v10 = vld [vmem:[%s2844_s13 + $0x700] sm:$0xff]  ;;  %s2333_s24 = sshll.u32 %s4515_s21, 5  ;;  %s4487_s14 = smov %s4515_s21 }
  0x31   : >> { %258 = vst [vmem:[%s2840_s12 + $0x100] sm:$0xff] %v257_v8  ;;  %v263_v11 = vld [vmem:[%s2844_s13 + $0x708] sm:$0xff]  ;;  %260 = vst [vmem:[%s2840_s12 + $0x108] sm:$0xff] %v259_v9  ;;  %v267_v13 = vld [vmem:[%s2844_s13 + $0xa70] sm:$0xff]  ;;  %s3121_s25 = scalar_lea.vmem %s3039_s5, %s2333_s24   ;;  %s3124_s26 = scalar_lea.vmem %s3043_s8, %s2333_s24 [#allocation2]  }
  0x32   : >> { %262 = vst [vmem:[%s2840_s12 + $0x110] sm:$0xff] %v261_v10  ;;  %264 = vst [vmem:[%s2840_s12 + $0x118] sm:$0xff] %v263_v11  ;;  %v265_v12 = vld [vmem:[%s2844_s13 + $0xa68] sm:$0xff]  ;;  %v269_v14 = vld [vmem:[%s2844_s13 + $0xa78] sm:$0xff] }
  0x33   : >> { %266 = vst [vmem:[%s2840_s12 + $0x180] sm:$0xff] %v265_v12  ;;  %268 = vst [vmem:[%s2840_s12 + $0x188] sm:$0xff] %v267_v13  ;;  %v271_v15 = vld [vmem:[%s2844_s13 + $0xa80] sm:$0xff]  ;;  %v275_v17 = vld [vmem:[%s2844_s13 + $0xde8] sm:$0xff] }
  0x34   : >> { %270 = vst [vmem:[%s2840_s12 + $0x190] sm:$0xff] %v269_v14  ;;  %v273_v16 = vld [vmem:[%s2844_s13 + $0xde0] sm:$0xff]  ;;  %272 = vst [vmem:[%s2840_s12 + $0x198] sm:$0xff] %v271_v15  ;;  %v277_v18 = vld [vmem:[%s2844_s13 + $0xdf0] sm:$0xff] }
  0x35   : >> { %274 = vst [vmem:[%s2840_s12 + $0x200] sm:$0xff] %v273_v16  ;;  %276 = vst [vmem:[%s2840_s12 + $0x208] sm:$0xff] %v275_v17  ;;  %v279_v19 = vld [vmem:[%s2844_s13 + $0xdf8] sm:$0xff]  ;;  %v283_v21 = vld [vmem:[%s2844_s13 + $0x1160] sm:$0xff] }
  0x36   : >> { %v281_v20 = vld [vmem:[%s2844_s13 + $0x1158] sm:$0xff]  ;;  %278 = vst [vmem:[%s2840_s12 + $0x210] sm:$0xff] %v277_v18  ;;  %280 = vst [vmem:[%s2840_s12 + $0x218] sm:$0xff] %v279_v19  ;;  %v285_v22 = vld [vmem:[%s2844_s13 + $0x1168] sm:$0xff] }
  0x37   : >> { %282 = vst [vmem:[%s2840_s12 + $0x280] sm:$0xff] %v281_v20  ;;  %v287_v23 = vld [vmem:[%s2844_s13 + $0x1170] sm:$0xff]  ;;  %284 = vst [vmem:[%s2840_s12 + $0x288] sm:$0xff] %v283_v21  ;;  %v291_v25 = vld [vmem:[%s2844_s13 + $0x14d8] sm:$0xff] }
  0x38   : >> { %286 = vst [vmem:[%s2840_s12 + $0x290] sm:$0xff] %v285_v22  ;;  %288 = vst [vmem:[%s2840_s12 + $0x298] sm:$0xff] %v287_v23  ;;  %v289_v24 = vld [vmem:[%s2844_s13 + $0x14d0] sm:$0xff]  ;;  %v293_v26 = vld [vmem:[%s2844_s13 + $0x14e0] sm:$0xff] }
  0x39   : >> { %290 = vst [vmem:[%s2840_s12 + $0x300] sm:$0xff] %v289_v24  ;;  %292 = vst [vmem:[%s2840_s12 + $0x308] sm:$0xff] %v291_v25  ;;  %v295_v27 = vld [vmem:[%s2844_s13 + $0x14e8] sm:$0xff]  ;;  %v299_v29 = vld [vmem:[%s2844_s13 + $0x1850] sm:$0xff] }
  0x3a   : >> { %294 = vst [vmem:[%s2840_s12 + $0x310] sm:$0xff] %v293_v26  ;;  %v297_v28 = vld [vmem:[%s2844_s13 + $0x1848] sm:$0xff]  ;;  %296 = vst [vmem:[%s2840_s12 + $0x318] sm:$0xff] %v295_v27  ;;  %v301_v30 = vld [vmem:[%s2844_s13 + $0x1858] sm:$0xff] }
  0x3b   : >> { %298 = vst [vmem:[%s2840_s12 + $0x380] sm:$0xff] %v297_v28  ;;  %300 = vst [vmem:[%s2840_s12 + $0x388] sm:$0xff] %v299_v29  ;;  %v303_v31 = vld [vmem:[%s2844_s13 + $0x1860] sm:$0xff]  ;;  %v307_v33 = vld [vmem:[%s2844_s13 + $0x1bc8] sm:$0xff] }
  0x3c   : >> { %v305_v32 = vld [vmem:[%s2844_s13 + $0x1bc0] sm:$0xff]  ;;  %302 = vst [vmem:[%s2840_s12 + $0x390] sm:$0xff] %v301_v30  ;;  %304 = vst [vmem:[%s2840_s12 + $0x398] sm:$0xff] %v303_v31  ;;  %v309_v34 = vld [vmem:[%s2844_s13 + $0x1bd0] sm:$0xff] }
  0x3d   : >> { %306 = vst [vmem:[%s2840_s12 + $0x400] sm:$0xff] %v305_v32  ;;  %v311_v35 = vld [vmem:[%s2844_s13 + $0x1bd8] sm:$0xff]  ;;  %308 = vst [vmem:[%s2840_s12 + $0x408] sm:$0xff] %v307_v33  ;;  %v315_v37 = vld [vmem:[%s2844_s13 + $0x1f40] sm:$0xff] }
  0x3e   : >> { %310 = vst [vmem:[%s2840_s12 + $0x410] sm:$0xff] %v309_v34  ;;  %312 = vst [vmem:[%s2840_s12 + $0x418] sm:$0xff] %v311_v35  ;;  %v313_v36 = vld [vmem:[%s2844_s13 + $0x1f38] sm:$0xff]  ;;  %v317_v38 = vld [vmem:[%s2844_s13 + $0x1f48] sm:$0xff] }
  0x3f   : >> { %314 = vst [vmem:[%s2840_s12 + $0x480] sm:$0xff] %v313_v36  ;;  %316 = vst [vmem:[%s2840_s12 + $0x488] sm:$0xff] %v315_v37  ;;  %v319_v39 = vld [vmem:[%s2844_s13 + $0x1f50] sm:$0xff]  ;;  %v323_v41 = vld [vmem:[%s2844_s13 + $0x22b8] sm:$0xff] }
  0x40   : >> { %318 = vst [vmem:[%s2840_s12 + $0x490] sm:$0xff] %v317_v38  ;;  %v321_v40 = vld [vmem:[%s2844_s13 + $0x22b0] sm:$0xff]  ;;  %320 = vst [vmem:[%s2840_s12 + $0x498] sm:$0xff] %v319_v39  ;;  %v325_v42 = vld [vmem:[%s2844_s13 + $0x22c0] sm:$0xff] }
  0x41   : >> { %322 = vst [vmem:[%s2840_s12 + $0x500] sm:$0xff] %v321_v40  ;;  %324 = vst [vmem:[%s2840_s12 + $0x508] sm:$0xff] %v323_v41  ;;  %v327_v43 = vld [vmem:[%s2844_s13 + $0x22c8] sm:$0xff]  ;;  %v331_v45 = vld [vmem:[%s2844_s13 + $0x2630] sm:$0xff] }
  0x42   : >> { %v329_v44 = vld [vmem:[%s2844_s13 + $0x2628] sm:$0xff]  ;;  %326 = vst [vmem:[%s2840_s12 + $0x510] sm:$0xff] %v325_v42  ;;  %328 = vst [vmem:[%s2840_s12 + $0x518] sm:$0xff] %v327_v43  ;;  %v333_v46 = vld [vmem:[%s2844_s13 + $0x2638] sm:$0xff] }
  0x43   : >> { %330 = vst [vmem:[%s2840_s12 + $0x580] sm:$0xff] %v329_v44  ;;  %v335_v47 = vld [vmem:[%s2844_s13 + $0x2640] sm:$0xff]  ;;  %332 = vst [vmem:[%s2840_s12 + $0x588] sm:$0xff] %v331_v45  ;;  %v339_v49 = vld [vmem:[%s2844_s13 + $0x29a8] sm:$0xff] }
  0x44   : >> { %334 = vst [vmem:[%s2840_s12 + $0x590] sm:$0xff] %v333_v46  ;;  %336 = vst [vmem:[%s2840_s12 + $0x598] sm:$0xff] %v335_v47  ;;  %v337_v48 = vld [vmem:[%s2844_s13 + $0x29a0] sm:$0xff]  ;;  %v341_v50 = vld [vmem:[%s2844_s13 + $0x29b0] sm:$0xff] }
  0x45   : >> { %338 = vst [vmem:[%s2840_s12 + $0x600] sm:$0xff] %v337_v48  ;;  %340 = vst [vmem:[%s2840_s12 + $0x608] sm:$0xff] %v339_v49  ;;  %v343_v51 = vld [vmem:[%s2844_s13 + $0x29b8] sm:$0xff]  ;;  %v347_v53 = vld [vmem:[%s2844_s13 + $0x2d20] sm:$0xff] }
  0x46   : >> { %342 = vst [vmem:[%s2840_s12 + $0x610] sm:$0xff] %v341_v50  ;;  %v345_v52 = vld [vmem:[%s2844_s13 + $0x2d18] sm:$0xff]  ;;  %344 = vst [vmem:[%s2840_s12 + $0x618] sm:$0xff] %v343_v51  ;;  %v349_v54 = vld [vmem:[%s2844_s13 + $0x2d28] sm:$0xff] }
  0x47   : >> { %346 = vst [vmem:[%s2840_s12 + $0x680] sm:$0xff] %v345_v52  ;;  %348 = vst [vmem:[%s2840_s12 + $0x688] sm:$0xff] %v347_v53  ;;  %v351_v55 = vld [vmem:[%s2844_s13 + $0x2d30] sm:$0xff]  ;;  %v355_v57 = vld [vmem:[%s2844_s13 + $0x3098] sm:$0xff] }
  0x48   : >> { %v353_v56 = vld [vmem:[%s2844_s13 + $0x3090] sm:$0xff]  ;;  %350 = vst [vmem:[%s2840_s12 + $0x690] sm:$0xff] %v349_v54  ;;  %352 = vst [vmem:[%s2840_s12 + $0x698] sm:$0xff] %v351_v55  ;;  %v357_v58 = vld [vmem:[%s2844_s13 + $0x30a0] sm:$0xff]  ;;  %237 = sbr.rel (!%p234_p0) target bundleno = 44 (0x2c), region = 242 }
  0x49   : >> { %354 = vst [vmem:[%s2840_s12 + $0x700] sm:$0xff] %v353_v56  ;;  %v359_v59 = vld [vmem:[%s2844_s13 + $0x30a8] sm:$0xff]  ;;  %356 = vst [vmem:[%s2840_s12 + $0x708] sm:$0xff] %v355_v57  ;;  %v363_v61 = vld [vmem:[%s2844_s13 + $0x3410] sm:$0xff] }
  0x4a   : >> { %358 = vst [vmem:[%s2840_s12 + $0x710] sm:$0xff] %v357_v58  ;;  %360 = vst [vmem:[%s2840_s12 + $0x718] sm:$0xff] %v359_v59  ;;  %v361_v60 = vld [vmem:[%s2844_s13 + $0x3408] sm:$0xff]  ;;  %v365_v62 = vld [vmem:[%s2844_s13 + $0x3418] sm:$0xff] }
  0x4b   : >> { %362 = vst [vmem:[%s2840_s12 + $0x780] sm:$0xff] %v361_v60  ;;  %364 = vst [vmem:[%s2840_s12 + $0x788] sm:$0xff] %v363_v61  ;;  %v367_v63 = vld [vmem:[%s2844_s13 + $0x3420] sm:$0xff]  ;;  %s4486_s13 = smov %s3121_s25 }
  0x4c   : >> { %366 = vst [vmem:[%s2840_s12 + $0x790] sm:$0xff] %v365_v62  ;;  %368 = vst [vmem:[%s2840_s12 + $0x798] sm:$0xff] %v367_v63  ;;  %s4485_s12 = smov %s3124_s26 }
  0x4d PF: > { %s3230_s27 = sand.u32 3, %s228_s10   ;;  %s2390_s28 = sshll.u32 %s3054_s11, 9 }
  0x4e   : > { %s380_s29 = sshra.s32 %s2390_s28, 4  ;;  %p2338_p1 = scmp.le.s32.totalorder %s3230_s27, 0 }
  0x4f   : > { %s3234_s30 = scalar_lea.vmem %s3039_s5, %s380_s29   ;;  %s3237_s6 = scalar_lea.vmem %s3043_s8, %s380_s29 [#allocation2]  }
  0x50   : > { %2201 = sbr.rel (%p2338_p1) target bundleno = 95 (0x5f), region = 247  ;;  %s4488_s12 = smov (!%p2338_p1), %s3237_s6 }
  0x51   : > { %s4489_s13 = smov (!%p2338_p1), %s3234_s30  ;;  %s3246_s14 = smov (!%p2338_p1), 0  }
  0x52   : > { %s3248_s20 = smov (!%p2338_p1), 0  }
  0x55 LB: >> { %v396_v0 = vld [vmem:[%s2860_s13] sm:$0xff]  ;;  %v398_v1 = vld [vmem:[%s2860_s13 + $0x378] sm:$0xff]  ;;  %v400_v2 = vld [vmem:[%s2860_s13 + $0x6f0] sm:$0xff]  ;;  %s428_s10 = sadd.s32 1, %s2864_s14  ;;  %s390_s20 = sadd.s32 1, %s2868_s20   ;;  %s2868_s20 = sphi %s3248_s20, %s390_s20   ;;  %s2864_s14 = sphi %s3246_s14, %s4490_s14   ;;  %s2860_s13 = sphi %s4489_s13, %s433_s13   ;;  %s2856_s12 = sphi %s4488_s12, %s434_s12  }
  0x56   : >> { %397 = vst [vmem:[%s2856_s12] sm:$0xff] %v396_v0  ;;  %399 = vst [vmem:[%s2856_s12 + $0x80] sm:$0xff] %v398_v1  ;;  %v402_v3 = vld [vmem:[%s2860_s13 + $0xa68] sm:$0xff]  ;;  %v404_v4 = vld [vmem:[%s2860_s13 + $0xde0] sm:$0xff]  ;;  %p429_p2 = scmp.ge.s32.totalorder %s428_s10, %s3230_s27  ;;  %p389_p3 = scmp.ge.s32.totalorder %s390_s20, %s3230_s27 }
  0x57   : >> { %401 = vst [vmem:[%s2856_s12 + $0x100] sm:$0xff] %v400_v2  ;;  %v406_v5 = vld [vmem:[%s2860_s13 + $0x1158] sm:$0xff]  ;;  %403 = vst [vmem:[%s2856_s12 + $0x180] sm:$0xff] %v402_v3  ;;  %v408_v6 = vld [vmem:[%s2860_s13 + $0x14d0] sm:$0xff] }
  0x58   : >> { %405 = vst [vmem:[%s2856_s12 + $0x200] sm:$0xff] %v404_v4  ;;  %407 = vst [vmem:[%s2856_s12 + $0x280] sm:$0xff] %v406_v5  ;;  %v410_v7 = vld [vmem:[%s2860_s13 + $0x1848] sm:$0xff]  ;;  %v412_v8 = vld [vmem:[%s2860_s13 + $0x1bc0] sm:$0xff]  ;;  %s4517_s10 = smov (%p429_p2, %s428_s10), 0 }
  0x59   : >> { %409 = vst [vmem:[%s2856_s12 + $0x300] sm:$0xff] %v408_v6  ;;  %411 = vst [vmem:[%s2856_s12 + $0x380] sm:$0xff] %v410_v7  ;;  %v414_v9 = vld [vmem:[%s2860_s13 + $0x1f38] sm:$0xff]  ;;  %v416_v10 = vld [vmem:[%s2860_s13 + $0x22b0] sm:$0xff]  ;;  %s2339_s11 = sshll.u32 %s4517_s10, 3  ;;  %s4490_s14 = smov %s4517_s10 }
  0x5a   : >> { %413 = vst [vmem:[%s2856_s12 + $0x400] sm:$0xff] %v412_v8  ;;  %v418_v11 = vld [vmem:[%s2860_s13 + $0x2628] sm:$0xff]  ;;  %415 = vst [vmem:[%s2856_s12 + $0x480] sm:$0xff] %v414_v9  ;;  %v420_v12 = vld [vmem:[%s2860_s13 + $0x29a0] sm:$0xff]  ;;  %392 = sbr.rel (!%p389_p3) target bundleno = 85 (0x55), region = 253 }
  0x5b   : >> { %417 = vst [vmem:[%s2856_s12 + $0x500] sm:$0xff] %v416_v10  ;;  %419 = vst [vmem:[%s2856_s12 + $0x580] sm:$0xff] %v418_v11  ;;  %v422_v13 = vld [vmem:[%s2860_s13 + $0x2d18] sm:$0xff]  ;;  %v424_v14 = vld [vmem:[%s2860_s13 + $0x3090] sm:$0xff] }
  0x5c   : >> { %421 = vst [vmem:[%s2856_s12 + $0x600] sm:$0xff] %v420_v12  ;;  %423 = vst [vmem:[%s2856_s12 + $0x680] sm:$0xff] %v422_v13  ;;  %v426_v15 = vld [vmem:[%s2860_s13 + $0x3408] sm:$0xff]  ;;  %s433_s13 = scalar_lea.vmem %s3234_s30, %s2339_s11  }
  0x5d   : >> { %425 = vst [vmem:[%s2856_s12 + $0x700] sm:$0xff] %v424_v14  ;;  %427 = vst [vmem:[%s2856_s12 + $0x780] sm:$0xff] %v426_v15  ;;  %s434_s12 = scalar_lea.vmem %s3237_s6, %s2339_s11 [#allocation2]  }
  0x5f PF: > { %437 = sbr.rel (%p224_p10) target bundleno = 175 (0xaf), region = 69  ;;  %s439_s21 = ssub.s32 (!%p224_p10), %s3041_s7, %s3047_s9 }
  0x60   : > { %s443_s24 = sshrl.u32 (!%p224_p10), %s3041_s7, 3  ;;  %s3311_s25 = scalar_lea.vmem (!%p224_p10), %s3039_s5, %s439_s21 }
  0x61   : > { %s3314_s26 = scalar_lea.vmem (!%p224_p10), %s3043_s8, %s439_s21 [#allocation2]  ;;  %s3318_s28 = sshrl.u32 (!%p224_p10), %s443_s24, 2 }
  0x62   : > { %p2341_p4 = scmp.le.s32.totalorder (!%p224_p10), %s3318_s28, 0 }
  0x64   : > { %2215 = sbr.rel (%p2341_p4) target bundleno = 138 (0x8a), region = 258  ;;  %s4491_s27 = smov (!%p2341_p4), %s3043_s8 }
  0x65   : > { %s4492_s29 = smov (!%p2341_p4), %s3039_s5  ;;  %s3327_s30 = smov (!%p2341_p4), 0  }
  0x66   : > { %s3329_s6 = smov (!%p2341_p4), 0  }
  0x69 LB: >> { %v456_v16 = vld [vmem:[%s2876_s29] sm:$0xff]  ;;  %v458_v17 = vld [vmem:[%s2876_s29 + $0x8] sm:$0xff]  ;;  %v460_v18 = vld [vmem:[%s2876_s29 + $0x10] sm:$0xff]  ;;  %s584_s12 = sadd.s32 1, %s2880_s30  ;;  %s450_s6 = sadd.s32 1, %s2884_s6   ;;  %s2884_s6 = sphi %s3329_s6, %s450_s6   ;;  %s2880_s30 = sphi %s3327_s30, %s4495_s30   ;;  %s2876_s29 = sphi %s4492_s29, %s4494_s29   ;;  %s2872_s27 = sphi %s4491_s27, %s4493_s27  }
  0x6a   : >> { %457 = vst [vmem:[%s2872_s27] sm:$0xff] %v456_v16  ;;  %459 = vst [vmem:[%s2872_s27 + $0x8] sm:$0xff] %v458_v17  ;;  %v462_v19 = vld [vmem:[%s2876_s29 + $0x18] sm:$0xff]  ;;  %v466_v21 = vld [vmem:[%s2876_s29 + $0x380] sm:$0xff]  ;;  %p585_p6 = scmp.ge.s32.totalorder %s584_s12, %s3318_s28  ;;  %p449_p7 = scmp.ge.s32.totalorder %s450_s6, %s3318_s28 }
  0x6b   : >> { %461 = vst [vmem:[%s2872_s27 + $0x10] sm:$0xff] %v460_v18  ;;  %v464_v20 = vld [vmem:[%s2876_s29 + $0x378] sm:$0xff]  ;;  %463 = vst [vmem:[%s2872_s27 + $0x18] sm:$0xff] %v462_v19  ;;  %v468_v22 = vld [vmem:[%s2876_s29 + $0x388] sm:$0xff] }
  0x6c   : >> { %465 = vst [vmem:[%s2872_s27 + $0x80] sm:$0xff] %v464_v20  ;;  %467 = vst [vmem:[%s2872_s27 + $0x88] sm:$0xff] %v466_v21  ;;  %v470_v23 = vld [vmem:[%s2876_s29 + $0x390] sm:$0xff]  ;;  %v474_v25 = vld [vmem:[%s2876_s29 + $0x6f8] sm:$0xff]  ;;  %s4519_s12 = smov (%p585_p6, %s584_s12), 0 }
  0x6d   : >> { %v472_v24 = vld [vmem:[%s2876_s29 + $0x6f0] sm:$0xff]  ;;  %469 = vst [vmem:[%s2872_s27 + $0x90] sm:$0xff] %v468_v22  ;;  %471 = vst [vmem:[%s2872_s27 + $0x98] sm:$0xff] %v470_v23  ;;  %v476_v26 = vld [vmem:[%s2876_s29 + $0x700] sm:$0xff]  ;;  %s2342_s13 = sshll.u32 %s4519_s12, 5  ;;  %s4495_s30 = smov %s4519_s12 }
  0x6e   : >> { %473 = vst [vmem:[%s2872_s27 + $0x100] sm:$0xff] %v472_v24  ;;  %v478_v27 = vld [vmem:[%s2876_s29 + $0x708] sm:$0xff]  ;;  %475 = vst [vmem:[%s2872_s27 + $0x108] sm:$0xff] %v474_v25  ;;  %v482_v29 = vld [vmem:[%s2876_s29 + $0xa70] sm:$0xff]  ;;  %s3385_s14 = scalar_lea.vmem %s3039_s5, %s2342_s13   ;;  %s3388_s20 = scalar_lea.vmem %s3043_s8, %s2342_s13 [#allocation2]  }
  0x6f   : >> { %477 = vst [vmem:[%s2872_s27 + $0x110] sm:$0xff] %v476_v26  ;;  %479 = vst [vmem:[%s2872_s27 + $0x118] sm:$0xff] %v478_v27  ;;  %v480_v28 = vld [vmem:[%s2876_s29 + $0xa68] sm:$0xff]  ;;  %v484_v30 = vld [vmem:[%s2876_s29 + $0xa78] sm:$0xff] }
  0x70   : >> { %481 = vst [vmem:[%s2872_s27 + $0x180] sm:$0xff] %v480_v28  ;;  %483 = vst [vmem:[%s2872_s27 + $0x188] sm:$0xff] %v482_v29  ;;  %v486_v31 = vld [vmem:[%s2876_s29 + $0xa80] sm:$0xff]  ;;  %v490_v33 = vld [vmem:[%s2876_s29 + $0xde8] sm:$0xff] }
  0x71   : >> { %485 = vst [vmem:[%s2872_s27 + $0x190] sm:$0xff] %v484_v30  ;;  %v488_v32 = vld [vmem:[%s2876_s29 + $0xde0] sm:$0xff]  ;;  %487 = vst [vmem:[%s2872_s27 + $0x198] sm:$0xff] %v486_v31  ;;  %v492_v34 = vld [vmem:[%s2876_s29 + $0xdf0] sm:$0xff] }
  0x72   : >> { %489 = vst [vmem:[%s2872_s27 + $0x200] sm:$0xff] %v488_v32  ;;  %491 = vst [vmem:[%s2872_s27 + $0x208] sm:$0xff] %v490_v33  ;;  %v494_v35 = vld [vmem:[%s2876_s29 + $0xdf8] sm:$0xff]  ;;  %v498_v37 = vld [vmem:[%s2876_s29 + $0x1160] sm:$0xff] }
  0x73   : >> { %v496_v36 = vld [vmem:[%s2876_s29 + $0x1158] sm:$0xff]  ;;  %493 = vst [vmem:[%s2872_s27 + $0x210] sm:$0xff] %v492_v34  ;;  %495 = vst [vmem:[%s2872_s27 + $0x218] sm:$0xff] %v494_v35  ;;  %v500_v38 = vld [vmem:[%s2876_s29 + $0x1168] sm:$0xff] }
  0x74   : >> { %497 = vst [vmem:[%s2872_s27 + $0x280] sm:$0xff] %v496_v36  ;;  %v502_v39 = vld [vmem:[%s2876_s29 + $0x1170] sm:$0xff]  ;;  %499 = vst [vmem:[%s2872_s27 + $0x288] sm:$0xff] %v498_v37  ;;  %v506_v41 = vld [vmem:[%s2876_s29 + $0x14d8] sm:$0xff] }
  0x75   : >> { %501 = vst [vmem:[%s2872_s27 + $0x290] sm:$0xff] %v500_v38  ;;  %503 = vst [vmem:[%s2872_s27 + $0x298] sm:$0xff] %v502_v39  ;;  %v504_v40 = vld [vmem:[%s2876_s29 + $0x14d0] sm:$0xff]  ;;  %v508_v42 = vld [vmem:[%s2876_s29 + $0x14e0] sm:$0xff] }
  0x76   : >> { %505 = vst [vmem:[%s2872_s27 + $0x300] sm:$0xff] %v504_v40  ;;  %507 = vst [vmem:[%s2872_s27 + $0x308] sm:$0xff] %v506_v41  ;;  %v510_v43 = vld [vmem:[%s2876_s29 + $0x14e8] sm:$0xff]  ;;  %v514_v45 = vld [vmem:[%s2876_s29 + $0x1850] sm:$0xff] }
  0x77   : >> { %509 = vst [vmem:[%s2872_s27 + $0x310] sm:$0xff] %v508_v42  ;;  %v512_v44 = vld [vmem:[%s2876_s29 + $0x1848] sm:$0xff]  ;;  %511 = vst [vmem:[%s2872_s27 + $0x318] sm:$0xff] %v510_v43  ;;  %v516_v46 = vld [vmem:[%s2876_s29 + $0x1858] sm:$0xff] }
  0x78   : >> { %513 = vst [vmem:[%s2872_s27 + $0x380] sm:$0xff] %v512_v44  ;;  %515 = vst [vmem:[%s2872_s27 + $0x388] sm:$0xff] %v514_v45  ;;  %v518_v47 = vld [vmem:[%s2876_s29 + $0x1860] sm:$0xff]  ;;  %v522_v49 = vld [vmem:[%s2876_s29 + $0x1bc8] sm:$0xff] }
  0x79   : >> { %v520_v48 = vld [vmem:[%s2876_s29 + $0x1bc0] sm:$0xff]  ;;  %517 = vst [vmem:[%s2872_s27 + $0x390] sm:$0xff] %v516_v46  ;;  %519 = vst [vmem:[%s2872_s27 + $0x398] sm:$0xff] %v518_v47  ;;  %v524_v50 = vld [vmem:[%s2876_s29 + $0x1bd0] sm:$0xff] }
  0x7a   : >> { %521 = vst [vmem:[%s2872_s27 + $0x400] sm:$0xff] %v520_v48  ;;  %v526_v51 = vld [vmem:[%s2876_s29 + $0x1bd8] sm:$0xff]  ;;  %523 = vst [vmem:[%s2872_s27 + $0x408] sm:$0xff] %v522_v49  ;;  %v530_v53 = vld [vmem:[%s2876_s29 + $0x1f40] sm:$0xff] }
  0x7b   : >> { %525 = vst [vmem:[%s2872_s27 + $0x410] sm:$0xff] %v524_v50  ;;  %527 = vst [vmem:[%s2872_s27 + $0x418] sm:$0xff] %v526_v51  ;;  %v528_v52 = vld [vmem:[%s2876_s29 + $0x1f38] sm:$0xff]  ;;  %v532_v54 = vld [vmem:[%s2876_s29 + $0x1f48] sm:$0xff] }
  0x7c   : >> { %529 = vst [vmem:[%s2872_s27 + $0x480] sm:$0xff] %v528_v52  ;;  %531 = vst [vmem:[%s2872_s27 + $0x488] sm:$0xff] %v530_v53  ;;  %v534_v55 = vld [vmem:[%s2876_s29 + $0x1f50] sm:$0xff]  ;;  %v538_v57 = vld [vmem:[%s2876_s29 + $0x22b8] sm:$0xff] }
  0x7d   : >> { %533 = vst [vmem:[%s2872_s27 + $0x490] sm:$0xff] %v532_v54  ;;  %v536_v56 = vld [vmem:[%s2876_s29 + $0x22b0] sm:$0xff]  ;;  %535 = vst [vmem:[%s2872_s27 + $0x498] sm:$0xff] %v534_v55  ;;  %v540_v58 = vld [vmem:[%s2876_s29 + $0x22c0] sm:$0xff] }
  0x7e   : >> { %537 = vst [vmem:[%s2872_s27 + $0x500] sm:$0xff] %v536_v56  ;;  %539 = vst [vmem:[%s2872_s27 + $0x508] sm:$0xff] %v538_v57  ;;  %v542_v59 = vld [vmem:[%s2876_s29 + $0x22c8] sm:$0xff]  ;;  %v546_v61 = vld [vmem:[%s2876_s29 + $0x2630] sm:$0xff] }
  0x7f   : >> { %v544_v60 = vld [vmem:[%s2876_s29 + $0x2628] sm:$0xff]  ;;  %541 = vst [vmem:[%s2872_s27 + $0x510] sm:$0xff] %v540_v58  ;;  %543 = vst [vmem:[%s2872_s27 + $0x518] sm:$0xff] %v542_v59  ;;  %v548_v62 = vld [vmem:[%s2876_s29 + $0x2638] sm:$0xff] }
  0x80   : >> { %545 = vst [vmem:[%s2872_s27 + $0x580] sm:$0xff] %v544_v60  ;;  %v550_v63 = vld [vmem:[%s2876_s29 + $0x2640] sm:$0xff]  ;;  %547 = vst [vmem:[%s2872_s27 + $0x588] sm:$0xff] %v546_v61  ;;  %v554_v1 = vld [vmem:[%s2876_s29 + $0x29a8] sm:$0xff] }
  0x81   : >> { %549 = vst [vmem:[%s2872_s27 + $0x590] sm:$0xff] %v548_v62  ;;  %551 = vst [vmem:[%s2872_s27 + $0x598] sm:$0xff] %v550_v63  ;;  %v552_v0 = vld [vmem:[%s2876_s29 + $0x29a0] sm:$0xff]  ;;  %v556_v2 = vld [vmem:[%s2876_s29 + $0x29b0] sm:$0xff] }
  0x82   : >> { %553 = vst [vmem:[%s2872_s27 + $0x600] sm:$0xff] %v552_v0  ;;  %555 = vst [vmem:[%s2872_s27 + $0x608] sm:$0xff] %v554_v1  ;;  %v558_v3 = vld [vmem:[%s2876_s29 + $0x29b8] sm:$0xff]  ;;  %v562_v5 = vld [vmem:[%s2876_s29 + $0x2d20] sm:$0xff] }
  0x83   : >> { %557 = vst [vmem:[%s2872_s27 + $0x610] sm:$0xff] %v556_v2  ;;  %v560_v4 = vld [vmem:[%s2876_s29 + $0x2d18] sm:$0xff]  ;;  %559 = vst [vmem:[%s2872_s27 + $0x618] sm:$0xff] %v558_v3  ;;  %v564_v6 = vld [vmem:[%s2876_s29 + $0x2d28] sm:$0xff] }
  0x84   : >> { %561 = vst [vmem:[%s2872_s27 + $0x680] sm:$0xff] %v560_v4  ;;  %563 = vst [vmem:[%s2872_s27 + $0x688] sm:$0xff] %v562_v5  ;;  %v566_v7 = vld [vmem:[%s2876_s29 + $0x2d30] sm:$0xff]  ;;  %v570_v9 = vld [vmem:[%s2876_s29 + $0x3098] sm:$0xff] }
  0x85   : >> { %v568_v8 = vld [vmem:[%s2876_s29 + $0x3090] sm:$0xff]  ;;  %565 = vst [vmem:[%s2872_s27 + $0x690] sm:$0xff] %v564_v6  ;;  %567 = vst [vmem:[%s2872_s27 + $0x698] sm:$0xff] %v566_v7  ;;  %v572_v10 = vld [vmem:[%s2876_s29 + $0x30a0] sm:$0xff]  ;;  %452 = sbr.rel (!%p449_p7) target bundleno = 105 (0x69), region = 264 }
  0x86   : >> { %569 = vst [vmem:[%s2872_s27 + $0x700] sm:$0xff] %v568_v8  ;;  %v574_v11 = vld [vmem:[%s2876_s29 + $0x30a8] sm:$0xff]  ;;  %571 = vst [vmem:[%s2872_s27 + $0x708] sm:$0xff] %v570_v9  ;;  %v578_v13 = vld [vmem:[%s2876_s29 + $0x3410] sm:$0xff] }
  0x87   : >> { %573 = vst [vmem:[%s2872_s27 + $0x710] sm:$0xff] %v572_v10  ;;  %575 = vst [vmem:[%s2872_s27 + $0x718] sm:$0xff] %v574_v11  ;;  %v576_v12 = vld [vmem:[%s2876_s29 + $0x3408] sm:$0xff]  ;;  %v580_v14 = vld [vmem:[%s2876_s29 + $0x3418] sm:$0xff] }
  0x88   : >> { %577 = vst [vmem:[%s2872_s27 + $0x780] sm:$0xff] %v576_v12  ;;  %579 = vst [vmem:[%s2872_s27 + $0x788] sm:$0xff] %v578_v13  ;;  %v582_v15 = vld [vmem:[%s2876_s29 + $0x3420] sm:$0xff]  ;;  %s4494_s29 = smov %s3385_s14 }
  0x89   : >> { %581 = vst [vmem:[%s2872_s27 + $0x790] sm:$0xff] %v580_v14  ;;  %583 = vst [vmem:[%s2872_s27 + $0x798] sm:$0xff] %v582_v15  ;;  %s4493_s27 = smov %s3388_s20 }
  0x8a PF: > { %s3494_s10 = sand.u32 3, %s443_s24   ;;  %s2392_s11 = sshll.u32 %s3318_s28, 9 }
  0x8b   : > { %s595_s21 = sshra.s32 %s2392_s11, 4  ;;  %p2347_p8 = scmp.le.s32.totalorder %s3494_s10, 0 }
  0x8c   : > { %s3498_s13 = scalar_lea.vmem %s3039_s5, %s595_s21   ;;  %s3501_s20 = scalar_lea.vmem %s3043_s8, %s595_s21 [#allocation2]  }
  0x8d   : > { %2229 = sbr.rel (%p2347_p8) target bundleno = 156 (0x9c), region = 269  ;;  %s4496_s27 = smov (!%p2347_p8), %s3501_s20 }
  0x8e   : > { %s4497_s29 = smov (!%p2347_p8), %s3498_s13  ;;  %s3510_s30 = smov (!%p2347_p8), 0  }
  0x8f   : > { %s3512_s6 = smov (!%p2347_p8), 0  }
  0x92 LB: >> { %v611_v16 = vld [vmem:[%s2892_s29] sm:$0xff]  ;;  %v613_v17 = vld [vmem:[%s2892_s29 + $0x378] sm:$0xff]  ;;  %v615_v18 = vld [vmem:[%s2892_s29 + $0x6f0] sm:$0xff]  ;;  %s643_s24 = sadd.s32 1, %s2896_s30  ;;  %s605_s6 = sadd.s32 1, %s2900_s6   ;;  %s2900_s6 = sphi %s3512_s6, %s605_s6   ;;  %s2896_s30 = sphi %s3510_s30, %s4498_s30   ;;  %s2892_s29 = sphi %s4497_s29, %s648_s29   ;;  %s2888_s27 = sphi %s4496_s27, %s649_s27  }
  0x93   : >> { %612 = vst [vmem:[%s2888_s27] sm:$0xff] %v611_v16  ;;  %614 = vst [vmem:[%s2888_s27 + $0x80] sm:$0xff] %v613_v17  ;;  %v617_v19 = vld [vmem:[%s2892_s29 + $0xa68] sm:$0xff]  ;;  %v619_v20 = vld [vmem:[%s2892_s29 + $0xde0] sm:$0xff]  ;;  %p644_p9 = scmp.ge.s32.totalorder %s643_s24, %s3494_s10  ;;  %p604_p10 = scmp.ge.s32.totalorder %s605_s6, %s3494_s10 }
  0x94   : >> { %616 = vst [vmem:[%s2888_s27 + $0x100] sm:$0xff] %v615_v18  ;;  %v621_v21 = vld [vmem:[%s2892_s29 + $0x1158] sm:$0xff]  ;;  %618 = vst [vmem:[%s2888_s27 + $0x180] sm:$0xff] %v617_v19  ;;  %v623_v22 = vld [vmem:[%s2892_s29 + $0x14d0] sm:$0xff] }
  0x95   : >> { %620 = vst [vmem:[%s2888_s27 + $0x200] sm:$0xff] %v619_v20  ;;  %622 = vst [vmem:[%s2888_s27 + $0x280] sm:$0xff] %v621_v21  ;;  %v625_v23 = vld [vmem:[%s2892_s29 + $0x1848] sm:$0xff]  ;;  %v627_v24 = vld [vmem:[%s2892_s29 + $0x1bc0] sm:$0xff]  ;;  %s4521_s24 = smov (%p644_p9, %s643_s24), 0 }
  0x96   : >> { %624 = vst [vmem:[%s2888_s27 + $0x300] sm:$0xff] %v623_v22  ;;  %626 = vst [vmem:[%s2888_s27 + $0x380] sm:$0xff] %v625_v23  ;;  %v629_v25 = vld [vmem:[%s2892_s29 + $0x1f38] sm:$0xff]  ;;  %v631_v26 = vld [vmem:[%s2892_s29 + $0x22b0] sm:$0xff]  ;;  %s2348_s28 = sshll.u32 %s4521_s24, 3  ;;  %s4498_s30 = smov %s4521_s24 }
  0x97   : >> { %628 = vst [vmem:[%s2888_s27 + $0x400] sm:$0xff] %v627_v24  ;;  %v633_v27 = vld [vmem:[%s2892_s29 + $0x2628] sm:$0xff]  ;;  %630 = vst [vmem:[%s2888_s27 + $0x480] sm:$0xff] %v629_v25  ;;  %v635_v28 = vld [vmem:[%s2892_s29 + $0x29a0] sm:$0xff]  ;;  %607 = sbr.rel (!%p604_p10) target bundleno = 146 (0x92), region = 275 }
  0x98   : >> { %632 = vst [vmem:[%s2888_s27 + $0x500] sm:$0xff] %v631_v26  ;;  %634 = vst [vmem:[%s2888_s27 + $0x580] sm:$0xff] %v633_v27  ;;  %v637_v29 = vld [vmem:[%s2892_s29 + $0x2d18] sm:$0xff]  ;;  %v639_v30 = vld [vmem:[%s2892_s29 + $0x3090] sm:$0xff] }
  0x99   : >> { %636 = vst [vmem:[%s2888_s27 + $0x600] sm:$0xff] %v635_v28  ;;  %638 = vst [vmem:[%s2888_s27 + $0x680] sm:$0xff] %v637_v29  ;;  %v641_v31 = vld [vmem:[%s2892_s29 + $0x3408] sm:$0xff]  ;;  %s648_s29 = scalar_lea.vmem %s3498_s13, %s2348_s28  }
  0x9a   : >> { %640 = vst [vmem:[%s2888_s27 + $0x700] sm:$0xff] %v639_v30  ;;  %642 = vst [vmem:[%s2888_s27 + $0x780] sm:$0xff] %v641_v31  ;;  %s649_s27 = scalar_lea.vmem %s3501_s20, %s2348_s28 [#allocation2]  }
  0x9c PF: > { %s2966_s12 = smov 1  }
  0x9d   : > { %s650_s14 = sshll.u32 %s2966_s12, %s3047_s9 }
  0x9e   : > { %s3570_s11 = sadd.s32 4294967295, %s650_s14 }
  0x9f   : > { %v660_v32 = vld [vmem:[%s3311_s25] sm:%s3570_s11]  ;;  %v662_v33 = vld [vmem:[%s3311_s25 + $0x378] sm:%s3570_s11] }
  0xa0   : > { %661 = vst [vmem:[%s3314_s26] sm:%s3570_s11] %v660_v32  ;;  %663 = vst [vmem:[%s3314_s26 + $0x80] sm:%s3570_s11] %v662_v33 }
  0xa1   : > { %v664_v34 = vld [vmem:[%s3311_s25 + $0x6f0] sm:%s3570_s11]  ;;  %v666_v35 = vld [vmem:[%s3311_s25 + $0xa68] sm:%s3570_s11] }
  0xa2   : > { %665 = vst [vmem:[%s3314_s26 + $0x100] sm:%s3570_s11] %v664_v34  ;;  %667 = vst [vmem:[%s3314_s26 + $0x180] sm:%s3570_s11] %v666_v35 }
  0xa3   : > { %v668_v36 = vld [vmem:[%s3311_s25 + $0xde0] sm:%s3570_s11]  ;;  %v670_v37 = vld [vmem:[%s3311_s25 + $0x1158] sm:%s3570_s11] }
  0xa4   : > { %669 = vst [vmem:[%s3314_s26 + $0x200] sm:%s3570_s11] %v668_v36  ;;  %671 = vst [vmem:[%s3314_s26 + $0x280] sm:%s3570_s11] %v670_v37 }
  0xa5   : > { %v672_v38 = vld [vmem:[%s3311_s25 + $0x14d0] sm:%s3570_s11]  ;;  %v674_v39 = vld [vmem:[%s3311_s25 + $0x1848] sm:%s3570_s11] }
  0xa6   : > { %673 = vst [vmem:[%s3314_s26 + $0x300] sm:%s3570_s11] %v672_v38  ;;  %675 = vst [vmem:[%s3314_s26 + $0x380] sm:%s3570_s11] %v674_v39 }
  0xa7   : > { %v676_v40 = vld [vmem:[%s3311_s25 + $0x1bc0] sm:%s3570_s11]  ;;  %v678_v41 = vld [vmem:[%s3311_s25 + $0x1f38] sm:%s3570_s11] }
  0xa8   : > { %677 = vst [vmem:[%s3314_s26 + $0x400] sm:%s3570_s11] %v676_v40  ;;  %679 = vst [vmem:[%s3314_s26 + $0x480] sm:%s3570_s11] %v678_v41 }
  0xa9   : > { %v680_v42 = vld [vmem:[%s3311_s25 + $0x22b0] sm:%s3570_s11]  ;;  %v682_v43 = vld [vmem:[%s3311_s25 + $0x2628] sm:%s3570_s11] }
  0xaa   : > { %681 = vst [vmem:[%s3314_s26 + $0x500] sm:%s3570_s11] %v680_v42  ;;  %683 = vst [vmem:[%s3314_s26 + $0x580] sm:%s3570_s11] %v682_v43 }
  0xab   : > { %v684_v44 = vld [vmem:[%s3311_s25 + $0x29a0] sm:%s3570_s11]  ;;  %v686_v45 = vld [vmem:[%s3311_s25 + $0x2d18] sm:%s3570_s11] }
  0xac   : > { %685 = vst [vmem:[%s3314_s26 + $0x600] sm:%s3570_s11] %v684_v44  ;;  %687 = vst [vmem:[%s3314_s26 + $0x680] sm:%s3570_s11] %v686_v45 }
  0xad   : > { %v688_v46 = vld [vmem:[%s3311_s25 + $0x3090] sm:%s3570_s11]  ;;  %v690_v47 = vld [vmem:[%s3311_s25 + $0x3408] sm:%s3570_s11] }
  0xae   : > { %689 = vst [vmem:[%s3314_s26 + $0x700] sm:%s3570_s11] %v688_v46  ;;  %691 = vst [vmem:[%s3314_s26 + $0x780] sm:%s3570_s11] %v690_v47 }
  0xaf PF: > { %p2351_p11 = scmp.ge.u32.totalorder %s3041_s7, 8 }
  0xb0   : > { %s2967_s9 = smov (!%p2351_p11), 1  }
  0xb1   : > { %180 = sbr.rel (%p2351_p11) target bundleno = 198 (0xc6), region = 40  ;;  %s181_s25 = sshll.u32 (!%p2351_p11), %s2967_s9, %s3041_s7 }
  0xb2   : > { %s3638_s26 = sadd.s32 (!%p2351_p11), 4294967295, %s181_s25 }
  0xb6   : > { %v191_v48 = vld [vmem:[%s3039_s5] sm:%s3638_s26]  ;;  %v193_v49 = vld [vmem:[%s3039_s5 + $0x378] sm:%s3638_s26] }
  0xb7   : > { %192 = vst [vmem:[%s3043_s8] sm:%s3638_s26] %v191_v48  ;;  %194 = vst [vmem:[%s3043_s8 + $0x80] sm:%s3638_s26] %v193_v49 }
  0xb8   : > { %v195_v50 = vld [vmem:[%s3039_s5 + $0x6f0] sm:%s3638_s26]  ;;  %v197_v51 = vld [vmem:[%s3039_s5 + $0xa68] sm:%s3638_s26] }
  0xb9   : > { %196 = vst [vmem:[%s3043_s8 + $0x100] sm:%s3638_s26] %v195_v50  ;;  %198 = vst [vmem:[%s3043_s8 + $0x180] sm:%s3638_s26] %v197_v51 }
  0xba   : > { %v199_v52 = vld [vmem:[%s3039_s5 + $0xde0] sm:%s3638_s26]  ;;  %v201_v53 = vld [vmem:[%s3039_s5 + $0x1158] sm:%s3638_s26] }
  0xbb   : > { %200 = vst [vmem:[%s3043_s8 + $0x200] sm:%s3638_s26] %v199_v52  ;;  %202 = vst [vmem:[%s3043_s8 + $0x280] sm:%s3638_s26] %v201_v53 }
  0xbc   : > { %v203_v54 = vld [vmem:[%s3039_s5 + $0x14d0] sm:%s3638_s26]  ;;  %v205_v55 = vld [vmem:[%s3039_s5 + $0x1848] sm:%s3638_s26] }
  0xbd   : > { %204 = vst [vmem:[%s3043_s8 + $0x300] sm:%s3638_s26] %v203_v54  ;;  %206 = vst [vmem:[%s3043_s8 + $0x380] sm:%s3638_s26] %v205_v55 }
  0xbe   : > { %v207_v56 = vld [vmem:[%s3039_s5 + $0x1bc0] sm:%s3638_s26]  ;;  %v209_v57 = vld [vmem:[%s3039_s5 + $0x1f38] sm:%s3638_s26] }
  0xbf   : > { %208 = vst [vmem:[%s3043_s8 + $0x400] sm:%s3638_s26] %v207_v56  ;;  %210 = vst [vmem:[%s3043_s8 + $0x480] sm:%s3638_s26] %v209_v57 }
  0xc0   : > { %v211_v58 = vld [vmem:[%s3039_s5 + $0x22b0] sm:%s3638_s26]  ;;  %v213_v59 = vld [vmem:[%s3039_s5 + $0x2628] sm:%s3638_s26] }
  0xc1   : > { %212 = vst [vmem:[%s3043_s8 + $0x500] sm:%s3638_s26] %v211_v58  ;;  %214 = vst [vmem:[%s3043_s8 + $0x580] sm:%s3638_s26] %v213_v59 }
  0xc2   : > { %v215_v60 = vld [vmem:[%s3039_s5 + $0x29a0] sm:%s3638_s26]  ;;  %v217_v61 = vld [vmem:[%s3039_s5 + $0x2d18] sm:%s3638_s26] }
  0xc3   : > { %216 = vst [vmem:[%s3043_s8 + $0x600] sm:%s3638_s26] %v215_v60  ;;  %218 = vst [vmem:[%s3043_s8 + $0x680] sm:%s3638_s26] %v217_v61 }
  0xc4   : > { %v219_v62 = vld [vmem:[%s3039_s5 + $0x3090] sm:%s3638_s26]  ;;  %v221_v63 = vld [vmem:[%s3039_s5 + $0x3408] sm:%s3638_s26] }
  0xc5   : > { %220 = vst [vmem:[%s3043_s8 + $0x700] sm:%s3638_s26] %v219_v62  ;;  %222 = vst [vmem:[%s3043_s8 + $0x780] sm:%s3638_s26] %v221_v63 }
  0xc6 PF: > { %p2353_p12 = scmp.ge.s32.totalorder %s2836_s17, 1  ;;  %p711_p13 = scmp.lt.s32.totalorder %s2836_s17, 8 }
  0xc8   : > { %p712_p0 = pnand %p2353_p12, %p711_p13 }
  0xc9   : > { %s718_s7 = sand.u32 (!%p712_p0), 1, %s2828_s15   ;;  %s3992_s20 = sshll.u32 (!%p712_p0), %s3013_s18, 4 }
  0xca   : > { %715 = sbr.rel (%p712_p0) target bundleno = 692 (0x2b4), region = 98  ;;  %s2354_s10 = sshll.u32 (!%p712_p0), %s718_s7, 11 }
  0xcb   : > { %s3714_s21 = scalar_lea.vmem (!%p712_p0), [#allocation2], %s2354_s10  ;;  %p761_p1 = scmp.lt.s32.totalorder (!%p712_p0), %s3992_s20, 110 }
  0xcc   : > { %s2355_s28 = sshll.u32 (!%p712_p0), %s718_s7, 7 }
  0xcd   : > { %s4013_s15 = scalar_lea.vmem (!%p712_p0), [#allocation3], %s2355_s28  }
  0xcf   : > { %v2968_v0 = vmov 0.0   ;;  %v1616_v1 = vld [vmem:[%s4478_s1] sm:$0x3f]  ;;  %v2969_v2 = vmov 0   ;;  %v1017_v3 = vld [vmem:[%s3714_s21 + $0x788] sm:$0xff]  ;;  %v1019_v4 = vld [vmem:[%s3714_s21 + $0x798] sm:$0xff] }
  0xd0   : > { %1112 = vmatprep.mubr.f32.mxu0 %v2968_v0  ;;  %1183 = vmatprep.mubr.f32.mxu1 %v2968_v0  ;;  %v1016_v5 = vld [vmem:[%s3714_s21 + $0x780] sm:$0xff]  ;;  %v1018_v6 = vld [vmem:[%s3714_s21 + $0x790] sm:$0xff]  ;;  %v1001_v7 = vld [vmem:[%s3714_s21 + $0x708] sm:$0xff]  ;;  %s762_s27 = scalar_select %p761_p1, %s3992_s20, 110 }
  0xd1   : > { %2685 = vset.pattern.permute.xlu0 %v2969_v2  ;;  %1048 = vmatprep.subr.mxu0 %v1017_v3  ;;  %v1003_v8 = vld [vmem:[%s3714_s21 + $0x718] sm:$0xff]  ;;  %v1000_v9 = vld [vmem:[%s3714_s21 + $0x700] sm:$0xff]  ;;  %v1002_v10 = vld [vmem:[%s3714_s21 + $0x710] sm:$0xff]  ;;  %s1678_s12 = ssub.s32 (%p3028_p5), 111, %s3992_s20  ;;  %s2394_s14 = sshll.u32 (%p3028_p5), %s3013_s18, 7 }
  0xd2   : > { %1619 = vperm.xlu0 %2685, %v1616_v1   ;;  %1119 = vmatprep.subr.mxu1 %v1019_v4  ;;  %v985_v11 = vld [vmem:[%s3714_s21 + $0x688] sm:$0xff]  ;;  %v987_v12 = vld [vmem:[%s3714_s21 + $0x698] sm:$0xff]  ;;  %v984_v13 = vld [vmem:[%s3714_s21 + $0x680] sm:$0xff]  ;;  %s2357_s29 = sshll.u32 %s762_s27, 3  ;;  %p1679_p2 = scmp.lt.s32.totalorder (%p3028_p5), %s1678_s12, 16 }
  0xd3   : > { %1049 = vmatpush1.msra.mxu0 %v1016_v5  ;;  %1120 = vmatpush1.msra.mxu1 %v1018_v6  ;;  %v986_v14 = vld [vmem:[%s3714_s21 + $0x690] sm:$0xff]  ;;  %v969_v15 = vld [vmem:[%s3714_s21 + $0x608] sm:$0xff]  ;;  %v971_v16 = vld [vmem:[%s3714_s21 + $0x618] sm:$0xff]  ;;  %s3999_s24 = scalar_lea.vmem %s4480_s3, %s2357_s29  ;;  %s4062_s25 = scalar_lea.vmem (%p3028_p5), %s4481_s4, %s2394_s14  }
  0xd4   : > { %1050 = vmatprep.subr.mxu0 %v1001_v7  ;;  %1121 = vmatprep.subr.mxu1 %v1003_v8  ;;  %v968_v17 = vld [vmem:[%s3714_s21 + $0x600] sm:$0xff]  ;;  %v970_v18 = vld [vmem:[%s3714_s21 + $0x610] sm:$0xff]  ;;  %v953_v19 = vld [vmem:[%s3714_s21 + $0x588] sm:$0xff] }
  0xd5   : > { %1051 = vmatpush1.msra.mxu0 %v1000_v9  ;;  %1122 = vmatpush1.msra.mxu1 %v1002_v10  ;;  %v955_v20 = vld [vmem:[%s3714_s21 + $0x598] sm:$0xff]  ;;  %v952_v21 = vld [vmem:[%s3714_s21 + $0x580] sm:$0xff]  ;;  %v954_v22 = vld [vmem:[%s3714_s21 + $0x590] sm:$0xff] }
  0xd6   : > { %1052 = vmatprep.subr.mxu0 %v985_v11  ;;  %1123 = vmatprep.subr.mxu1 %v987_v12  ;;  %v937_v23 = vld [vmem:[%s3714_s21 + $0x508] sm:$0xff]  ;;  %v939_v24 = vld [vmem:[%s3714_s21 + $0x518] sm:$0xff]  ;;  %v936_v25 = vld [vmem:[%s3714_s21 + $0x500] sm:$0xff] }
  0xd7   : > { %1053 = vmatpush1.msra.mxu0 %v984_v13  ;;  %1124 = vmatpush1.msra.mxu1 %v986_v14  ;;  %v938_v26 = vld [vmem:[%s3714_s21 + $0x510] sm:$0xff]  ;;  %v921_v27 = vld [vmem:[%s3714_s21 + $0x488] sm:$0xff]  ;;  %v923_v28 = vld [vmem:[%s3714_s21 + $0x498] sm:$0xff] }
  0xd8   : > { %1054 = vmatprep.subr.mxu0 %v969_v15  ;;  %1125 = vmatprep.subr.mxu1 %v971_v16  ;;  %v920_v29 = vld [vmem:[%s3714_s21 + $0x480] sm:$0xff]  ;;  %v922_v30 = vld [vmem:[%s3714_s21 + $0x490] sm:$0xff]  ;;  %v905_v31 = vld [vmem:[%s3714_s21 + $0x408] sm:$0xff] }
  0xd9   : > { %1055 = vmatpush1.msra.mxu0 %v968_v17  ;;  %1126 = vmatpush1.msra.mxu1 %v970_v18  ;;  %v907_v32 = vld [vmem:[%s3714_s21 + $0x418] sm:$0xff]  ;;  %v904_v33 = vld [vmem:[%s3714_s21 + $0x400] sm:$0xff]  ;;  %v906_v34 = vld [vmem:[%s3714_s21 + $0x410] sm:$0xff] }
  0xda   : > { %1056 = vmatprep.subr.mxu0 %v953_v19  ;;  %1127 = vmatprep.subr.mxu1 %v955_v20  ;;  %v889_v35 = vld [vmem:[%s3714_s21 + $0x388] sm:$0xff]  ;;  %v891_v36 = vld [vmem:[%s3714_s21 + $0x398] sm:$0xff]  ;;  %v888_v37 = vld [vmem:[%s3714_s21 + $0x380] sm:$0xff] }
  0xdb   : > { %1057 = vmatpush1.msra.mxu0 %v952_v21  ;;  %1128 = vmatpush1.msra.mxu1 %v954_v22  ;;  %v890_v38 = vld [vmem:[%s3714_s21 + $0x390] sm:$0xff]  ;;  %v873_v39 = vld [vmem:[%s3714_s21 + $0x308] sm:$0xff]  ;;  %v875_v40 = vld [vmem:[%s3714_s21 + $0x318] sm:$0xff] }
  0xdc   : > { %1058 = vmatprep.subr.mxu0 %v937_v23  ;;  %1129 = vmatprep.subr.mxu1 %v939_v24  ;;  %v872_v41 = vld [vmem:[%s3714_s21 + $0x300] sm:$0xff]  ;;  %v874_v42 = vld [vmem:[%s3714_s21 + $0x310] sm:$0xff]  ;;  %v857_v43 = vld [vmem:[%s3714_s21 + $0x288] sm:$0xff] }
  0xdd   : > { %1059 = vmatpush1.msra.mxu0 %v936_v25  ;;  %1130 = vmatpush1.msra.mxu1 %v938_v26  ;;  %v859_v44 = vld [vmem:[%s3714_s21 + $0x298] sm:$0xff]  ;;  %v856_v45 = vld [vmem:[%s3714_s21 + $0x280] sm:$0xff]  ;;  %v858_v46 = vld [vmem:[%s3714_s21 + $0x290] sm:$0xff] }
  0xde   : > { %1060 = vmatprep.subr.mxu0 %v921_v27  ;;  %1131 = vmatprep.subr.mxu1 %v923_v28  ;;  %v841_v47 = vld [vmem:[%s3714_s21 + $0x208] sm:$0xff]  ;;  %v843_v48 = vld [vmem:[%s3714_s21 + $0x218] sm:$0xff]  ;;  %v840_v49 = vld [vmem:[%s3714_s21 + $0x200] sm:$0xff] }
  0xdf   : > { %1061 = vmatpush1.msra.mxu0 %v920_v29  ;;  %1132 = vmatpush1.msra.mxu1 %v922_v30  ;;  %v842_v50 = vld [vmem:[%s3714_s21 + $0x210] sm:$0xff]  ;;  %v825_v51 = vld [vmem:[%s3714_s21 + $0x188] sm:$0xff]  ;;  %v827_v52 = vld [vmem:[%s3714_s21 + $0x198] sm:$0xff] }
  0xe0   : > { %1062 = vmatprep.subr.mxu0 %v905_v31  ;;  %1133 = vmatprep.subr.mxu1 %v907_v32  ;;  %v824_v53 = vld [vmem:[%s3714_s21 + $0x180] sm:$0xff]  ;;  %v826_v54 = vld [vmem:[%s3714_s21 + $0x190] sm:$0xff]  ;;  %v809_v55 = vld [vmem:[%s3714_s21 + $0x108] sm:$0xff] }
  0xe1   : > { %1063 = vmatpush1.msra.mxu0 %v904_v33  ;;  %1134 = vmatpush1.msra.mxu1 %v906_v34  ;;  %v811_v56 = vld [vmem:[%s3714_s21 + $0x118] sm:$0xff]  ;;  %v808_v57 = vld [vmem:[%s3714_s21 + $0x100] sm:$0xff]  ;;  %v810_v58 = vld [vmem:[%s3714_s21 + $0x110] sm:$0xff] }
  0xe2   : > { %1064 = vmatprep.subr.mxu0 %v889_v35  ;;  %1135 = vmatprep.subr.mxu1 %v891_v36  ;;  %v793_v59 = vld [vmem:[%s3714_s21 + $0x88] sm:$0xff]  ;;  %v795_v60 = vld [vmem:[%s3714_s21 + $0x98] sm:$0xff]  ;;  %v792_v61 = vld [vmem:[%s3714_s21 + $0x80] sm:$0xff] }
  0xe3   : > { %1065 = vmatpush1.msra.mxu0 %v888_v37  ;;  %1136 = vmatpush1.msra.mxu1 %v890_v38  ;;  %v794_v62 = vld [vmem:[%s3714_s21 + $0x90] sm:$0xff]  ;;  %v777_v63 = vld [vmem:[%s3714_s21 + $0x8] sm:$0xff]  ;;  %v779_v1 = vld [vmem:[%s3714_s21 + $0x18] sm:$0xff] }
  0xe4   : > { %1066 = vmatprep.subr.mxu0 %v873_v39  ;;  %1137 = vmatprep.subr.mxu1 %v875_v40  ;;  %v776_v2 = vld [vmem:[%s3714_s21] sm:$0xff]  ;;  %v778_v3 = vld [vmem:[%s3714_s21 + $0x10] sm:$0xff]  ;;  %v1021_v5 = vld [vmem:[%s3714_s21 + $0x7a8] sm:$0xff] }
  0xe5   : > { %1067 = vmatpush1.msra.mxu0 %v872_v41  ;;  %1138 = vmatpush1.msra.mxu1 %v874_v42  ;;  %v3783_v4 = vld [vmem:[%s4477_s0] sm:$0x3f]  ;;  %v1023_v6 = vld [vmem:[%s3714_s21 + $0x7b8] sm:$0xff]  ;;  %v1022_v8 = vld [vmem:[%s3714_s21 + $0x7b0] sm:$0xff] }
  0xe6   : > { %1068 = vmatprep.subr.mxu0 %v857_v43  ;;  %1139 = vmatprep.subr.mxu1 %v859_v44  ;;  %v1020_v7 = vld [vmem:[%s3714_s21 + $0x7a0] sm:$0xff]  ;;  %v1005_v9 = vld [vmem:[%s3714_s21 + $0x728] sm:$0xff]  ;;  %v1007_v10 = vld [vmem:[%s3714_s21 + $0x738] sm:$0xff] }
  0xe7   : > { %1069 = vmatpush1.msra.mxu0 %v856_v45  ;;  %1140 = vmatpush1.msra.mxu1 %v858_v46  ;;  %v1004_v11 = vld [vmem:[%s3714_s21 + $0x720] sm:$0xff]  ;;  %v1006_v12 = vld [vmem:[%s3714_s21 + $0x730] sm:$0xff]  ;;  %v989_v13 = vld [vmem:[%s3714_s21 + $0x6a8] sm:$0xff] }
  0xe8   : > { %1070 = vmatprep.subr.mxu0 %v841_v47  ;;  %1141 = vmatprep.subr.mxu1 %v843_v48  ;;  %v991_v14 = vld [vmem:[%s3714_s21 + $0x6b8] sm:$0xff]  ;;  %v988_v15 = vld [vmem:[%s3714_s21 + $0x6a0] sm:$0xff]  ;;  %v990_v16 = vld [vmem:[%s3714_s21 + $0x6b0] sm:$0xff] }
  0xe9   : > { %1071 = vmatpush1.msra.mxu0 %v840_v49  ;;  %1142 = vmatpush1.msra.mxu1 %v842_v50  ;;  %v973_v17 = vld [vmem:[%s3714_s21 + $0x628] sm:$0xff]  ;;  %v975_v18 = vld [vmem:[%s3714_s21 + $0x638] sm:$0xff]  ;;  %v972_v19 = vld [vmem:[%s3714_s21 + $0x620] sm:$0xff] }
  0xea   : > { %1072 = vmatprep.subr.mxu0 %v825_v51  ;;  %1143 = vmatprep.subr.mxu1 %v827_v52  ;;  %v974_v20 = vld [vmem:[%s3714_s21 + $0x630] sm:$0xff]  ;;  %v957_v21 = vld [vmem:[%s3714_s21 + $0x5a8] sm:$0xff]  ;;  %v959_v22 = vld [vmem:[%s3714_s21 + $0x5b8] sm:$0xff] }
  0xeb   : > { %1073 = vmatpush1.msra.mxu0 %v824_v53  ;;  %1144 = vmatpush1.msra.mxu1 %v826_v54  ;;  %v956_v23 = vld [vmem:[%s3714_s21 + $0x5a0] sm:$0xff]  ;;  %v958_v24 = vld [vmem:[%s3714_s21 + $0x5b0] sm:$0xff]  ;;  %v941_v25 = vld [vmem:[%s3714_s21 + $0x528] sm:$0xff] }
  0xec   : > { %1074 = vmatprep.subr.mxu0 %v809_v55  ;;  %1145 = vmatprep.subr.mxu1 %v811_v56  ;;  %v943_v26 = vld [vmem:[%s3714_s21 + $0x538] sm:$0xff]  ;;  %v940_v27 = vld [vmem:[%s3714_s21 + $0x520] sm:$0xff]  ;;  %v942_v28 = vld [vmem:[%s3714_s21 + $0x530] sm:$0xff] }
  0xed   : > { %1075 = vmatpush1.msra.mxu0 %v808_v57  ;;  %1146 = vmatpush1.msra.mxu1 %v810_v58  ;;  %v925_v29 = vld [vmem:[%s3714_s21 + $0x4a8] sm:$0xff]  ;;  %v927_v30 = vld [vmem:[%s3714_s21 + $0x4b8] sm:$0xff]  ;;  %v924_v31 = vld [vmem:[%s3714_s21 + $0x4a0] sm:$0xff] }
  0xee   : > { %1076 = vmatprep.subr.mxu0 %v793_v59  ;;  %1147 = vmatprep.subr.mxu1 %v795_v60  ;;  %v926_v32 = vld [vmem:[%s3714_s21 + $0x4b0] sm:$0xff]  ;;  %v909_v33 = vld [vmem:[%s3714_s21 + $0x428] sm:$0xff]  ;;  %v911_v34 = vld [vmem:[%s3714_s21 + $0x438] sm:$0xff] }
  0xef   : > { %1077 = vmatpush1.msra.mxu0 %v792_v61  ;;  %1148 = vmatpush1.msra.mxu1 %v794_v62  ;;  %v908_v35 = vld [vmem:[%s3714_s21 + $0x420] sm:$0xff]  ;;  %v910_v36 = vld [vmem:[%s3714_s21 + $0x430] sm:$0xff]  ;;  %v893_v37 = vld [vmem:[%s3714_s21 + $0x3a8] sm:$0xff] }
  0xf0   : > { %1078 = vmatprep.subr.mxu0 %v777_v63  ;;  %1149 = vmatprep.subr.mxu1 %v779_v1  ;;  %v895_v38 = vld [vmem:[%s3714_s21 + $0x3b8] sm:$0xff]  ;;  %v892_v39 = vld [vmem:[%s3714_s21 + $0x3a0] sm:$0xff]  ;;  %v894_v40 = vld [vmem:[%s3714_s21 + $0x3b0] sm:$0xff] }
  0xf1   : > { %1079 = vmatpush1.msra.mxu0 %v776_v2  ;;  %1150 = vmatpush1.msra.mxu1 %v778_v3  ;;  %v877_v41 = vld [vmem:[%s3714_s21 + $0x328] sm:$0xff]  ;;  %v879_v42 = vld [vmem:[%s3714_s21 + $0x338] sm:$0xff]  ;;  %v876_v43 = vld [vmem:[%s3714_s21 + $0x320] sm:$0xff] }
  0xf2   : > { %1113 = vmatmul.mubr.f32.vlgmr.msra.gmra.mxu0 %v3783_v4  ;;  %1184 = vmatmul.mubr.f32.vlgmr.msra.gmra.mxu1 %v3783_v4  ;;  %v878_v44 = vld [vmem:[%s3714_s21 + $0x330] sm:$0xff]  ;;  %v861_v45 = vld [vmem:[%s3714_s21 + $0x2a8] sm:$0xff]  ;;  %v863_v46 = vld [vmem:[%s3714_s21 + $0x2b8] sm:$0xff] }
  0xf3   : > { %1190 = vmatprep.subr.mxu0 %v1021_v5  ;;  %1261 = vmatprep.subr.mxu1 %v1023_v6  ;;  %v860_v47 = vld [vmem:[%s3714_s21 + $0x2a0] sm:$0xff]  ;;  %v862_v48 = vld [vmem:[%s3714_s21 + $0x2b0] sm:$0xff]  ;;  %v845_v49 = vld [vmem:[%s3714_s21 + $0x228] sm:$0xff] }
  0xf4   : > { %1191 = vmatpush1.msra.mxu0 %v1020_v7  ;;  %1262 = vmatpush1.msra.mxu1 %v1022_v8  ;;  %v847_v50 = vld [vmem:[%s3714_s21 + $0x238] sm:$0xff]  ;;  %v844_v51 = vld [vmem:[%s3714_s21 + $0x220] sm:$0xff]  ;;  %v846_v52 = vld [vmem:[%s3714_s21 + $0x230] sm:$0xff] }
  0xf5   : > { %1192 = vmatprep.subr.mxu0 %v1005_v9  ;;  %1263 = vmatprep.subr.mxu1 %v1007_v10  ;;  %v829_v53 = vld [vmem:[%s3714_s21 + $0x1a8] sm:$0xff]  ;;  %v831_v54 = vld [vmem:[%s3714_s21 + $0x1b8] sm:$0xff]  ;;  %v828_v55 = vld [vmem:[%s3714_s21 + $0x1a0] sm:$0xff] }
  0xf6   : > { %1193 = vmatpush1.msra.mxu0 %v1004_v11  ;;  %1264 = vmatpush1.msra.mxu1 %v1006_v12  ;;  %v830_v56 = vld [vmem:[%s3714_s21 + $0x1b0] sm:$0xff]  ;;  %v813_v57 = vld [vmem:[%s3714_s21 + $0x128] sm:$0xff]  ;;  %v815_v58 = vld [vmem:[%s3714_s21 + $0x138] sm:$0xff] }
  0xf7   : > { %1194 = vmatprep.subr.mxu0 %v989_v13  ;;  %1265 = vmatprep.subr.mxu1 %v991_v14  ;;  %v812_v59 = vld [vmem:[%s3714_s21 + $0x120] sm:$0xff]  ;;  %v814_v60 = vld [vmem:[%s3714_s21 + $0x130] sm:$0xff]  ;;  %v797_v61 = vld [vmem:[%s3714_s21 + $0xa8] sm:$0xff] }
  0xf8   : > { %1195 = vmatpush1.msra.mxu0 %v988_v15  ;;  %1266 = vmatpush1.msra.mxu1 %v990_v16  ;;  %v799_v62 = vld [vmem:[%s3714_s21 + $0xb8] sm:$0xff]  ;;  %v796_v63 = vld [vmem:[%s3714_s21 + $0xa0] sm:$0xff]  ;;  %v798_v1 = vld [vmem:[%s3714_s21 + $0xb0] sm:$0xff] }
  0xf9   : > { %1196 = vmatprep.subr.mxu0 %v973_v17  ;;  %1267 = vmatprep.subr.mxu1 %v975_v18  ;;  %v781_v2 = vld [vmem:[%s3714_s21 + $0x28] sm:$0xff]  ;;  %v783_v3 = vld [vmem:[%s3714_s21 + $0x38] sm:$0xff]  ;;  %v780_v5 = vld [vmem:[%s3714_s21 + $0x20] sm:$0xff] }
  0xfa   : > { %1197 = vmatpush1.msra.mxu0 %v972_v19  ;;  %1268 = vmatpush1.msra.mxu1 %v974_v20  ;;  %v782_v6 = vld [vmem:[%s3714_s21 + $0x30] sm:$0xff]  ;;  %v1025_v7 = vld [vmem:[%s3714_s21 + $0x7c8] sm:$0xff]  ;;  %v1027_v8 = vld [vmem:[%s3714_s21 + $0x7d8] sm:$0xff] }
  0xfb   : > { %1198 = vmatprep.subr.mxu0 %v957_v21  ;;  %1269 = vmatprep.subr.mxu1 %v959_v22  ;;  %v1024_v9 = vld [vmem:[%s3714_s21 + $0x7c0] sm:$0xff]  ;;  %v1026_v10 = vld [vmem:[%s3714_s21 + $0x7d0] sm:$0xff]  ;;  %v1009_v11 = vld [vmem:[%s3714_s21 + $0x748] sm:$0xff] }
  0xfc   : > { %1199 = vmatpush1.msra.mxu0 %v956_v23  ;;  %1270 = vmatpush1.msra.mxu1 %v958_v24  ;;  %v1011_v12 = vld [vmem:[%s3714_s21 + $0x758] sm:$0xff]  ;;  %v1008_v13 = vld [vmem:[%s3714_s21 + $0x740] sm:$0xff]  ;;  %v1010_v14 = vld [vmem:[%s3714_s21 + $0x750] sm:$0xff] }
  0xfd   : > { %1200 = vmatprep.subr.mxu0 %v941_v25  ;;  %1271 = vmatprep.subr.mxu1 %v943_v26  ;;  %v993_v15 = vld [vmem:[%s3714_s21 + $0x6c8] sm:$0xff]  ;;  %v995_v16 = vld [vmem:[%s3714_s21 + $0x6d8] sm:$0xff]  ;;  %v992_v17 = vld [vmem:[%s3714_s21 + $0x6c0] sm:$0xff] }
  0xfe   : > { %1201 = vmatpush1.msra.mxu0 %v940_v27  ;;  %1272 = vmatpush1.msra.mxu1 %v942_v28  ;;  %v994_v18 = vld [vmem:[%s3714_s21 + $0x6d0] sm:$0xff]  ;;  %v977_v19 = vld [vmem:[%s3714_s21 + $0x648] sm:$0xff]  ;;  %v979_v20 = vld [vmem:[%s3714_s21 + $0x658] sm:$0xff] }
  0xff   : > { %1202 = vmatprep.subr.mxu0 %v925_v29  ;;  %1273 = vmatprep.subr.mxu1 %v927_v30  ;;  %v976_v21 = vld [vmem:[%s3714_s21 + $0x640] sm:$0xff]  ;;  %v978_v22 = vld [vmem:[%s3714_s21 + $0x650] sm:$0xff]  ;;  %v961_v23 = vld [vmem:[%s3714_s21 + $0x5c8] sm:$0xff] }
 0x100   : > { %1203 = vmatpush1.msra.mxu0 %v924_v31  ;;  %1274 = vmatpush1.msra.mxu1 %v926_v32  ;;  %v963_v24 = vld [vmem:[%s3714_s21 + $0x5d8] sm:$0xff]  ;;  %v960_v25 = vld [vmem:[%s3714_s21 + $0x5c0] sm:$0xff]  ;;  %v962_v26 = vld [vmem:[%s3714_s21 + $0x5d0] sm:$0xff] }
 0x101   : > { %1204 = vmatprep.subr.mxu0 %v909_v33  ;;  %1275 = vmatprep.subr.mxu1 %v911_v34  ;;  %v945_v27 = vld [vmem:[%s3714_s21 + $0x548] sm:$0xff]  ;;  %v947_v28 = vld [vmem:[%s3714_s21 + $0x558] sm:$0xff]  ;;  %v944_v29 = vld [vmem:[%s3714_s21 + $0x540] sm:$0xff] }
 0x102   : > { %1205 = vmatpush1.msra.mxu0 %v908_v35  ;;  %1276 = vmatpush1.msra.mxu1 %v910_v36  ;;  %v946_v30 = vld [vmem:[%s3714_s21 + $0x550] sm:$0xff]  ;;  %v929_v31 = vld [vmem:[%s3714_s21 + $0x4c8] sm:$0xff]  ;;  %v931_v32 = vld [vmem:[%s3714_s21 + $0x4d8] sm:$0xff] }
 0x103   : > { %1206 = vmatprep.subr.mxu0 %v893_v37  ;;  %1277 = vmatprep.subr.mxu1 %v895_v38  ;;  %v928_v33 = vld [vmem:[%s3714_s21 + $0x4c0] sm:$0xff]  ;;  %v930_v34 = vld [vmem:[%s3714_s21 + $0x4d0] sm:$0xff]  ;;  %v913_v35 = vld [vmem:[%s3714_s21 + $0x448] sm:$0xff] }
 0x104   : > { %1207 = vmatpush1.msra.mxu0 %v892_v39  ;;  %1278 = vmatpush1.msra.mxu1 %v894_v40  ;;  %v915_v36 = vld [vmem:[%s3714_s21 + $0x458] sm:$0xff]  ;;  %v912_v37 = vld [vmem:[%s3714_s21 + $0x440] sm:$0xff]  ;;  %v914_v38 = vld [vmem:[%s3714_s21 + $0x450] sm:$0xff] }
 0x105   : > { %1208 = vmatprep.subr.mxu0 %v877_v41  ;;  %1279 = vmatprep.subr.mxu1 %v879_v42  ;;  %v897_v39 = vld [vmem:[%s3714_s21 + $0x3c8] sm:$0xff]  ;;  %v899_v40 = vld [vmem:[%s3714_s21 + $0x3d8] sm:$0xff]  ;;  %v896_v41 = vld [vmem:[%s3714_s21 + $0x3c0] sm:$0xff] }
 0x106   : > { %1209 = vmatpush1.msra.mxu0 %v876_v43  ;;  %1280 = vmatpush1.msra.mxu1 %v878_v44  ;;  %v898_v42 = vld [vmem:[%s3714_s21 + $0x3d0] sm:$0xff]  ;;  %v881_v43 = vld [vmem:[%s3714_s21 + $0x348] sm:$0xff]  ;;  %v883_v44 = vld [vmem:[%s3714_s21 + $0x358] sm:$0xff] }
 0x107   : > { %1210 = vmatprep.subr.mxu0 %v861_v45  ;;  %1281 = vmatprep.subr.mxu1 %v863_v46  ;;  %v880_v45 = vld [vmem:[%s3714_s21 + $0x340] sm:$0xff]  ;;  %v882_v46 = vld [vmem:[%s3714_s21 + $0x350] sm:$0xff] }
 0x108   : > { %1211 = vmatpush1.msra.mxu0 %v860_v47  ;;  %1282 = vmatpush1.msra.mxu1 %v862_v48  ;;  %v865_v47 = vld [vmem:[%s3714_s21 + $0x2c8] sm:$0xff]  ;;  %v867_v48 = vld [vmem:[%s3714_s21 + $0x2d8] sm:$0xff] }
 0x109   : > { %1212 = vmatprep.subr.mxu0 %v845_v49  ;;  %1283 = vmatprep.subr.mxu1 %v847_v50  ;;  %v864_v49 = vld [vmem:[%s3714_s21 + $0x2c0] sm:$0xff]  ;;  %v866_v50 = vld [vmem:[%s3714_s21 + $0x2d0] sm:$0xff] }
 0x10a   : > { %1213 = vmatpush1.msra.mxu0 %v844_v51  ;;  %1284 = vmatpush1.msra.mxu1 %v846_v52  ;;  %v849_v51 = vld [vmem:[%s3714_s21 + $0x248] sm:$0xff]  ;;  %v851_v52 = vld [vmem:[%s3714_s21 + $0x258] sm:$0xff] }
 0x10b   : > { %1214 = vmatprep.subr.mxu0 %v829_v53  ;;  %1285 = vmatprep.subr.mxu1 %v831_v54  ;;  %v848_v53 = vld [vmem:[%s3714_s21 + $0x240] sm:$0xff]  ;;  %v850_v54 = vld [vmem:[%s3714_s21 + $0x250] sm:$0xff] }
 0x10c   : > { %1215 = vmatpush1.msra.mxu0 %v828_v55  ;;  %1286 = vmatpush1.msra.mxu1 %v830_v56  ;;  %v833_v55 = vld [vmem:[%s3714_s21 + $0x1c8] sm:$0xff]  ;;  %v835_v56 = vld [vmem:[%s3714_s21 + $0x1d8] sm:$0xff] }
 0x10d   : > { %1216 = vmatprep.subr.mxu0 %v813_v57  ;;  %1287 = vmatprep.subr.mxu1 %v815_v58  ;;  %v832_v57 = vld [vmem:[%s3714_s21 + $0x1c0] sm:$0xff]  ;;  %v834_v58 = vld [vmem:[%s3714_s21 + $0x1d0] sm:$0xff] }
 0x10e   : > { %1217 = vmatpush1.msra.mxu0 %v812_v59  ;;  %1288 = vmatpush1.msra.mxu1 %v814_v60  ;;  %v817_v59 = vld [vmem:[%s3714_s21 + $0x148] sm:$0xff]  ;;  %v819_v60 = vld [vmem:[%s3714_s21 + $0x158] sm:$0xff] }
 0x10f   : > { %1218 = vmatprep.subr.mxu0 %v797_v61  ;;  %1289 = vmatprep.subr.mxu1 %v799_v62  ;;  %v816_v61 = vld [vmem:[%s3714_s21 + $0x140] sm:$0xff]  ;;  %v818_v62 = vld [vmem:[%s3714_s21 + $0x150] sm:$0xff] }
 0x110   : > { %1219 = vmatpush1.msra.mxu0 %v796_v63  ;;  %1290 = vmatpush1.msra.mxu1 %v798_v1  ;;  %v801_v63 = vld [vmem:[%s3714_s21 + $0xc8] sm:$0xff]  ;;  %v803_v1 = vld [vmem:[%s3714_s21 + $0xd8] sm:$0xff] }
 0x111   : > { %1220 = vmatprep.subr.mxu0 %v781_v2  ;;  %1291 = vmatprep.subr.mxu1 %v783_v3  ;;  %v800_v2 = vld [vmem:[%s3714_s21 + $0xc0] sm:$0xff]  ;;  %v802_v3 = vld [vmem:[%s3714_s21 + $0xd0] sm:$0xff] }
 0x112   : > { %1221 = vmatpush1.msra.mxu0 %v780_v5  ;;  %1254 = vmatprep.mubr.f32.mxu0 %v2968_v0  ;;  %v785_v5 = vld [vmem:[%s3714_s21 + $0x48] sm:$0xff] }
 0x113   : > { %1292 = vmatpush1.msra.mxu1 %v782_v6  ;;  %1325 = vmatprep.mubr.f32.mxu1 %v2968_v0  ;;  %v787_v6 = vld [vmem:[%s3714_s21 + $0x58] sm:$0xff] }
 0x114   : > { %1255 = vmatmul.mubr.f32.vlgmr.msra.gmra.mxu0 %v3783_v4  ;;  %1326 = vmatmul.mubr.f32.vlgmr.msra.gmra.mxu1 %v3783_v4 }
 0x115   : > { %1332 = vmatprep.subr.mxu0 %v1025_v7  ;;  %1403 = vmatprep.subr.mxu1 %v1027_v8  ;;  %v784_v7 = vld [vmem:[%s3714_s21 + $0x40] sm:$0xff]  ;;  %v786_v8 = vld [vmem:[%s3714_s21 + $0x50] sm:$0xff] }
 0x116   : > { %1333 = vmatpush1.msra.mxu0 %v1024_v9  ;;  %1404 = vmatpush1.msra.mxu1 %v1026_v10  ;;  %v1029_v9 = vld [vmem:[%s3714_s21 + $0x7e8] sm:$0xff]  ;;  %v1031_v10 = vld [vmem:[%s3714_s21 + $0x7f8] sm:$0xff] }
 0x117   : > { %1334 = vmatprep.subr.mxu0 %v1009_v11  ;;  %1405 = vmatprep.subr.mxu1 %v1011_v12  ;;  %v1028_v11 = vld [vmem:[%s3714_s21 + $0x7e0] sm:$0xff]  ;;  %v1030_v12 = vld [vmem:[%s3714_s21 + $0x7f0] sm:$0xff] }
 0x118   : > { %1335 = vmatpush1.msra.mxu0 %v1008_v13  ;;  %1406 = vmatpush1.msra.mxu1 %v1010_v14  ;;  %v1013_v13 = vld [vmem:[%s3714_s21 + $0x768] sm:$0xff]  ;;  %v1015_v14 = vld [vmem:[%s3714_s21 + $0x778] sm:$0xff] }
 0x119   : > { %1336 = vmatprep.subr.mxu0 %v993_v15  ;;  %1407 = vmatprep.subr.mxu1 %v995_v16  ;;  %v1012_v15 = vld [vmem:[%s3714_s21 + $0x760] sm:$0xff]  ;;  %v1014_v16 = vld [vmem:[%s3714_s21 + $0x770] sm:$0xff] }
 0x11a   : > { %1337 = vmatpush1.msra.mxu0 %v992_v17  ;;  %1408 = vmatpush1.msra.mxu1 %v994_v18  ;;  %v997_v17 = vld [vmem:[%s3714_s21 + $0x6e8] sm:$0xff]  ;;  %v999_v18 = vld [vmem:[%s3714_s21 + $0x6f8] sm:$0xff] }
 0x11b   : > { %1338 = vmatprep.subr.mxu0 %v977_v19  ;;  %1409 = vmatprep.subr.mxu1 %v979_v20  ;;  %v996_v19 = vld [vmem:[%s3714_s21 + $0x6e0] sm:$0xff]  ;;  %v998_v20 = vld [vmem:[%s3714_s21 + $0x6f0] sm:$0xff] }
 0x11c   : > { %1339 = vmatpush1.msra.mxu0 %v976_v21  ;;  %1410 = vmatpush1.msra.mxu1 %v978_v22  ;;  %v981_v21 = vld [vmem:[%s3714_s21 + $0x668] sm:$0xff]  ;;  %v983_v22 = vld [vmem:[%s3714_s21 + $0x678] sm:$0xff] }
 0x11d   : > { %1340 = vmatprep.subr.mxu0 %v961_v23  ;;  %1411 = vmatprep.subr.mxu1 %v963_v24  ;;  %v980_v23 = vld [vmem:[%s3714_s21 + $0x660] sm:$0xff]  ;;  %v982_v24 = vld [vmem:[%s3714_s21 + $0x670] sm:$0xff] }
 0x11e   : > { %1341 = vmatpush1.msra.mxu0 %v960_v25  ;;  %1412 = vmatpush1.msra.mxu1 %v962_v26  ;;  %v965_v25 = vld [vmem:[%s3714_s21 + $0x5e8] sm:$0xff]  ;;  %v967_v26 = vld [vmem:[%s3714_s21 + $0x5f8] sm:$0xff] }
 0x11f   : > { %1342 = vmatprep.subr.mxu0 %v945_v27  ;;  %1413 = vmatprep.subr.mxu1 %v947_v28  ;;  %v964_v27 = vld [vmem:[%s3714_s21 + $0x5e0] sm:$0xff]  ;;  %v966_v28 = vld [vmem:[%s3714_s21 + $0x5f0] sm:$0xff] }
 0x120   : > { %1343 = vmatpush1.msra.mxu0 %v944_v29  ;;  %1414 = vmatpush1.msra.mxu1 %v946_v30  ;;  %v949_v29 = vld [vmem:[%s3714_s21 + $0x568] sm:$0xff]  ;;  %v951_v30 = vld [vmem:[%s3714_s21 + $0x578] sm:$0xff] }
 0x121   : > { %1344 = vmatprep.subr.mxu0 %v929_v31  ;;  %1415 = vmatprep.subr.mxu1 %v931_v32  ;;  %v948_v31 = vld [vmem:[%s3714_s21 + $0x560] sm:$0xff]  ;;  %v950_v32 = vld [vmem:[%s3714_s21 + $0x570] sm:$0xff] }
 0x122   : > { %1345 = vmatpush1.msra.mxu0 %v928_v33  ;;  %1416 = vmatpush1.msra.mxu1 %v930_v34  ;;  %v933_v33 = vld [vmem:[%s3714_s21 + $0x4e8] sm:$0xff]  ;;  %v935_v34 = vld [vmem:[%s3714_s21 + $0x4f8] sm:$0xff] }
 0x123   : > { %1346 = vmatprep.subr.mxu0 %v913_v35  ;;  %1417 = vmatprep.subr.mxu1 %v915_v36  ;;  %v932_v35 = vld [vmem:[%s3714_s21 + $0x4e0] sm:$0xff]  ;;  %v934_v36 = vld [vmem:[%s3714_s21 + $0x4f0] sm:$0xff] }
 0x124   : > { %1347 = vmatpush1.msra.mxu0 %v912_v37  ;;  %1418 = vmatpush1.msra.mxu1 %v914_v38  ;;  %v917_v37 = vld [vmem:[%s3714_s21 + $0x468] sm:$0xff]  ;;  %v919_v38 = vld [vmem:[%s3714_s21 + $0x478] sm:$0xff] }
 0x125   : > { %1348 = vmatprep.subr.mxu0 %v897_v39  ;;  %1419 = vmatprep.subr.mxu1 %v899_v40  ;;  %v916_v39 = vld [vmem:[%s3714_s21 + $0x460] sm:$0xff]  ;;  %v918_v40 = vld [vmem:[%s3714_s21 + $0x470] sm:$0xff] }
 0x126   : > { %1349 = vmatpush1.msra.mxu0 %v896_v41  ;;  %1420 = vmatpush1.msra.mxu1 %v898_v42  ;;  %v901_v41 = vld [vmem:[%s3714_s21 + $0x3e8] sm:$0xff]  ;;  %v903_v42 = vld [vmem:[%s3714_s21 + $0x3f8] sm:$0xff] }
 0x127   : > { %1350 = vmatprep.subr.mxu0 %v881_v43  ;;  %1421 = vmatprep.subr.mxu1 %v883_v44  ;;  %v900_v43 = vld [vmem:[%s3714_s21 + $0x3e0] sm:$0xff]  ;;  %v902_v44 = vld [vmem:[%s3714_s21 + $0x3f0] sm:$0xff] }
 0x128   : > { %1351 = vmatpush1.msra.mxu0 %v880_v45  ;;  %1422 = vmatpush1.msra.mxu1 %v882_v46  ;;  %v885_v45 = vld [vmem:[%s3714_s21 + $0x368] sm:$0xff]  ;;  %v887_v46 = vld [vmem:[%s3714_s21 + $0x378] sm:$0xff] }
 0x129   : > { %1352 = vmatprep.subr.mxu0 %v865_v47  ;;  %1423 = vmatprep.subr.mxu1 %v867_v48  ;;  %v884_v47 = vld [vmem:[%s3714_s21 + $0x360] sm:$0xff]  ;;  %v886_v48 = vld [vmem:[%s3714_s21 + $0x370] sm:$0xff] }
 0x12a   : > { %1353 = vmatpush1.msra.mxu0 %v864_v49  ;;  %1424 = vmatpush1.msra.mxu1 %v866_v50  ;;  %v869_v49 = vld [vmem:[%s3714_s21 + $0x2e8] sm:$0xff]  ;;  %v871_v50 = vld [vmem:[%s3714_s21 + $0x2f8] sm:$0xff] }
 0x12b   : > { %1354 = vmatprep.subr.mxu0 %v849_v51  ;;  %1425 = vmatprep.subr.mxu1 %v851_v52  ;;  %v868_v51 = vld [vmem:[%s3714_s21 + $0x2e0] sm:$0xff]  ;;  %v870_v52 = vld [vmem:[%s3714_s21 + $0x2f0] sm:$0xff] }
 0x12c   : > { %1355 = vmatpush1.msra.mxu0 %v848_v53  ;;  %1426 = vmatpush1.msra.mxu1 %v850_v54  ;;  %v853_v53 = vld [vmem:[%s3714_s21 + $0x268] sm:$0xff]  ;;  %v855_v54 = vld [vmem:[%s3714_s21 + $0x278] sm:$0xff] }
 0x12d   : > { %1356 = vmatprep.subr.mxu0 %v833_v55  ;;  %1427 = vmatprep.subr.mxu1 %v835_v56  ;;  %v852_v55 = vld [vmem:[%s3714_s21 + $0x260] sm:$0xff]  ;;  %v854_v56 = vld [vmem:[%s3714_s21 + $0x270] sm:$0xff] }
 0x12e   : > { %1357 = vmatpush1.msra.mxu0 %v832_v57  ;;  %1428 = vmatpush1.msra.mxu1 %v834_v58  ;;  %v837_v57 = vld [vmem:[%s3714_s21 + $0x1e8] sm:$0xff]  ;;  %v839_v58 = vld [vmem:[%s3714_s21 + $0x1f8] sm:$0xff] }
 0x12f   : > { %1358 = vmatprep.subr.mxu0 %v817_v59  ;;  %1429 = vmatprep.subr.mxu1 %v819_v60  ;;  %v836_v59 = vld [vmem:[%s3714_s21 + $0x1e0] sm:$0xff]  ;;  %v838_v60 = vld [vmem:[%s3714_s21 + $0x1f0] sm:$0xff] }
 0x130   : > { %1359 = vmatpush1.msra.mxu0 %v816_v61  ;;  %1430 = vmatpush1.msra.mxu1 %v818_v62  ;;  %v821_v61 = vld [vmem:[%s3714_s21 + $0x168] sm:$0xff]  ;;  %v823_v62 = vld [vmem:[%s3714_s21 + $0x178] sm:$0xff] }
 0x131   : > { %1360 = vmatprep.subr.mxu0 %v801_v63  ;;  %1431 = vmatprep.subr.mxu1 %v803_v1  ;;  %v820_v63 = vld [vmem:[%s3714_s21 + $0x160] sm:$0xff]  ;;  %v822_v1 = vld [vmem:[%s3714_s21 + $0x170] sm:$0xff] }
 0x132   : > { %1361 = vmatpush1.msra.mxu0 %v800_v2  ;;  %1432 = vmatpush1.msra.mxu1 %v802_v3  ;;  %v805_v2 = vld [vmem:[%s3714_s21 + $0xe8] sm:$0xff]  ;;  %v807_v3 = vld [vmem:[%s3714_s21 + $0xf8] sm:$0xff] }
 0x133   : > { %1362 = vmatprep.subr.mxu0 %v785_v5  ;;  %1433 = vmatprep.subr.mxu1 %v787_v6  ;;  %v804_v5 = vld [vmem:[%s3714_s21 + $0xe0] sm:$0xff]  ;;  %v806_v6 = vld [vmem:[%s3714_s21 + $0xf0] sm:$0xff] }
 0x134   : > { %1363 = vmatpush1.msra.mxu0 %v784_v7  ;;  %1396 = vmatprep.mubr.f32.mxu0 %v2968_v0  ;;  %v789_v7 = vld [vmem:[%s3714_s21 + $0x68] sm:$0xff] }
 0x135   : > { %1434 = vmatpush1.msra.mxu1 %v786_v8  ;;  %1467 = vmatprep.mubr.f32.mxu1 %v2968_v0  ;;  %v791_v8 = vld [vmem:[%s3714_s21 + $0x78] sm:$0xff] }
 0x136   : > { %1397 = vmatmul.mubr.f32.vlgmr.msra.gmra.mxu0 %v3783_v4  ;;  %1468 = vmatmul.mubr.f32.vlgmr.msra.gmra.mxu1 %v3783_v4 }
 0x137   : > { %1474 = vmatprep.subr.mxu0 %v1029_v9  ;;  %1545 = vmatprep.subr.mxu1 %v1031_v10  ;;  %v788_v9 = vld [vmem:[%s3714_s21 + $0x60] sm:$0xff]  ;;  %v790_v10 = vld [vmem:[%s3714_s21 + $0x70] sm:$0xff] }
 0x138   : > { %1475 = vmatpush1.msra.mxu0 %v1028_v11  ;;  %1546 = vmatpush1.msra.mxu1 %v1030_v12  ;;  %v1034_v11 = vld [vmem:[%s3999_s24 + $0x10] sm:$0x3f] }
 0x139   : > { %1476 = vmatprep.subr.mxu0 %v1013_v13  ;;  %1547 = vmatprep.subr.mxu1 %v1015_v14  ;;  %v1033_v14 = vld [vmem:[%s3999_s24 + $0x8] sm:$0x3f] }
 0x13a   : > { %1477 = vmatpush1.msra.mxu0 %v1012_v15  ;;  %1548 = vmatpush1.msra.mxu1 %v1014_v16  ;;  %v1035_v15 = vld [vmem:[%s3999_s24 + $0x18] sm:$0x3f] }
 0x13b   : > { %1478 = vmatprep.subr.mxu0 %v997_v17  ;;  %1549 = vmatprep.subr.mxu1 %v999_v18 }
 0x13c   : > { %1479 = vmatpush1.msra.mxu0 %v996_v19  ;;  %1550 = vmatpush1.msra.mxu1 %v998_v20 }
 0x13d   : > { %1480 = vmatprep.subr.mxu0 %v981_v21  ;;  %1551 = vmatprep.subr.mxu1 %v983_v22 }
 0x13e   : > { %1481 = vmatpush1.msra.mxu0 %v980_v23  ;;  %1552 = vmatpush1.msra.mxu1 %v982_v24 }
 0x13f   : > { %1482 = vmatprep.subr.mxu0 %v965_v25  ;;  %1553 = vmatprep.subr.mxu1 %v967_v26 }
 0x140   : > { %1483 = vmatpush1.msra.mxu0 %v964_v27  ;;  %1554 = vmatpush1.msra.mxu1 %v966_v28 }
 0x141   : > { %1484 = vmatprep.subr.mxu0 %v949_v29  ;;  %1555 = vmatprep.subr.mxu1 %v951_v30  ;;  %v1036_v30 = vld [vmem:[%s3999_s24 + $0x20] sm:$0x3f] }
 0x142   : > { %1485 = vmatpush1.msra.mxu0 %v948_v31  ;;  %1556 = vmatpush1.msra.mxu1 %v950_v32  ;;  %v1038_v31 = vld [vmem:[%s3999_s24 + $0x30] sm:$0x3f] }
 0x143   : > { %1486 = vmatprep.subr.mxu0 %v933_v33  ;;  %1557 = vmatprep.subr.mxu1 %v935_v34  ;;  %v1037_v34 = vld [vmem:[%s3999_s24 + $0x28] sm:$0x3f] }
 0x144   : > { %1487 = vmatpush1.msra.mxu0 %v932_v35  ;;  %1558 = vmatpush1.msra.mxu1 %v934_v36  ;;  %v1039_v35 = vld [vmem:[%s3999_s24 + $0x38] sm:$0x3f] }
 0x145   : > { %1488 = vmatprep.subr.mxu0 %v917_v37  ;;  %1559 = vmatprep.subr.mxu1 %v919_v38 }
 0x146   : > { %1489 = vmatpush1.msra.mxu0 %v916_v39  ;;  %1560 = vmatpush1.msra.mxu1 %v918_v40 }
 0x147   : > { %1490 = vmatprep.subr.mxu0 %v901_v41  ;;  %1561 = vmatprep.subr.mxu1 %v903_v42 }
 0x148   : > { %1491 = vmatpush1.msra.mxu0 %v900_v43  ;;  %1562 = vmatpush1.msra.mxu1 %v902_v44 }
 0x149   : > { %1492 = vmatprep.subr.mxu0 %v885_v45  ;;  %1563 = vmatprep.subr.mxu1 %v887_v46 }
 0x14a   : > { %1493 = vmatpush1.msra.mxu0 %v884_v47  ;;  %1564 = vmatpush1.msra.mxu1 %v886_v48 }
 0x14b   : > { %1494 = vmatprep.subr.mxu0 %v869_v49  ;;  %1565 = vmatprep.subr.mxu1 %v871_v50  ;;  %v1040_v50 = vld [vmem:[%s3999_s24 + $0x40] sm:$0x3f] }
 0x14c   : > { %1495 = vmatpush1.msra.mxu0 %v868_v51  ;;  %1566 = vmatpush1.msra.mxu1 %v870_v52  ;;  %v1042_v51 = vld [vmem:[%s3999_s24 + $0x50] sm:$0x3f] }
 0x14d   : > { %1496 = vmatprep.subr.mxu0 %v853_v53  ;;  %1567 = vmatprep.subr.mxu1 %v855_v54  ;;  %v4003_v12 = vpop.permute.xlu0 %1619  ;;  %v1041_v54 = vld [vmem:[%s3999_s24 + $0x48] sm:$0x3f] }
 0x14e   : > { %1497 = vmatpush1.msra.mxu0 %v852_v55  ;;  %1568 = vmatpush1.msra.mxu1 %v854_v56  ;;  %v1043_v55 = vld [vmem:[%s3999_s24 + $0x58] sm:$0x3f] }
 0x14f   : > { %1498 = vmatprep.subr.mxu0 %v837_v57  ;;  %1569 = vmatprep.subr.mxu1 %v839_v58 }
 0x150   : > { %1499 = vmatpush1.msra.mxu0 %v836_v59  ;;  %1570 = vmatpush1.msra.mxu1 %v838_v60 }
 0x151   : > { %1500 = vmatprep.subr.mxu0 %v821_v61  ;;  %1571 = vmatprep.subr.mxu1 %v823_v62 }
 0x152   : > { %1501 = vmatpush1.msra.mxu0 %v820_v63  ;;  %1572 = vmatpush1.msra.mxu1 %v822_v1 }
 0x153   : > { %1502 = vmatprep.subr.mxu0 %v805_v2  ;;  %1573 = vmatprep.subr.mxu1 %v807_v3 }
 0x154   : > { %1503 = vmatpush1.msra.mxu0 %v804_v5  ;;  %1574 = vmatpush1.msra.mxu1 %v806_v6 }
 0x155   : > { %1504 = vmatprep.subr.mxu0 %v789_v7  ;;  %1575 = vmatprep.subr.mxu1 %v791_v8  ;;  %v1044_v8 = vld [vmem:[%s3999_s24 + $0x60] sm:$0x3f] }
 0x156   : > { %1505 = vmatpush1.msra.mxu0 %v788_v9  ;;  %1538 = vmatprep.mubr.f32.mxu0 %v2968_v0  ;;  %v1046_v9 = vld [vmem:[%s3999_s24 + $0x70] sm:$0x3f] }
 0x157   : > { %1576 = vmatpush1.msra.mxu1 %v790_v10  ;;  %1609 = vmatprep.mubr.f32.mxu1 %v2968_v0  ;;  %v1032_v0 = vld [vmem:[%s3999_s24] sm:$0x3f] }
 0x158   : > { %1539 = vmatmul.mubr.f32.vlgmr.msra.gmra.mxu0 %v3783_v4  ;;  %1610 = vmatmul.mubr.f32.vlgmr.msra.gmra.mxu1 %v3783_v4 }
 0x1b2   : > { %v1114_v4 = vpop.f32.mrf.mxu0  ;;  %v1185_v13 = vpop.f32.mrf.mxu1 }
 0x1b3   : > { %v1115_v16 = vadd.f32 %v1114_v4, %v1032_v0  ;;  %v1186_v17 = vadd.f32 %v1185_v13, %v1034_v11  ;;  %v1045_v11 = vld [vmem:[%s3999_s24 + $0x68] sm:$0x3f]  ;;  %v1047_v4 = vld [vmem:[%s3999_s24 + $0x78] sm:$0x3f] }
 0x1b4   : > { %v1116_v18 = vpop.f32.mrf.mxu0  ;;  %v1187_v19 = vpop.f32.mrf.mxu1 }
 0x1b5   : > { %v1117_v20 = vadd.f32 %v1116_v18, %v1033_v14  ;;  %v1188_v21 = vadd.f32 %v1187_v19, %v1035_v15  ;;  %v1622_v22 = vadd.f32 %v4003_v12, %v1115_v16  ;;  %v1624_v23 = vadd.f32 %v4003_v12, %v1186_v17 }
 0x1b7   : > { %v1623_v24 = vadd.f32 %v4003_v12, %v1117_v20  ;;  %v1625_v25 = vadd.f32 %v4003_v12, %v1188_v21  ;;  %v1638_v26 = vmax.f32 %v1622_v22, 0.0  ;;  %v1640_v27 = vmax.f32 %v1624_v23, 0.0 }
 0x1b9   : > { %v1639_v28 = vmax.f32 %v1623_v24, 0.0  ;;  %v1641_v29 = vmax.f32 %v1625_v25, 0.0  ;;  %1654 = vst [vmem:[%s4013_s15] sm:$0x3f] %v1638_v26  ;;  %1656 = vst [vmem:[%s4013_s15 + $0x10] sm:$0x3f] %v1640_v27 }
 0x1bb   : > { %1655 = vst [vmem:[%s4013_s15 + $0x8] sm:$0x3f] %v1639_v28  ;;  %1657 = vst [vmem:[%s4013_s15 + $0x18] sm:$0x3f] %v1641_v29 }
 0x1d4   : > { %v1256_v32 = vpop.f32.mrf.mxu0  ;;  %v1327_v33 = vpop.f32.mrf.mxu1 }
 0x1d5   : > { %v1257_v36 = vadd.f32 %v1256_v32, %v1036_v30  ;;  %v1328_v37 = vadd.f32 %v1327_v33, %v1038_v31 }
 0x1d6   : > { %v1258_v38 = vpop.f32.mrf.mxu0  ;;  %v1329_v39 = vpop.f32.mrf.mxu1 }
 0x1d7   : > { %v1626_v40 = vadd.f32 %v4003_v12, %v1257_v36  ;;  %v1628_v41 = vadd.f32 %v4003_v12, %v1328_v37  ;;  %v1259_v42 = vadd.f32 %v1258_v38, %v1037_v34  ;;  %v1330_v43 = vadd.f32 %v1329_v39, %v1039_v35 }
 0x1d9   : > { %v1642_v44 = vmax.f32 %v1626_v40, 0.0  ;;  %v1644_v45 = vmax.f32 %v1628_v41, 0.0  ;;  %v1627_v46 = vadd.f32 %v4003_v12, %v1259_v42  ;;  %v1629_v47 = vadd.f32 %v4003_v12, %v1330_v43 }
 0x1db   : > { %1658 = vst [vmem:[%s4013_s15 + $0x20] sm:$0x3f] %v1642_v44  ;;  %1660 = vst [vmem:[%s4013_s15 + $0x30] sm:$0x3f] %v1644_v45  ;;  %v1643_v48 = vmax.f32 %v1627_v46, 0.0  ;;  %v1645_v49 = vmax.f32 %v1629_v47, 0.0 }
 0x1dd   : > { %1659 = vst [vmem:[%s4013_s15 + $0x28] sm:$0x3f] %v1643_v48  ;;  %1661 = vst [vmem:[%s4013_s15 + $0x38] sm:$0x3f] %v1645_v49 }
 0x1f6   : > { %v1398_v52 = vpop.f32.mrf.mxu0  ;;  %v1469_v53 = vpop.f32.mrf.mxu1 }
 0x1f7   : > { %v1399_v56 = vadd.f32 %v1398_v52, %v1040_v50  ;;  %v1470_v57 = vadd.f32 %v1469_v53, %v1042_v51 }
 0x1f8   : > { %v1400_v58 = vpop.f32.mrf.mxu0  ;;  %v1471_v59 = vpop.f32.mrf.mxu1 }
 0x1f9   : > { %v1630_v60 = vadd.f32 %v4003_v12, %v1399_v56  ;;  %v1632_v61 = vadd.f32 %v4003_v12, %v1470_v57  ;;  %v1401_v62 = vadd.f32 %v1400_v58, %v1041_v54  ;;  %v1472_v63 = vadd.f32 %v1471_v59, %v1043_v55 }
 0x1fb   : > { %v1646_v1 = vmax.f32 %v1630_v60, 0.0  ;;  %v1648_v2 = vmax.f32 %v1632_v61, 0.0  ;;  %v1631_v3 = vadd.f32 %v4003_v12, %v1401_v62  ;;  %v1633_v5 = vadd.f32 %v4003_v12, %v1472_v63 }
 0x1fd   : > { %1662 = vst [vmem:[%s4013_s15 + $0x40] sm:$0x3f] %v1646_v1  ;;  %1664 = vst [vmem:[%s4013_s15 + $0x50] sm:$0x3f] %v1648_v2  ;;  %v1647_v6 = vmax.f32 %v1631_v3, 0.0  ;;  %v1649_v7 = vmax.f32 %v1633_v5, 0.0 }
 0x1ff   : > { %1663 = vst [vmem:[%s4013_s15 + $0x48] sm:$0x3f] %v1647_v6  ;;  %1665 = vst [vmem:[%s4013_s15 + $0x58] sm:$0x3f] %v1649_v7 }
 0x218   : > { %v1540_v10 = vpop.f32.mrf.mxu0  ;;  %v1611_v0 = vpop.f32.mrf.mxu1 }
 0x219   : > { %v1541_v13 = vadd.f32 %v1540_v10, %v1044_v8  ;;  %v1612_v14 = vadd.f32 %v1611_v0, %v1046_v9 }
 0x21a   : > { %v1542_v15 = vpop.f32.mrf.mxu0  ;;  %v1613_v16 = vpop.f32.mrf.mxu1 }
 0x21b   : > { %v1634_v17 = vadd.f32 %v4003_v12, %v1541_v13  ;;  %v1636_v18 = vadd.f32 %v4003_v12, %v1612_v14  ;;  %v1543_v19 = vadd.f32 %v1542_v15, %v1045_v11  ;;  %v1614_v20 = vadd.f32 %v1613_v16, %v1047_v4 }
 0x21d   : > { %v1650_v21 = vmax.f32 %v1634_v17, 0.0  ;;  %v1652_v22 = vmax.f32 %v1636_v18, 0.0  ;;  %v1635_v23 = vadd.f32 %v4003_v12, %v1543_v19  ;;  %v1637_v24 = vadd.f32 %v4003_v12, %v1614_v20  ;;  %1676 = sbr.rel (!%p3028_p5) target bundleno = 692 (0x2b4), region = 106 }
 0x21f   : > { %1666 = vst [vmem:[%s4013_s15 + $0x60] sm:$0x3f] %v1650_v21  ;;  %1668 = vst [vmem:[%s4013_s15 + $0x70] sm:$0x3f] %v1652_v22  ;;  %v1651_v25 = vmax.f32 %v1635_v23, 0.0  ;;  %v1653_v26 = vmax.f32 %v1637_v24, 0.0 }
 0x221   : > { %1667 = vst [vmem:[%s4013_s15 + $0x68] sm:$0x3f] %v1651_v25  ;;  %1669 = vst [vmem:[%s4013_s15 + $0x78] sm:$0x3f] %v1653_v26 }
 0x222   : > { %s4523_s12 = smov (!%p1679_p2, %s1678_s12), 16 }
 0x223   : > { %s2360_s26 = sshll.u32 %s4523_s12, 7  ;;  %s4064_s7 = sshll.u32 %s4523_s12, 3 }
 0x224   : > { %p2364_p3 = scmp.eq.s32.totalorder %s2360_s26, 0 }
 0x225   : > { %p1689_p4 = scmp.lt.u32.totalorder (!%p2364_p3), %s4064_s7, 8 }
 0x226   : > { %1688 = sbr.rel (%p2364_p3) target bundleno = 692 (0x2b4), region = 110 }
 0x22b   : > { %1692 = sbr.rel (%p1689_p4) target bundleno = 683 (0x2ab), region = 114  ;;  %s4068_s23 = sand.u32 (!%p1689_p4), 7, %s4064_s7  }
 0x22c   : > { %p1709_p5 = scmp.eq.s32.totalorder (!%p1689_p4), %s4068_s23, 0  ;;  %p2365_p6 = scmp.ne.s32.totalorder (!%p1689_p4), %s4068_s23, 0 }
 0x230   : > { %1712 = sbr.rel (%p2365_p6) target bundleno = 619 (0x26b), region = 129  ;;  %s1713_s18 = sshrl.u32 (!%p2365_p6), %s4064_s7, 3 }
 0x231   : > { %s4075_s10 = sshrl.u32 (!%p2365_p6), %s1713_s18, 6 }
 0x232   : > { %p2366_p7 = scmp.le.s32.totalorder (!%p2365_p6), %s4075_s10, 0 }
 0x235   : > { %2243 = sbr.rel (%p2366_p7) target bundleno = 603 (0x25b), region = 280  ;;  %s4499_s5 = smov (!%p2366_p7), %s4062_s25 }
 0x236   : > { %s4500_s8 = smov (!%p2366_p7), %s4013_s15  ;;  %s4084_s21 = smov (!%p2366_p7), 0  }
 0x237   : > { %s4086_s17 = smov (!%p2366_p7), 0  }
 0x23a LB: >> { %v1726_v12 = vld [vmem:[%s2908_s8] sm:$0xff]  ;;  %v1728_v27 = vld [vmem:[%s2908_s8 + $0x8] sm:$0xff]  ;;  %v1730_v28 = vld [vmem:[%s2908_s8 + $0x10] sm:$0xff]  ;;  %s1854_s13 = sadd.s32 1, %s2912_s21  ;;  %s1720_s17 = sadd.s32 1, %s2916_s17   ;;  %s2916_s17 = sphi %s4086_s17, %s1720_s17   ;;  %s2912_s21 = sphi %s4084_s21, %s4503_s21   ;;  %s2908_s8 = sphi %s4500_s8, %s4502_s8   ;;  %s2904_s5 = sphi %s4499_s5, %s4501_s5  }
 0x23b   : >> { %1727 = vst [vmem:[%s2904_s5] sm:$0xff] %v1726_v12  ;;  %1729 = vst [vmem:[%s2904_s5 + $0x8] sm:$0xff] %v1728_v27  ;;  %v1732_v29 = vld [vmem:[%s2908_s8 + $0x18] sm:$0xff]  ;;  %v1734_v30 = vld [vmem:[%s2908_s8 + $0x20] sm:$0xff]  ;;  %p1855_p8 = scmp.ge.s32.totalorder %s1854_s13, %s4075_s10  ;;  %p1719_p9 = scmp.ge.s32.totalorder %s1720_s17, %s4075_s10 }
 0x23c   : >> { %1731 = vst [vmem:[%s2904_s5 + $0x10] sm:$0xff] %v1730_v28  ;;  %v1736_v31 = vld [vmem:[%s2908_s8 + $0x28] sm:$0xff]  ;;  %1733 = vst [vmem:[%s2904_s5 + $0x18] sm:$0xff] %v1732_v29  ;;  %v1738_v32 = vld [vmem:[%s2908_s8 + $0x30] sm:$0xff] }
 0x23d   : >> { %1735 = vst [vmem:[%s2904_s5 + $0x20] sm:$0xff] %v1734_v30  ;;  %1737 = vst [vmem:[%s2904_s5 + $0x28] sm:$0xff] %v1736_v31  ;;  %v1740_v33 = vld [vmem:[%s2908_s8 + $0x38] sm:$0xff]  ;;  %v1742_v34 = vld [vmem:[%s2908_s8 + $0x40] sm:$0xff]  ;;  %s4525_s13 = smov (%p1855_p8, %s1854_s13), 0 }
 0x23e   : >> { %1739 = vst [vmem:[%s2904_s5 + $0x30] sm:$0xff] %v1738_v32  ;;  %1741 = vst [vmem:[%s2904_s5 + $0x38] sm:$0xff] %v1740_v33  ;;  %v1744_v35 = vld [vmem:[%s2908_s8 + $0x48] sm:$0xff]  ;;  %v1746_v36 = vld [vmem:[%s2908_s8 + $0x50] sm:$0xff]  ;;  %s2367_s20 = sshll.u32 %s4525_s13, 9  ;;  %s4503_s21 = smov %s4525_s13 }
 0x23f   : >> { %1743 = vst [vmem:[%s2904_s5 + $0x40] sm:$0xff] %v1742_v34  ;;  %v1748_v37 = vld [vmem:[%s2908_s8 + $0x58] sm:$0xff]  ;;  %1745 = vst [vmem:[%s2904_s5 + $0x48] sm:$0xff] %v1744_v35  ;;  %v1750_v38 = vld [vmem:[%s2908_s8 + $0x60] sm:$0xff]  ;;  %s4142_s27 = scalar_lea.vmem %s4013_s15, %s2367_s20 [#allocation3]   ;;  %s4145_s29 = scalar_lea.vmem %s4062_s25, %s2367_s20  }
 0x240   : >> { %1747 = vst [vmem:[%s2904_s5 + $0x50] sm:$0xff] %v1746_v36  ;;  %1749 = vst [vmem:[%s2904_s5 + $0x58] sm:$0xff] %v1748_v37  ;;  %v1752_v39 = vld [vmem:[%s2908_s8 + $0x68] sm:$0xff]  ;;  %v1754_v40 = vld [vmem:[%s2908_s8 + $0x70] sm:$0xff] }
 0x241   : >> { %1751 = vst [vmem:[%s2904_s5 + $0x60] sm:$0xff] %v1750_v38  ;;  %1753 = vst [vmem:[%s2904_s5 + $0x68] sm:$0xff] %v1752_v39  ;;  %v1756_v41 = vld [vmem:[%s2908_s8 + $0x78] sm:$0xff]  ;;  %v1758_v42 = vld [vmem:[%s2908_s8 + $0x80] sm:$0xff] }
 0x242   : >> { %1755 = vst [vmem:[%s2904_s5 + $0x70] sm:$0xff] %v1754_v40  ;;  %v1760_v43 = vld [vmem:[%s2908_s8 + $0x88] sm:$0xff]  ;;  %1757 = vst [vmem:[%s2904_s5 + $0x78] sm:$0xff] %v1756_v41  ;;  %v1762_v44 = vld [vmem:[%s2908_s8 + $0x90] sm:$0xff] }
 0x243   : >> { %1759 = vst [vmem:[%s2904_s5 + $0x80] sm:$0xff] %v1758_v42  ;;  %1761 = vst [vmem:[%s2904_s5 + $0x88] sm:$0xff] %v1760_v43  ;;  %v1764_v45 = vld [vmem:[%s2908_s8 + $0x98] sm:$0xff]  ;;  %v1766_v46 = vld [vmem:[%s2908_s8 + $0xa0] sm:$0xff] }
 0x244   : >> { %1763 = vst [vmem:[%s2904_s5 + $0x90] sm:$0xff] %v1762_v44  ;;  %1765 = vst [vmem:[%s2904_s5 + $0x98] sm:$0xff] %v1764_v45  ;;  %v1768_v47 = vld [vmem:[%s2908_s8 + $0xa8] sm:$0xff]  ;;  %v1770_v48 = vld [vmem:[%s2908_s8 + $0xb0] sm:$0xff] }
 0x245   : >> { %1767 = vst [vmem:[%s2904_s5 + $0xa0] sm:$0xff] %v1766_v46  ;;  %v1772_v49 = vld [vmem:[%s2908_s8 + $0xb8] sm:$0xff]  ;;  %1769 = vst [vmem:[%s2904_s5 + $0xa8] sm:$0xff] %v1768_v47  ;;  %v1774_v50 = vld [vmem:[%s2908_s8 + $0xc0] sm:$0xff] }
 0x246   : >> { %1771 = vst [vmem:[%s2904_s5 + $0xb0] sm:$0xff] %v1770_v48  ;;  %1773 = vst [vmem:[%s2904_s5 + $0xb8] sm:$0xff] %v1772_v49  ;;  %v1776_v51 = vld [vmem:[%s2908_s8 + $0xc8] sm:$0xff]  ;;  %v1778_v52 = vld [vmem:[%s2908_s8 + $0xd0] sm:$0xff] }
 0x247   : >> { %1775 = vst [vmem:[%s2904_s5 + $0xc0] sm:$0xff] %v1774_v50  ;;  %1777 = vst [vmem:[%s2904_s5 + $0xc8] sm:$0xff] %v1776_v51  ;;  %v1780_v53 = vld [vmem:[%s2908_s8 + $0xd8] sm:$0xff]  ;;  %v1782_v54 = vld [vmem:[%s2908_s8 + $0xe0] sm:$0xff] }
 0x248   : >> { %1779 = vst [vmem:[%s2904_s5 + $0xd0] sm:$0xff] %v1778_v52  ;;  %v1784_v55 = vld [vmem:[%s2908_s8 + $0xe8] sm:$0xff]  ;;  %1781 = vst [vmem:[%s2904_s5 + $0xd8] sm:$0xff] %v1780_v53  ;;  %v1786_v56 = vld [vmem:[%s2908_s8 + $0xf0] sm:$0xff] }
 0x249   : >> { %1783 = vst [vmem:[%s2904_s5 + $0xe0] sm:$0xff] %v1782_v54  ;;  %1785 = vst [vmem:[%s2904_s5 + $0xe8] sm:$0xff] %v1784_v55  ;;  %v1788_v57 = vld [vmem:[%s2908_s8 + $0xf8] sm:$0xff]  ;;  %v1790_v58 = vld [vmem:[%s2908_s8 + $0x100] sm:$0xff] }
 0x24a   : >> { %1787 = vst [vmem:[%s2904_s5 + $0xf0] sm:$0xff] %v1786_v56  ;;  %1789 = vst [vmem:[%s2904_s5 + $0xf8] sm:$0xff] %v1788_v57  ;;  %v1792_v59 = vld [vmem:[%s2908_s8 + $0x108] sm:$0xff]  ;;  %v1794_v60 = vld [vmem:[%s2908_s8 + $0x110] sm:$0xff] }
 0x24b   : >> { %1791 = vst [vmem:[%s2904_s5 + $0x100] sm:$0xff] %v1790_v58  ;;  %v1796_v61 = vld [vmem:[%s2908_s8 + $0x118] sm:$0xff]  ;;  %1793 = vst [vmem:[%s2904_s5 + $0x108] sm:$0xff] %v1792_v59  ;;  %v1798_v62 = vld [vmem:[%s2908_s8 + $0x120] sm:$0xff] }
 0x24c   : >> { %1795 = vst [vmem:[%s2904_s5 + $0x110] sm:$0xff] %v1794_v60  ;;  %1797 = vst [vmem:[%s2904_s5 + $0x118] sm:$0xff] %v1796_v61  ;;  %v1800_v63 = vld [vmem:[%s2908_s8 + $0x128] sm:$0xff]  ;;  %v1802_v1 = vld [vmem:[%s2908_s8 + $0x130] sm:$0xff] }
 0x24d   : >> { %1799 = vst [vmem:[%s2904_s5 + $0x120] sm:$0xff] %v1798_v62  ;;  %1801 = vst [vmem:[%s2904_s5 + $0x128] sm:$0xff] %v1800_v63  ;;  %v1804_v2 = vld [vmem:[%s2908_s8 + $0x138] sm:$0xff]  ;;  %v1806_v3 = vld [vmem:[%s2908_s8 + $0x140] sm:$0xff] }
 0x24e   : >> { %1803 = vst [vmem:[%s2904_s5 + $0x130] sm:$0xff] %v1802_v1  ;;  %v1808_v5 = vld [vmem:[%s2908_s8 + $0x148] sm:$0xff]  ;;  %1805 = vst [vmem:[%s2904_s5 + $0x138] sm:$0xff] %v1804_v2  ;;  %v1810_v6 = vld [vmem:[%s2908_s8 + $0x150] sm:$0xff] }
 0x24f   : >> { %1807 = vst [vmem:[%s2904_s5 + $0x140] sm:$0xff] %v1806_v3  ;;  %1809 = vst [vmem:[%s2904_s5 + $0x148] sm:$0xff] %v1808_v5  ;;  %v1812_v7 = vld [vmem:[%s2908_s8 + $0x158] sm:$0xff]  ;;  %v1814_v8 = vld [vmem:[%s2908_s8 + $0x160] sm:$0xff] }
 0x250   : >> { %1811 = vst [vmem:[%s2904_s5 + $0x150] sm:$0xff] %v1810_v6  ;;  %1813 = vst [vmem:[%s2904_s5 + $0x158] sm:$0xff] %v1812_v7  ;;  %v1816_v9 = vld [vmem:[%s2908_s8 + $0x168] sm:$0xff]  ;;  %v1818_v10 = vld [vmem:[%s2908_s8 + $0x170] sm:$0xff] }
 0x251   : >> { %1815 = vst [vmem:[%s2904_s5 + $0x160] sm:$0xff] %v1814_v8  ;;  %v1820_v0 = vld [vmem:[%s2908_s8 + $0x178] sm:$0xff]  ;;  %1817 = vst [vmem:[%s2904_s5 + $0x168] sm:$0xff] %v1816_v9  ;;  %v1822_v11 = vld [vmem:[%s2908_s8 + $0x180] sm:$0xff] }
 0x252   : >> { %1819 = vst [vmem:[%s2904_s5 + $0x170] sm:$0xff] %v1818_v10  ;;  %1821 = vst [vmem:[%s2904_s5 + $0x178] sm:$0xff] %v1820_v0  ;;  %v1824_v4 = vld [vmem:[%s2908_s8 + $0x188] sm:$0xff]  ;;  %v1826_v13 = vld [vmem:[%s2908_s8 + $0x190] sm:$0xff] }
 0x253   : >> { %1823 = vst [vmem:[%s2904_s5 + $0x180] sm:$0xff] %v1822_v11  ;;  %1825 = vst [vmem:[%s2904_s5 + $0x188] sm:$0xff] %v1824_v4  ;;  %v1828_v14 = vld [vmem:[%s2908_s8 + $0x198] sm:$0xff]  ;;  %v1830_v15 = vld [vmem:[%s2908_s8 + $0x1a0] sm:$0xff] }
 0x254   : >> { %1827 = vst [vmem:[%s2904_s5 + $0x190] sm:$0xff] %v1826_v13  ;;  %v1832_v16 = vld [vmem:[%s2908_s8 + $0x1a8] sm:$0xff]  ;;  %1829 = vst [vmem:[%s2904_s5 + $0x198] sm:$0xff] %v1828_v14  ;;  %v1834_v17 = vld [vmem:[%s2908_s8 + $0x1b0] sm:$0xff] }
 0x255   : >> { %1831 = vst [vmem:[%s2904_s5 + $0x1a0] sm:$0xff] %v1830_v15  ;;  %1833 = vst [vmem:[%s2904_s5 + $0x1a8] sm:$0xff] %v1832_v16  ;;  %v1836_v18 = vld [vmem:[%s2908_s8 + $0x1b8] sm:$0xff]  ;;  %v1838_v19 = vld [vmem:[%s2908_s8 + $0x1c0] sm:$0xff] }
 0x256   : >> { %1835 = vst [vmem:[%s2904_s5 + $0x1b0] sm:$0xff] %v1834_v17  ;;  %1837 = vst [vmem:[%s2904_s5 + $0x1b8] sm:$0xff] %v1836_v18  ;;  %v1840_v20 = vld [vmem:[%s2908_s8 + $0x1c8] sm:$0xff]  ;;  %v1842_v21 = vld [vmem:[%s2908_s8 + $0x1d0] sm:$0xff]  ;;  %1722 = sbr.rel (!%p1719_p9) target bundleno = 570 (0x23a), region = 286 }
 0x257   : >> { %1839 = vst [vmem:[%s2904_s5 + $0x1c0] sm:$0xff] %v1838_v19  ;;  %v1844_v22 = vld [vmem:[%s2908_s8 + $0x1d8] sm:$0xff]  ;;  %1841 = vst [vmem:[%s2904_s5 + $0x1c8] sm:$0xff] %v1840_v20  ;;  %v1846_v23 = vld [vmem:[%s2908_s8 + $0x1e0] sm:$0xff] }
 0x258   : >> { %1843 = vst [vmem:[%s2904_s5 + $0x1d0] sm:$0xff] %v1842_v21  ;;  %1845 = vst [vmem:[%s2904_s5 + $0x1d8] sm:$0xff] %v1844_v22  ;;  %v1848_v24 = vld [vmem:[%s2908_s8 + $0x1e8] sm:$0xff]  ;;  %v1850_v25 = vld [vmem:[%s2908_s8 + $0x1f0] sm:$0xff] }
 0x259   : >> { %1847 = vst [vmem:[%s2904_s5 + $0x1e0] sm:$0xff] %v1846_v23  ;;  %1849 = vst [vmem:[%s2904_s5 + $0x1e8] sm:$0xff] %v1848_v24  ;;  %v1852_v26 = vld [vmem:[%s2908_s8 + $0x1f8] sm:$0xff]  ;;  %s4502_s8 = smov %s4142_s27 }
 0x25a   : >> { %1851 = vst [vmem:[%s2904_s5 + $0x1f0] sm:$0xff] %v1850_v25  ;;  %1853 = vst [vmem:[%s2904_s5 + $0x1f8] sm:$0xff] %v1852_v26  ;;  %s4501_s5 = smov %s4145_s29 }
 0x25b PF: > { %s4251_s30 = sand.u32 63, %s1713_s18   ;;  %s2395_s6 = sshll.u32 %s4075_s10, 13 }
 0x25c   : > { %s1865_s24 = sshra.s32 %s2395_s6, 4  ;;  %p2372_p10 = scmp.le.s32.totalorder %s4251_s30, 0 }
 0x25d   : > { %s1866_s28 = scalar_lea.vmem %s4013_s15, %s1865_s24 [#allocation3]   ;;  %s1869_s12 = scalar_lea.vmem %s4062_s25, %s1865_s24  }
 0x25e   : > { %2257 = sbr.rel (%p2372_p10) target bundleno = 619 (0x26b), region = 291  ;;  %s2918_s14 = smov (!%p2372_p10), %s1869_s12  }
 0x25f   : > { %s2922_s11 = smov (!%p2372_p10), %s1866_s28   ;;  %s2926_s9 = smov (!%p2372_p10), 0  }
 0x260   : > { %s2930_s26 = smov (!%p2372_p10), 0  }
 0x263 LB: >> { %v1881_v12 = vld [vmem:[%s2924_s11] sm:$0xff]  ;;  %s1883_s18 = sadd.s32 1, %s2928_s9  ;;  %s1875_s26 = sadd.s32 1, %s2932_s26   ;;  %s2932_s26 = sphi %s2930_s26, %s1875_s26   ;;  %s2928_s9 = sphi %s2926_s9, %s2927_s9   ;;  %s2924_s11 = sphi %s2922_s11, %s1888_s11   ;;  %s2920_s14 = sphi %s2918_s14, %s1889_s14  }
 0x264   : >> { %1882 = vst [vmem:[%s2920_s14] sm:$0xff] %v1881_v12  ;;  %p1884_p11 = scmp.ge.s32.totalorder %s1883_s18, %s4251_s30  ;;  %p1874_p12 = scmp.ge.s32.totalorder %s1875_s26, %s4251_s30 }
 0x266   : >> { %s4527_s18 = smov (%p1884_p11, %s1883_s18), 0  ;;  %1877 = sbr.rel (!%p1874_p12) target bundleno = 611 (0x263), region = 297 }
 0x267   : >> { %s2373_s10 = sshll.u32 %s4527_s18, 3  ;;  %s2927_s9 = smov %s4527_s18  }
 0x268   : >> { %s1888_s11 = scalar_lea.vmem %s1866_s28, %s2373_s10 [#allocation3]   ;;  %s1889_s14 = scalar_lea.vmem %s1869_s12, %s2373_s10  }
 0x26b PF: > { %1892 = sbr.rel (%p1709_p5) target bundleno = 683 (0x2ab), region = 147  ;;  %s4263_s5 = ssub.s32 (!%p1709_p5), %s4064_s7, %s4068_s23 }
 0x26c   : > { %s1898_s8 = sshrl.u32 (!%p1709_p5), %s4064_s7, 3  ;;  %s1895_s21 = scalar_lea.vmem (!%p1709_p5), %s4013_s15, %s4263_s5 [#allocation3] }
 0x26d   : > { %s1897_s17 = scalar_lea.vmem (!%p1709_p5), %s4062_s25, %s4263_s5  ;;  %s4272_s13 = sshrl.u32 (!%p1709_p5), %s1898_s8, 6 }
 0x26e   : > { %p2375_p13 = scmp.le.s32.totalorder (!%p1709_p5), %s4272_s13, 0 }
 0x270   : > { %2271 = sbr.rel (%p2375_p13) target bundleno = 662 (0x296), region = 302  ;;  %s4504_s20 = smov (!%p2375_p13), %s4062_s25 }
 0x271   : > { %s4505_s27 = smov (!%p2375_p13), %s4013_s15  ;;  %s4281_s29 = smov (!%p2375_p13), 0  }
 0x272   : > { %s4283_s30 = smov (!%p2375_p13), 0  }
 0x275 LB: >> { %v1911_v27 = vld [vmem:[%s2940_s27] sm:$0xff]  ;;  %v1913_v28 = vld [vmem:[%s2940_s27 + $0x8] sm:$0xff]  ;;  %v1915_v29 = vld [vmem:[%s2940_s27 + $0x10] sm:$0xff]  ;;  %s2039_s6 = sadd.s32 1, %s2944_s29  ;;  %s1905_s30 = sadd.s32 1, %s2948_s30   ;;  %s2948_s30 = sphi %s4283_s30, %s1905_s30   ;;  %s2944_s29 = sphi %s4281_s29, %s4508_s29   ;;  %s2940_s27 = sphi %s4505_s27, %s4507_s27   ;;  %s2936_s20 = sphi %s4504_s20, %s4506_s20  }
 0x276   : >> { %1912 = vst [vmem:[%s2936_s20] sm:$0xff] %v1911_v27  ;;  %1914 = vst [vmem:[%s2936_s20 + $0x8] sm:$0xff] %v1913_v28  ;;  %v1917_v30 = vld [vmem:[%s2940_s27 + $0x18] sm:$0xff]  ;;  %v1919_v31 = vld [vmem:[%s2940_s27 + $0x20] sm:$0xff]  ;;  %p2040_p0 = scmp.ge.s32.totalorder %s2039_s6, %s4272_s13  ;;  %p1904_p1 = scmp.ge.s32.totalorder %s1905_s30, %s4272_s13 }
 0x277   : >> { %1916 = vst [vmem:[%s2936_s20 + $0x10] sm:$0xff] %v1915_v29  ;;  %v1921_v32 = vld [vmem:[%s2940_s27 + $0x28] sm:$0xff]  ;;  %1918 = vst [vmem:[%s2936_s20 + $0x18] sm:$0xff] %v1917_v30  ;;  %v1923_v33 = vld [vmem:[%s2940_s27 + $0x30] sm:$0xff] }
 0x278   : >> { %1920 = vst [vmem:[%s2936_s20 + $0x20] sm:$0xff] %v1919_v31  ;;  %1922 = vst [vmem:[%s2936_s20 + $0x28] sm:$0xff] %v1921_v32  ;;  %v1925_v34 = vld [vmem:[%s2940_s27 + $0x38] sm:$0xff]  ;;  %v1927_v35 = vld [vmem:[%s2940_s27 + $0x40] sm:$0xff]  ;;  %s4529_s6 = smov (%p2040_p0, %s2039_s6), 0 }
 0x279   : >> { %1924 = vst [vmem:[%s2936_s20 + $0x30] sm:$0xff] %v1923_v33  ;;  %1926 = vst [vmem:[%s2936_s20 + $0x38] sm:$0xff] %v1925_v34  ;;  %v1929_v36 = vld [vmem:[%s2940_s27 + $0x48] sm:$0xff]  ;;  %v1931_v37 = vld [vmem:[%s2940_s27 + $0x50] sm:$0xff]  ;;  %s2376_s24 = sshll.u32 %s4529_s6, 9  ;;  %s4508_s29 = smov %s4529_s6 }
 0x27a   : >> { %1928 = vst [vmem:[%s2936_s20 + $0x40] sm:$0xff] %v1927_v35  ;;  %v1933_v38 = vld [vmem:[%s2940_s27 + $0x58] sm:$0xff]  ;;  %1930 = vst [vmem:[%s2936_s20 + $0x48] sm:$0xff] %v1929_v36  ;;  %v1935_v39 = vld [vmem:[%s2940_s27 + $0x60] sm:$0xff]  ;;  %s4339_s28 = scalar_lea.vmem %s4013_s15, %s2376_s24 [#allocation3]   ;;  %s4342_s12 = scalar_lea.vmem %s4062_s25, %s2376_s24  }
 0x27b   : >> { %1932 = vst [vmem:[%s2936_s20 + $0x50] sm:$0xff] %v1931_v37  ;;  %1934 = vst [vmem:[%s2936_s20 + $0x58] sm:$0xff] %v1933_v38  ;;  %v1937_v40 = vld [vmem:[%s2940_s27 + $0x68] sm:$0xff]  ;;  %v1939_v41 = vld [vmem:[%s2940_s27 + $0x70] sm:$0xff] }
 0x27c   : >> { %1936 = vst [vmem:[%s2936_s20 + $0x60] sm:$0xff] %v1935_v39  ;;  %1938 = vst [vmem:[%s2936_s20 + $0x68] sm:$0xff] %v1937_v40  ;;  %v1941_v42 = vld [vmem:[%s2940_s27 + $0x78] sm:$0xff]  ;;  %v1943_v43 = vld [vmem:[%s2940_s27 + $0x80] sm:$0xff] }
 0x27d   : >> { %1940 = vst [vmem:[%s2936_s20 + $0x70] sm:$0xff] %v1939_v41  ;;  %v1945_v44 = vld [vmem:[%s2940_s27 + $0x88] sm:$0xff]  ;;  %1942 = vst [vmem:[%s2936_s20 + $0x78] sm:$0xff] %v1941_v42  ;;  %v1947_v45 = vld [vmem:[%s2940_s27 + $0x90] sm:$0xff] }
 0x27e   : >> { %1944 = vst [vmem:[%s2936_s20 + $0x80] sm:$0xff] %v1943_v43  ;;  %1946 = vst [vmem:[%s2936_s20 + $0x88] sm:$0xff] %v1945_v44  ;;  %v1949_v46 = vld [vmem:[%s2940_s27 + $0x98] sm:$0xff]  ;;  %v1951_v47 = vld [vmem:[%s2940_s27 + $0xa0] sm:$0xff] }
 0x27f   : >> { %1948 = vst [vmem:[%s2936_s20 + $0x90] sm:$0xff] %v1947_v45  ;;  %1950 = vst [vmem:[%s2936_s20 + $0x98] sm:$0xff] %v1949_v46  ;;  %v1953_v48 = vld [vmem:[%s2940_s27 + $0xa8] sm:$0xff]  ;;  %v1955_v49 = vld [vmem:[%s2940_s27 + $0xb0] sm:$0xff] }
 0x280   : >> { %1952 = vst [vmem:[%s2936_s20 + $0xa0] sm:$0xff] %v1951_v47  ;;  %v1957_v50 = vld [vmem:[%s2940_s27 + $0xb8] sm:$0xff]  ;;  %1954 = vst [vmem:[%s2936_s20 + $0xa8] sm:$0xff] %v1953_v48  ;;  %v1959_v51 = vld [vmem:[%s2940_s27 + $0xc0] sm:$0xff] }
 0x281   : >> { %1956 = vst [vmem:[%s2936_s20 + $0xb0] sm:$0xff] %v1955_v49  ;;  %1958 = vst [vmem:[%s2936_s20 + $0xb8] sm:$0xff] %v1957_v50  ;;  %v1961_v52 = vld [vmem:[%s2940_s27 + $0xc8] sm:$0xff]  ;;  %v1963_v53 = vld [vmem:[%s2940_s27 + $0xd0] sm:$0xff] }
 0x282   : >> { %1960 = vst [vmem:[%s2936_s20 + $0xc0] sm:$0xff] %v1959_v51  ;;  %1962 = vst [vmem:[%s2936_s20 + $0xc8] sm:$0xff] %v1961_v52  ;;  %v1965_v54 = vld [vmem:[%s2940_s27 + $0xd8] sm:$0xff]  ;;  %v1967_v55 = vld [vmem:[%s2940_s27 + $0xe0] sm:$0xff] }
 0x283   : >> { %1964 = vst [vmem:[%s2936_s20 + $0xd0] sm:$0xff] %v1963_v53  ;;  %v1969_v56 = vld [vmem:[%s2940_s27 + $0xe8] sm:$0xff]  ;;  %1966 = vst [vmem:[%s2936_s20 + $0xd8] sm:$0xff] %v1965_v54  ;;  %v1971_v57 = vld [vmem:[%s2940_s27 + $0xf0] sm:$0xff] }
 0x284   : >> { %1968 = vst [vmem:[%s2936_s20 + $0xe0] sm:$0xff] %v1967_v55  ;;  %1970 = vst [vmem:[%s2936_s20 + $0xe8] sm:$0xff] %v1969_v56  ;;  %v1973_v58 = vld [vmem:[%s2940_s27 + $0xf8] sm:$0xff]  ;;  %v1975_v59 = vld [vmem:[%s2940_s27 + $0x100] sm:$0xff] }
 0x285   : >> { %1972 = vst [vmem:[%s2936_s20 + $0xf0] sm:$0xff] %v1971_v57  ;;  %1974 = vst [vmem:[%s2936_s20 + $0xf8] sm:$0xff] %v1973_v58  ;;  %v1977_v60 = vld [vmem:[%s2940_s27 + $0x108] sm:$0xff]  ;;  %v1979_v61 = vld [vmem:[%s2940_s27 + $0x110] sm:$0xff] }
 0x286   : >> { %1976 = vst [vmem:[%s2936_s20 + $0x100] sm:$0xff] %v1975_v59  ;;  %v1981_v62 = vld [vmem:[%s2940_s27 + $0x118] sm:$0xff]  ;;  %1978 = vst [vmem:[%s2936_s20 + $0x108] sm:$0xff] %v1977_v60  ;;  %v1983_v63 = vld [vmem:[%s2940_s27 + $0x120] sm:$0xff] }
 0x287   : >> { %1980 = vst [vmem:[%s2936_s20 + $0x110] sm:$0xff] %v1979_v61  ;;  %1982 = vst [vmem:[%s2936_s20 + $0x118] sm:$0xff] %v1981_v62  ;;  %v1985_v1 = vld [vmem:[%s2940_s27 + $0x128] sm:$0xff]  ;;  %v1987_v2 = vld [vmem:[%s2940_s27 + $0x130] sm:$0xff] }
 0x288   : >> { %1984 = vst [vmem:[%s2936_s20 + $0x120] sm:$0xff] %v1983_v63  ;;  %1986 = vst [vmem:[%s2936_s20 + $0x128] sm:$0xff] %v1985_v1  ;;  %v1989_v3 = vld [vmem:[%s2940_s27 + $0x138] sm:$0xff]  ;;  %v1991_v5 = vld [vmem:[%s2940_s27 + $0x140] sm:$0xff] }
 0x289   : >> { %1988 = vst [vmem:[%s2936_s20 + $0x130] sm:$0xff] %v1987_v2  ;;  %v1993_v6 = vld [vmem:[%s2940_s27 + $0x148] sm:$0xff]  ;;  %1990 = vst [vmem:[%s2936_s20 + $0x138] sm:$0xff] %v1989_v3  ;;  %v1995_v7 = vld [vmem:[%s2940_s27 + $0x150] sm:$0xff] }
 0x28a   : >> { %1992 = vst [vmem:[%s2936_s20 + $0x140] sm:$0xff] %v1991_v5  ;;  %1994 = vst [vmem:[%s2936_s20 + $0x148] sm:$0xff] %v1993_v6  ;;  %v1997_v8 = vld [vmem:[%s2940_s27 + $0x158] sm:$0xff]  ;;  %v1999_v9 = vld [vmem:[%s2940_s27 + $0x160] sm:$0xff] }
 0x28b   : >> { %1996 = vst [vmem:[%s2936_s20 + $0x150] sm:$0xff] %v1995_v7  ;;  %1998 = vst [vmem:[%s2936_s20 + $0x158] sm:$0xff] %v1997_v8  ;;  %v2001_v10 = vld [vmem:[%s2940_s27 + $0x168] sm:$0xff]  ;;  %v2003_v0 = vld [vmem:[%s2940_s27 + $0x170] sm:$0xff] }
 0x28c   : >> { %2000 = vst [vmem:[%s2936_s20 + $0x160] sm:$0xff] %v1999_v9  ;;  %v2005_v11 = vld [vmem:[%s2940_s27 + $0x178] sm:$0xff]  ;;  %2002 = vst [vmem:[%s2936_s20 + $0x168] sm:$0xff] %v2001_v10  ;;  %v2007_v4 = vld [vmem:[%s2940_s27 + $0x180] sm:$0xff] }
 0x28d   : >> { %2004 = vst [vmem:[%s2936_s20 + $0x170] sm:$0xff] %v2003_v0  ;;  %2006 = vst [vmem:[%s2936_s20 + $0x178] sm:$0xff] %v2005_v11  ;;  %v2009_v13 = vld [vmem:[%s2940_s27 + $0x188] sm:$0xff]  ;;  %v2011_v14 = vld [vmem:[%s2940_s27 + $0x190] sm:$0xff] }
 0x28e   : >> { %2008 = vst [vmem:[%s2936_s20 + $0x180] sm:$0xff] %v2007_v4  ;;  %2010 = vst [vmem:[%s2936_s20 + $0x188] sm:$0xff] %v2009_v13  ;;  %v2013_v15 = vld [vmem:[%s2940_s27 + $0x198] sm:$0xff]  ;;  %v2015_v16 = vld [vmem:[%s2940_s27 + $0x1a0] sm:$0xff] }
 0x28f   : >> { %2012 = vst [vmem:[%s2936_s20 + $0x190] sm:$0xff] %v2011_v14  ;;  %v2017_v17 = vld [vmem:[%s2940_s27 + $0x1a8] sm:$0xff]  ;;  %2014 = vst [vmem:[%s2936_s20 + $0x198] sm:$0xff] %v2013_v15  ;;  %v2019_v18 = vld [vmem:[%s2940_s27 + $0x1b0] sm:$0xff] }
 0x290   : >> { %2016 = vst [vmem:[%s2936_s20 + $0x1a0] sm:$0xff] %v2015_v16  ;;  %2018 = vst [vmem:[%s2936_s20 + $0x1a8] sm:$0xff] %v2017_v17  ;;  %v2021_v19 = vld [vmem:[%s2940_s27 + $0x1b8] sm:$0xff]  ;;  %v2023_v20 = vld [vmem:[%s2940_s27 + $0x1c0] sm:$0xff] }
 0x291   : >> { %2020 = vst [vmem:[%s2936_s20 + $0x1b0] sm:$0xff] %v2019_v18  ;;  %2022 = vst [vmem:[%s2936_s20 + $0x1b8] sm:$0xff] %v2021_v19  ;;  %v2025_v21 = vld [vmem:[%s2940_s27 + $0x1c8] sm:$0xff]  ;;  %v2027_v22 = vld [vmem:[%s2940_s27 + $0x1d0] sm:$0xff]  ;;  %1907 = sbr.rel (!%p1904_p1) target bundleno = 629 (0x275), region = 308 }
 0x292   : >> { %2024 = vst [vmem:[%s2936_s20 + $0x1c0] sm:$0xff] %v2023_v20  ;;  %v2029_v23 = vld [vmem:[%s2940_s27 + $0x1d8] sm:$0xff]  ;;  %2026 = vst [vmem:[%s2936_s20 + $0x1c8] sm:$0xff] %v2025_v21  ;;  %v2031_v24 = vld [vmem:[%s2940_s27 + $0x1e0] sm:$0xff] }
 0x293   : >> { %2028 = vst [vmem:[%s2936_s20 + $0x1d0] sm:$0xff] %v2027_v22  ;;  %2030 = vst [vmem:[%s2936_s20 + $0x1d8] sm:$0xff] %v2029_v23  ;;  %v2033_v25 = vld [vmem:[%s2940_s27 + $0x1e8] sm:$0xff]  ;;  %v2035_v26 = vld [vmem:[%s2940_s27 + $0x1f0] sm:$0xff] }
 0x294   : >> { %2032 = vst [vmem:[%s2936_s20 + $0x1e0] sm:$0xff] %v2031_v24  ;;  %2034 = vst [vmem:[%s2936_s20 + $0x1e8] sm:$0xff] %v2033_v25  ;;  %v2037_v12 = vld [vmem:[%s2940_s27 + $0x1f8] sm:$0xff]  ;;  %s4507_s27 = smov %s4339_s28 }
 0x295   : >> { %2036 = vst [vmem:[%s2936_s20 + $0x1f0] sm:$0xff] %v2035_v26  ;;  %2038 = vst [vmem:[%s2936_s20 + $0x1f8] sm:$0xff] %v2037_v12  ;;  %s4506_s20 = smov %s4342_s12 }
 0x296 PF: > { %s4448_s14 = sand.u32 63, %s1898_s8   ;;  %s2397_s11 = sshll.u32 %s4272_s13, 13 }
 0x297   : > { %s2050_s9 = sshra.s32 %s2397_s11, 4  ;;  %p2381_p2 = scmp.le.s32.totalorder %s4448_s14, 0 }
 0x298   : > { %s2051_s26 = scalar_lea.vmem %s4013_s15, %s2050_s9 [#allocation3]   ;;  %s2054_s18 = scalar_lea.vmem %s4062_s25, %s2050_s9  }
 0x299   : > { %2285 = sbr.rel (%p2381_p2) target bundleno = 678 (0x2a6), region = 313  ;;  %s2950_s10 = smov (!%p2381_p2), %s2054_s18  }
 0x29a   : > { %s2954_s6 = smov (!%p2381_p2), %s2051_s26   ;;  %s2958_s24 = smov (!%p2381_p2), 0  }
 0x29b   : > { %s2962_s30 = smov (!%p2381_p2), 0  }
 0x29e LB: >> { %v2066_v27 = vld [vmem:[%s2956_s6] sm:$0xff]  ;;  %s2068_s8 = sadd.s32 1, %s2960_s24  ;;  %s2060_s30 = sadd.s32 1, %s2964_s30   ;;  %s2964_s30 = sphi %s2962_s30, %s2060_s30   ;;  %s2960_s24 = sphi %s2958_s24, %s2959_s24   ;;  %s2956_s6 = sphi %s2954_s6, %s2073_s6   ;;  %s2952_s10 = sphi %s2950_s10, %s2074_s10  }
 0x29f   : >> { %2067 = vst [vmem:[%s2952_s10] sm:$0xff] %v2066_v27  ;;  %p2069_p3 = scmp.ge.s32.totalorder %s2068_s8, %s4448_s14  ;;  %p2059_p4 = scmp.ge.s32.totalorder %s2060_s30, %s4448_s14 }
 0x2a1   : >> { %s4531_s8 = smov (%p2069_p3, %s2068_s8), 0  ;;  %2062 = sbr.rel (!%p2059_p4) target bundleno = 670 (0x29e), region = 319 }
 0x2a2   : >> { %s2382_s13 = sshll.u32 %s4531_s8, 3  ;;  %s2959_s24 = smov %s4531_s8  }
 0x2a3   : >> { %s2073_s6 = scalar_lea.vmem %s2051_s26, %s2382_s13 [#allocation3]   ;;  %s2074_s10 = scalar_lea.vmem %s2054_s18, %s2382_s13  }
 0x2a6 PF: > { %s2970_s20 = smov 1  }
 0x2a7   : > { %s2075_s27 = sshll.u32 %s2970_s20, %s4068_s23 }
 0x2a8   : > { %s2384_s29 = sadd.s32 4294967295, %s2075_s27 }
 0x2a9   : > { %v2085_v28 = vld [vmem:[%s1895_s21] sm:%s2384_s29] }
 0x2aa   : > { %2086 = vst [vmem:[%s1897_s17] sm:%s2384_s29] %v2085_v28 }
 0x2ab PF: > { %p2385_p5 = scmp.ge.u32.totalorder %s4064_s7, 8 }
 0x2ac   : > { %s2971_s28 = smov (!%p2385_p5), 1  }
 0x2ad   : > { %1695 = sbr.rel (%p2385_p5) target bundleno = 692 (0x2b4), region = 118  ;;  %s1696_s12 = sshll.u32 (!%p2385_p5), %s2971_s28, %s4064_s7 }
 0x2ae   : > { %s2386_s14 = sadd.s32 (!%p2385_p5), 4294967295, %s1696_s12 }
 0x2b2   : > { %v1706_v29 = vld [vmem:[%s4013_s15] sm:%s2386_s14] }
 0x2b3   : > { %1707 = vst [vmem:[%s4062_s25] sm:%s2386_s14] %v1706_v29 }
 0x2b4 PF: > { %p11_p6 = scmp.ge.s32.totalorder %s3016_s19, 9   ;;  %s4509_s15 = smov %s2832_s16 }
 0x2b5   : > { %s4510_s16 = smov %s3026_s22  ;;  %s4511_s17 = smov %s3016_s19 }
 0x2b6   :  { %13 = sbr.rel (!%p11_p6) target bundleno = 2 (0x2), region = 330 }

// kernel: pinno_forward.5
= control target key start
LH: loop header
LB: loop body
LE: loop exit
PB: predicated region body
PF: predicated region fallthrough
CT: control target
= control target key end

     0   :  { %vm354_vm0 = vcmask 719872   ;;  %vm858_vm1 = vcmask 408576   ;;  %vm871_vm2 = vcmask 404480   ;;  %s2046_s2 = inlined_call_operand.vmem [shape: f32[216,1458], index: 2, kind: input, shape index: {}]   ;;  %s2047_s0 = inlined_call_operand.vmem [shape: f32[12,216], index: 0, kind: input, shape index: {}]   ;;  %s2048_s1 = inlined_call_operand.vmem [shape: f32[12,1], index: 1, kind: input, shape index: {}]   ;;  %s2049_s3 = inlined_call_operand.vmem [shape: f32[12,1458], index: 3, kind: output, shape index: {}]  }
   0x1   :  { %v199_v0 = vld [vmem:[%s2046_s2 + $0x5a8] sm:$0xff]  ;;  %v201_v1 = vld [vmem:[%s2046_s2 + $0x5b8] sm:$0xff]  ;;  %v198_v2 = vld [vmem:[%s2046_s2 + $0x5a0] sm:$0xff] }
   0x2   :  { %361 = vmatprep.subr.mxu0 %v199_v0  ;;  %438 = vmatprep.subr.mxu1 %v201_v1  ;;  %v200_v3 = vld [vmem:[%s2046_s2 + $0x5b0] sm:$0xff]  ;;  %v187_v4 = vld [vmem:[%s2046_s2 + $0x548] sm:$0xff]  ;;  %v189_v5 = vld [vmem:[%s2046_s2 + $0x558] sm:$0xff] }
   0x3   :  { %362 = vmatpush1.msra.mxu0 %v198_v2  ;;  %439 = vmatpush1.msra.mxu1 %v200_v3  ;;  %v186_v6 = vld [vmem:[%s2046_s2 + $0x540] sm:$0xff]  ;;  %v188_v7 = vld [vmem:[%s2046_s2 + $0x550] sm:$0xff]  ;;  %v175_v8 = vld [vmem:[%s2046_s2 + $0x4e8] sm:$0xff] }
   0x4   :  { %363 = vmatprep.subr.mxu0 %v187_v4  ;;  %440 = vmatprep.subr.mxu1 %v189_v5  ;;  %v177_v9 = vld [vmem:[%s2046_s2 + $0x4f8] sm:$0xff]  ;;  %v174_v10 = vld [vmem:[%s2046_s2 + $0x4e0] sm:$0xff]  ;;  %v176_v11 = vld [vmem:[%s2046_s2 + $0x4f0] sm:$0xff] }
   0x5   :  { %364 = vmatpush1.msra.mxu0 %v186_v6  ;;  %441 = vmatpush1.msra.mxu1 %v188_v7  ;;  %v163_v12 = vld [vmem:[%s2046_s2 + $0x488] sm:$0xff]  ;;  %v165_v13 = vld [vmem:[%s2046_s2 + $0x498] sm:$0xff]  ;;  %v162_v14 = vld [vmem:[%s2046_s2 + $0x480] sm:$0xff] }
   0x6   :  { %365 = vmatprep.subr.mxu0 %v175_v8  ;;  %442 = vmatprep.subr.mxu1 %v177_v9  ;;  %v164_v15 = vld [vmem:[%s2046_s2 + $0x490] sm:$0xff]  ;;  %v151_v16 = vld [vmem:[%s2046_s2 + $0x428] sm:$0xff]  ;;  %v153_v17 = vld [vmem:[%s2046_s2 + $0x438] sm:$0xff] }
   0x7   :  { %366 = vmatpush1.msra.mxu0 %v174_v10  ;;  %443 = vmatpush1.msra.mxu1 %v176_v11  ;;  %v150_v18 = vld [vmem:[%s2046_s2 + $0x420] sm:$0xff]  ;;  %v152_v19 = vld [vmem:[%s2046_s2 + $0x430] sm:$0xff]  ;;  %v139_v20 = vld [vmem:[%s2046_s2 + $0x3c8] sm:$0xff] }
   0x8   :  { %367 = vmatprep.subr.mxu0 %v163_v12  ;;  %444 = vmatprep.subr.mxu1 %v165_v13  ;;  %v141_v21 = vld [vmem:[%s2046_s2 + $0x3d8] sm:$0xff]  ;;  %v138_v22 = vld [vmem:[%s2046_s2 + $0x3c0] sm:$0xff]  ;;  %v140_v23 = vld [vmem:[%s2046_s2 + $0x3d0] sm:$0xff] }
   0x9   :  { %368 = vmatpush1.msra.mxu0 %v162_v14  ;;  %445 = vmatpush1.msra.mxu1 %v164_v15  ;;  %v127_v24 = vld [vmem:[%s2046_s2 + $0x368] sm:$0xff]  ;;  %v129_v25 = vld [vmem:[%s2046_s2 + $0x378] sm:$0xff]  ;;  %v126_v26 = vld [vmem:[%s2046_s2 + $0x360] sm:$0xff] }
   0xa   :  { %369 = vmatprep.subr.mxu0 %v151_v16  ;;  %446 = vmatprep.subr.mxu1 %v153_v17  ;;  %v128_v27 = vld [vmem:[%s2046_s2 + $0x370] sm:$0xff]  ;;  %v115_v28 = vld [vmem:[%s2046_s2 + $0x308] sm:$0xff]  ;;  %v117_v29 = vld [vmem:[%s2046_s2 + $0x318] sm:$0xff] }
   0xb   :  { %370 = vmatpush1.msra.mxu0 %v150_v18  ;;  %447 = vmatpush1.msra.mxu1 %v152_v19  ;;  %v114_v30 = vld [vmem:[%s2046_s2 + $0x300] sm:$0xff]  ;;  %v116_v31 = vld [vmem:[%s2046_s2 + $0x310] sm:$0xff]  ;;  %v103_v32 = vld [vmem:[%s2046_s2 + $0x2a8] sm:$0xff] }
   0xc   :  { %371 = vmatprep.subr.mxu0 %v139_v20  ;;  %448 = vmatprep.subr.mxu1 %v141_v21  ;;  %v105_v33 = vld [vmem:[%s2046_s2 + $0x2b8] sm:$0xff]  ;;  %v102_v34 = vld [vmem:[%s2046_s2 + $0x2a0] sm:$0xff]  ;;  %v104_v35 = vld [vmem:[%s2046_s2 + $0x2b0] sm:$0xff] }
   0xd   :  { %372 = vmatpush1.msra.mxu0 %v138_v22  ;;  %449 = vmatpush1.msra.mxu1 %v140_v23  ;;  %v91_v36 = vld [vmem:[%s2046_s2 + $0x248] sm:$0xff]  ;;  %v93_v37 = vld [vmem:[%s2046_s2 + $0x258] sm:$0xff]  ;;  %v90_v38 = vld [vmem:[%s2046_s2 + $0x240] sm:$0xff] }
   0xe   :  { %373 = vmatprep.subr.mxu0 %v127_v24  ;;  %450 = vmatprep.subr.mxu1 %v129_v25  ;;  %v92_v39 = vld [vmem:[%s2046_s2 + $0x250] sm:$0xff]  ;;  %v79_v40 = vld [vmem:[%s2046_s2 + $0x1e8] sm:$0xff]  ;;  %v81_v41 = vld [vmem:[%s2046_s2 + $0x1f8] sm:$0xff] }
   0xf   :  { %374 = vmatpush1.msra.mxu0 %v126_v26  ;;  %451 = vmatpush1.msra.mxu1 %v128_v27  ;;  %v78_v42 = vld [vmem:[%s2046_s2 + $0x1e0] sm:$0xff]  ;;  %v80_v43 = vld [vmem:[%s2046_s2 + $0x1f0] sm:$0xff]  ;;  %v67_v44 = vld [vmem:[%s2046_s2 + $0x188] sm:$0xff] }
  0x10   :  { %375 = vmatprep.subr.mxu0 %v115_v28  ;;  %452 = vmatprep.subr.mxu1 %v117_v29  ;;  %v69_v45 = vld [vmem:[%s2046_s2 + $0x198] sm:$0xff]  ;;  %v66_v46 = vld [vmem:[%s2046_s2 + $0x180] sm:$0xff]  ;;  %v68_v47 = vld [vmem:[%s2046_s2 + $0x190] sm:$0xff] }
  0x11   :  { %376 = vmatpush1.msra.mxu0 %v114_v30  ;;  %453 = vmatpush1.msra.mxu1 %v116_v31  ;;  %v55_v48 = vld [vmem:[%s2046_s2 + $0x128] sm:$0xff]  ;;  %v57_v49 = vld [vmem:[%s2046_s2 + $0x138] sm:$0xff]  ;;  %v54_v50 = vld [vmem:[%s2046_s2 + $0x120] sm:$0xff] }
  0x12   :  { %377 = vmatprep.subr.mxu0 %v103_v32  ;;  %454 = vmatprep.subr.mxu1 %v105_v33  ;;  %v56_v51 = vld [vmem:[%s2046_s2 + $0x130] sm:$0xff]  ;;  %v43_v52 = vld [vmem:[%s2046_s2 + $0xc8] sm:$0xff]  ;;  %v45_v53 = vld [vmem:[%s2046_s2 + $0xd8] sm:$0xff] }
  0x13   :  { %378 = vmatpush1.msra.mxu0 %v102_v34  ;;  %455 = vmatpush1.msra.mxu1 %v104_v35  ;;  %v42_v54 = vld [vmem:[%s2046_s2 + $0xc0] sm:$0xff]  ;;  %v44_v55 = vld [vmem:[%s2046_s2 + $0xd0] sm:$0xff]  ;;  %v31_v56 = vld [vmem:[%s2046_s2 + $0x68] sm:$0xff] }
  0x14   :  { %379 = vmatprep.subr.mxu0 %v91_v36  ;;  %456 = vmatprep.subr.mxu1 %v93_v37  ;;  %v33_v57 = vld [vmem:[%s2046_s2 + $0x78] sm:$0xff]  ;;  %v30_v58 = vld [vmem:[%s2046_s2 + $0x60] sm:$0xff]  ;;  %v32_v59 = vld [vmem:[%s2046_s2 + $0x70] sm:$0xff] }
  0x15   :  { %380 = vmatpush1.msra.mxu0 %v90_v38  ;;  %457 = vmatpush1.msra.mxu1 %v92_v39  ;;  %v19_v60 = vld [vmem:[%s2046_s2 + $0x8] sm:$0xff]  ;;  %v21_v61 = vld [vmem:[%s2046_s2 + $0x18] sm:$0xff]  ;;  %v18_v62 = vld [vmem:[%s2046_s2] sm:$0xff] }
  0x16   :  { %381 = vmatprep.subr.mxu0 %v79_v40  ;;  %458 = vmatprep.subr.mxu1 %v81_v41  ;;  %v20_v63 = vld [vmem:[%s2046_s2 + $0x10] sm:$0xff]  ;;  %v331_v0 = vld [vmem:[%s2046_s2 + $0x9c8] sm:$0xff]  ;;  %v333_v1 = vld [vmem:[%s2046_s2 + $0x9d8] sm:$0xff] }
  0x17   :  { %382 = vmatpush1.msra.mxu0 %v78_v42  ;;  %459 = vmatpush1.msra.mxu1 %v80_v43  ;;  %v330_v2 = vld [vmem:[%s2046_s2 + $0x9c0] sm:$0xff]  ;;  %v332_v3 = vld [vmem:[%s2046_s2 + $0x9d0] sm:$0xff]  ;;  %v319_v4 = vld [vmem:[%s2046_s2 + $0x968] sm:$0xff] }
  0x18   :  { %383 = vmatprep.subr.mxu0 %v67_v44  ;;  %460 = vmatprep.subr.mxu1 %v69_v45  ;;  %v321_v5 = vld [vmem:[%s2046_s2 + $0x978] sm:$0xff]  ;;  %v318_v6 = vld [vmem:[%s2046_s2 + $0x960] sm:$0xff]  ;;  %v320_v7 = vld [vmem:[%s2046_s2 + $0x970] sm:$0xff] }
  0x19   :  { %384 = vmatpush1.msra.mxu0 %v66_v46  ;;  %461 = vmatpush1.msra.mxu1 %v68_v47  ;;  %v307_v8 = vld [vmem:[%s2046_s2 + $0x908] sm:$0xff]  ;;  %v309_v9 = vld [vmem:[%s2046_s2 + $0x918] sm:$0xff]  ;;  %v306_v10 = vld [vmem:[%s2046_s2 + $0x900] sm:$0xff] }
  0x1a   :  { %385 = vmatprep.subr.mxu0 %v55_v48  ;;  %462 = vmatprep.subr.mxu1 %v57_v49  ;;  %v308_v11 = vld [vmem:[%s2046_s2 + $0x910] sm:$0xff]  ;;  %v295_v12 = vld [vmem:[%s2046_s2 + $0x8a8] sm:$0xff]  ;;  %v297_v13 = vld [vmem:[%s2046_s2 + $0x8b8] sm:$0xff] }
  0x1b   :  { %386 = vmatpush1.msra.mxu0 %v54_v50  ;;  %463 = vmatpush1.msra.mxu1 %v56_v51  ;;  %v294_v14 = vld [vmem:[%s2046_s2 + $0x8a0] sm:$0xff]  ;;  %v296_v15 = vld [vmem:[%s2046_s2 + $0x8b0] sm:$0xff]  ;;  %v283_v16 = vld [vmem:[%s2046_s2 + $0x848] sm:$0xff] }
  0x1c   :  { %387 = vmatprep.subr.mxu0 %v43_v52  ;;  %464 = vmatprep.subr.mxu1 %v45_v53  ;;  %v285_v17 = vld [vmem:[%s2046_s2 + $0x858] sm:$0xff]  ;;  %v282_v18 = vld [vmem:[%s2046_s2 + $0x840] sm:$0xff]  ;;  %v284_v19 = vld [vmem:[%s2046_s2 + $0x850] sm:$0xff] }
  0x1d   :  { %388 = vmatpush1.msra.mxu0 %v42_v54  ;;  %465 = vmatpush1.msra.mxu1 %v44_v55  ;;  %v271_v20 = vld [vmem:[%s2046_s2 + $0x7e8] sm:$0xff]  ;;  %v273_v21 = vld [vmem:[%s2046_s2 + $0x7f8] sm:$0xff]  ;;  %v270_v22 = vld [vmem:[%s2046_s2 + $0x7e0] sm:$0xff] }
  0x1e   :  { %389 = vmatprep.subr.mxu0 %v31_v56  ;;  %466 = vmatprep.subr.mxu1 %v33_v57  ;;  %v272_v23 = vld [vmem:[%s2046_s2 + $0x7f0] sm:$0xff]  ;;  %v259_v24 = vld [vmem:[%s2046_s2 + $0x788] sm:$0xff]  ;;  %v261_v25 = vld [vmem:[%s2046_s2 + $0x798] sm:$0xff] }
  0x1f   :  { %390 = vmatpush1.msra.mxu0 %v30_v58  ;;  %467 = vmatpush1.msra.mxu1 %v32_v59  ;;  %v258_v26 = vld [vmem:[%s2046_s2 + $0x780] sm:$0xff]  ;;  %v260_v27 = vld [vmem:[%s2046_s2 + $0x790] sm:$0xff]  ;;  %v247_v28 = vld [vmem:[%s2046_s2 + $0x728] sm:$0xff] }
  0x20   :  { %391 = vmatprep.subr.mxu0 %v19_v60  ;;  %468 = vmatprep.subr.mxu1 %v21_v61  ;;  %v249_v29 = vld [vmem:[%s2046_s2 + $0x738] sm:$0xff]  ;;  %v246_v30 = vld [vmem:[%s2046_s2 + $0x720] sm:$0xff]  ;;  %v248_v31 = vld [vmem:[%s2046_s2 + $0x730] sm:$0xff] }
  0x21   :  { %392 = vmatpush1.msra.mxu0 %v18_v62  ;;  %469 = vmatpush1.msra.mxu1 %v20_v63  ;;  %v235_v32 = vld [vmem:[%s2046_s2 + $0x6c8] sm:$0xff]  ;;  %v237_v33 = vld [vmem:[%s2046_s2 + $0x6d8] sm:$0xff]  ;;  %v234_v34 = vld [vmem:[%s2046_s2 + $0x6c0] sm:$0xff] }
  0x22   :  { %403 = vmatprep.subr.mxu0 %v331_v0  ;;  %480 = vmatprep.subr.mxu1 %v333_v1  ;;  %v236_v35 = vld [vmem:[%s2046_s2 + $0x6d0] sm:$0xff]  ;;  %v223_v36 = vld [vmem:[%s2046_s2 + $0x668] sm:$0xff]  ;;  %v225_v37 = vld [vmem:[%s2046_s2 + $0x678] sm:$0xff] }
  0x23   :  { %404 = vmatpush2.msra.mxu0 %v330_v2  ;;  %481 = vmatpush2.msra.mxu1 %v332_v3  ;;  %v222_v38 = vld [vmem:[%s2046_s2 + $0x660] sm:$0xff]  ;;  %v224_v39 = vld [vmem:[%s2046_s2 + $0x670] sm:$0xff]  ;;  %v211_v40 = vld [vmem:[%s2046_s2 + $0x608] sm:$0xff] }
  0x24   :  { %405 = vmatprep.subr.mxu0 %v319_v4  ;;  %482 = vmatprep.subr.mxu1 %v321_v5  ;;  %v213_v41 = vld [vmem:[%s2046_s2 + $0x618] sm:$0xff]  ;;  %v210_v42 = vld [vmem:[%s2046_s2 + $0x600] sm:$0xff]  ;;  %v1236_v43 = vld [vmem:[%s2047_s0 + $0x8] sm:$0xff] }
  0x25   :  { %406 = vmatpush2.msra.mxu0 %v318_v6  ;;  %483 = vmatpush2.msra.mxu1 %v320_v7  ;;  %v212_v44 = vld [vmem:[%s2046_s2 + $0x610] sm:$0xff]  ;;  %v1244_v45 = vld [vmem:[%s2047_s0] sm:$0xff]  ;;  %v203_v46 = vld [vmem:[%s2046_s2 + $0x5c8] sm:$0xff] }
  0x26   :  { %407 = vmatprep.subr.mxu0 %v307_v8  ;;  %484 = vmatprep.subr.mxu1 %v309_v9  ;;  %v205_v47 = vld [vmem:[%s2046_s2 + $0x5d8] sm:$0xff]  ;;  %v202_v48 = vld [vmem:[%s2046_s2 + $0x5c0] sm:$0xff]  ;;  %v204_v49 = vld [vmem:[%s2046_s2 + $0x5d0] sm:$0xff] }
  0x27   :  { %408 = vmatpush2.msra.mxu0 %v306_v10  ;;  %485 = vmatpush2.msra.mxu1 %v308_v11  ;;  %v191_v50 = vld [vmem:[%s2046_s2 + $0x568] sm:$0xff]  ;;  %v193_v51 = vld [vmem:[%s2046_s2 + $0x578] sm:$0xff]  ;;  %v190_v52 = vld [vmem:[%s2046_s2 + $0x560] sm:$0xff] }
  0x28   :  { %409 = vmatprep.subr.mxu0 %v295_v12  ;;  %486 = vmatprep.subr.mxu1 %v297_v13  ;;  %v192_v53 = vld [vmem:[%s2046_s2 + $0x570] sm:$0xff]  ;;  %v179_v54 = vld [vmem:[%s2046_s2 + $0x508] sm:$0xff]  ;;  %v181_v55 = vld [vmem:[%s2046_s2 + $0x518] sm:$0xff] }
  0x29   :  { %410 = vmatpush2.msra.mxu0 %v294_v14  ;;  %487 = vmatpush2.msra.mxu1 %v296_v15  ;;  %v178_v56 = vld [vmem:[%s2046_s2 + $0x500] sm:$0xff]  ;;  %v180_v57 = vld [vmem:[%s2046_s2 + $0x510] sm:$0xff]  ;;  %v167_v58 = vld [vmem:[%s2046_s2 + $0x4a8] sm:$0xff] }
  0x2a   :  { %411 = vmatprep.subr.mxu0 %v283_v16  ;;  %488 = vmatprep.subr.mxu1 %v285_v17  ;;  %v169_v59 = vld [vmem:[%s2046_s2 + $0x4b8] sm:$0xff]  ;;  %v166_v60 = vld [vmem:[%s2046_s2 + $0x4a0] sm:$0xff]  ;;  %v168_v61 = vld [vmem:[%s2046_s2 + $0x4b0] sm:$0xff] }
  0x2b   :  { %412 = vmatpush2.msra.mxu0 %v282_v18  ;;  %489 = vmatpush2.msra.mxu1 %v284_v19  ;;  %v155_v62 = vld [vmem:[%s2046_s2 + $0x448] sm:$0xff]  ;;  %v157_v63 = vld [vmem:[%s2046_s2 + $0x458] sm:$0xff]  ;;  %v154_v0 = vld [vmem:[%s2046_s2 + $0x440] sm:$0xff] }
  0x2c   :  { %413 = vmatprep.subr.mxu0 %v271_v20  ;;  %490 = vmatprep.subr.mxu1 %v273_v21  ;;  %v156_v1 = vld [vmem:[%s2046_s2 + $0x450] sm:$0xff]  ;;  %v143_v2 = vld [vmem:[%s2046_s2 + $0x3e8] sm:$0xff]  ;;  %v145_v3 = vld [vmem:[%s2046_s2 + $0x3f8] sm:$0xff] }
  0x2d   :  { %414 = vmatpush2.msra.mxu0 %v270_v22  ;;  %491 = vmatpush2.msra.mxu1 %v272_v23  ;;  %v142_v4 = vld [vmem:[%s2046_s2 + $0x3e0] sm:$0xff]  ;;  %v144_v5 = vld [vmem:[%s2046_s2 + $0x3f0] sm:$0xff]  ;;  %v131_v6 = vld [vmem:[%s2046_s2 + $0x388] sm:$0xff] }
  0x2e   :  { %415 = vmatprep.subr.mxu0 %v259_v24  ;;  %492 = vmatprep.subr.mxu1 %v261_v25  ;;  %v133_v7 = vld [vmem:[%s2046_s2 + $0x398] sm:$0xff]  ;;  %v130_v8 = vld [vmem:[%s2046_s2 + $0x380] sm:$0xff]  ;;  %v132_v9 = vld [vmem:[%s2046_s2 + $0x390] sm:$0xff] }
  0x2f   :  { %416 = vmatpush2.msra.mxu0 %v258_v26  ;;  %493 = vmatpush2.msra.mxu1 %v260_v27  ;;  %v119_v10 = vld [vmem:[%s2046_s2 + $0x328] sm:$0xff]  ;;  %v121_v11 = vld [vmem:[%s2046_s2 + $0x338] sm:$0xff]  ;;  %v118_v12 = vld [vmem:[%s2046_s2 + $0x320] sm:$0xff] }
  0x30   :  { %417 = vmatprep.subr.mxu0 %v247_v28  ;;  %494 = vmatprep.subr.mxu1 %v249_v29  ;;  %v120_v13 = vld [vmem:[%s2046_s2 + $0x330] sm:$0xff]  ;;  %v107_v14 = vld [vmem:[%s2046_s2 + $0x2c8] sm:$0xff]  ;;  %v109_v15 = vld [vmem:[%s2046_s2 + $0x2d8] sm:$0xff] }
  0x31   :  { %418 = vmatpush2.msra.mxu0 %v246_v30  ;;  %495 = vmatpush2.msra.mxu1 %v248_v31  ;;  %v106_v16 = vld [vmem:[%s2046_s2 + $0x2c0] sm:$0xff]  ;;  %v108_v17 = vld [vmem:[%s2046_s2 + $0x2d0] sm:$0xff]  ;;  %v95_v18 = vld [vmem:[%s2046_s2 + $0x268] sm:$0xff] }
  0x32   :  { %419 = vmatprep.subr.mxu0 %v235_v32  ;;  %496 = vmatprep.subr.mxu1 %v237_v33  ;;  %v97_v19 = vld [vmem:[%s2046_s2 + $0x278] sm:$0xff]  ;;  %v94_v20 = vld [vmem:[%s2046_s2 + $0x260] sm:$0xff]  ;;  %v96_v21 = vld [vmem:[%s2046_s2 + $0x270] sm:$0xff] }
  0x33   :  { %420 = vmatpush2.msra.mxu0 %v234_v34  ;;  %497 = vmatpush2.msra.mxu1 %v236_v35  ;;  %v83_v22 = vld [vmem:[%s2046_s2 + $0x208] sm:$0xff]  ;;  %v85_v23 = vld [vmem:[%s2046_s2 + $0x218] sm:$0xff]  ;;  %v82_v24 = vld [vmem:[%s2046_s2 + $0x200] sm:$0xff] }
  0x34   :  { %421 = vmatprep.subr.mxu0 %v223_v36  ;;  %498 = vmatprep.subr.mxu1 %v225_v37  ;;  %v84_v25 = vld [vmem:[%s2046_s2 + $0x210] sm:$0xff]  ;;  %v71_v26 = vld [vmem:[%s2046_s2 + $0x1a8] sm:$0xff]  ;;  %v73_v27 = vld [vmem:[%s2046_s2 + $0x1b8] sm:$0xff] }
  0x35   :  { %422 = vmatpush2.msra.mxu0 %v222_v38  ;;  %499 = vmatpush2.msra.mxu1 %v224_v39  ;;  %v70_v28 = vld [vmem:[%s2046_s2 + $0x1a0] sm:$0xff]  ;;  %v72_v29 = vld [vmem:[%s2046_s2 + $0x1b0] sm:$0xff]  ;;  %v59_v30 = vld [vmem:[%s2046_s2 + $0x148] sm:$0xff] }
  0x36   :  { %423 = vmatprep.subr.mxu0 %v211_v40  ;;  %500 = vmatprep.subr.mxu1 %v213_v41  ;;  %v61_v31 = vld [vmem:[%s2046_s2 + $0x158] sm:$0xff]  ;;  %v58_v32 = vld [vmem:[%s2046_s2 + $0x140] sm:$0xff]  ;;  %v60_v33 = vld [vmem:[%s2046_s2 + $0x150] sm:$0xff] }
  0x37   :  { %424 = vmatpush2.msra.mxu0 %v210_v42  ;;  %877 = vmatprep.mubr.msk.f32.mxu0 %vm354_vm0, %v1236_v43  ;;  %v47_v34 = vld [vmem:[%s2046_s2 + $0xe8] sm:$0xff]  ;;  %v49_v35 = vld [vmem:[%s2046_s2 + $0xf8] sm:$0xff]  ;;  %v46_v36 = vld [vmem:[%s2046_s2 + $0xe0] sm:$0xff] }
  0x38   :  { %501 = vmatpush2.msra.mxu1 %v212_v44  ;;  %879 = vmatprep.mubr.msk.f32.mxu1 %vm354_vm0, %v1236_v43  ;;  %v48_v37 = vld [vmem:[%s2046_s2 + $0xf0] sm:$0xff]  ;;  %v35_v38 = vld [vmem:[%s2046_s2 + $0x88] sm:$0xff]  ;;  %v37_v39 = vld [vmem:[%s2046_s2 + $0x98] sm:$0xff] }
  0x39   :  { %426 = vmatmul.mubr.f32.vlgmr.msra.gmra.mxu0 %v1244_v45  ;;  %503 = vmatmul.mubr.f32.vlgmr.msra.gmra.mxu1 %v1244_v45  ;;  %v34_v40 = vld [vmem:[%s2046_s2 + $0x80] sm:$0xff]  ;;  %v36_v41 = vld [vmem:[%s2046_s2 + $0x90] sm:$0xff]  ;;  %v23_v42 = vld [vmem:[%s2046_s2 + $0x28] sm:$0xff] }
  0x3a   :  { %515 = vmatprep.subr.mxu0 %v203_v46  ;;  %592 = vmatprep.subr.mxu1 %v205_v47  ;;  %v25_v44 = vld [vmem:[%s2046_s2 + $0x38] sm:$0xff]  ;;  %v22_v46 = vld [vmem:[%s2046_s2 + $0x20] sm:$0xff]  ;;  %v24_v47 = vld [vmem:[%s2046_s2 + $0x30] sm:$0xff] }
  0x3b   :  { %516 = vmatpush1.msra.mxu0 %v202_v48  ;;  %593 = vmatpush1.msra.mxu1 %v204_v49  ;;  %v335_v48 = vld [vmem:[%s2046_s2 + $0x9e8] sm:$0xff]  ;;  %v337_v49 = vld [vmem:[%s2046_s2 + $0x9f8] sm:$0xff] }
  0x3c   :  { %517 = vmatprep.subr.mxu0 %v191_v50  ;;  %594 = vmatprep.subr.mxu1 %v193_v51  ;;  %v334_v50 = vld [vmem:[%s2046_s2 + $0x9e0] sm:$0xff]  ;;  %v336_v51 = vld [vmem:[%s2046_s2 + $0x9f0] sm:$0xff] }
  0x3d   :  { %518 = vmatpush1.msra.mxu0 %v190_v52  ;;  %595 = vmatpush1.msra.mxu1 %v192_v53  ;;  %v323_v52 = vld [vmem:[%s2046_s2 + $0x988] sm:$0xff]  ;;  %v325_v53 = vld [vmem:[%s2046_s2 + $0x998] sm:$0xff] }
  0x3e   :  { %519 = vmatprep.subr.mxu0 %v179_v54  ;;  %596 = vmatprep.subr.mxu1 %v181_v55  ;;  %v322_v54 = vld [vmem:[%s2046_s2 + $0x980] sm:$0xff]  ;;  %v324_v55 = vld [vmem:[%s2046_s2 + $0x990] sm:$0xff] }
  0x3f   :  { %520 = vmatpush1.msra.mxu0 %v178_v56  ;;  %597 = vmatpush1.msra.mxu1 %v180_v57  ;;  %v311_v56 = vld [vmem:[%s2046_s2 + $0x928] sm:$0xff]  ;;  %v313_v57 = vld [vmem:[%s2046_s2 + $0x938] sm:$0xff] }
  0x40   :  { %521 = vmatprep.subr.mxu0 %v167_v58  ;;  %598 = vmatprep.subr.mxu1 %v169_v59  ;;  %v310_v58 = vld [vmem:[%s2046_s2 + $0x920] sm:$0xff]  ;;  %v312_v59 = vld [vmem:[%s2046_s2 + $0x930] sm:$0xff] }
  0x41   :  { %522 = vmatpush1.msra.mxu0 %v166_v60  ;;  %599 = vmatpush1.msra.mxu1 %v168_v61  ;;  %v299_v60 = vld [vmem:[%s2046_s2 + $0x8c8] sm:$0xff]  ;;  %v301_v61 = vld [vmem:[%s2046_s2 + $0x8d8] sm:$0xff] }
  0x42   :  { %523 = vmatprep.subr.mxu0 %v155_v62  ;;  %600 = vmatprep.subr.mxu1 %v157_v63  ;;  %v298_v62 = vld [vmem:[%s2046_s2 + $0x8c0] sm:$0xff]  ;;  %v300_v63 = vld [vmem:[%s2046_s2 + $0x8d0] sm:$0xff] }
  0x43   :  { %524 = vmatpush1.msra.mxu0 %v154_v0  ;;  %601 = vmatpush1.msra.mxu1 %v156_v1  ;;  %v287_v0 = vld [vmem:[%s2046_s2 + $0x868] sm:$0xff]  ;;  %v289_v1 = vld [vmem:[%s2046_s2 + $0x878] sm:$0xff] }
  0x44   :  { %525 = vmatprep.subr.mxu0 %v143_v2  ;;  %602 = vmatprep.subr.mxu1 %v145_v3  ;;  %v286_v2 = vld [vmem:[%s2046_s2 + $0x860] sm:$0xff]  ;;  %v288_v3 = vld [vmem:[%s2046_s2 + $0x870] sm:$0xff] }
  0x45   :  { %526 = vmatpush1.msra.mxu0 %v142_v4  ;;  %603 = vmatpush1.msra.mxu1 %v144_v5  ;;  %v275_v4 = vld [vmem:[%s2046_s2 + $0x808] sm:$0xff]  ;;  %v277_v5 = vld [vmem:[%s2046_s2 + $0x818] sm:$0xff] }
  0x46   :  { %527 = vmatprep.subr.mxu0 %v131_v6  ;;  %604 = vmatprep.subr.mxu1 %v133_v7  ;;  %v274_v6 = vld [vmem:[%s2046_s2 + $0x800] sm:$0xff]  ;;  %v276_v7 = vld [vmem:[%s2046_s2 + $0x810] sm:$0xff] }
  0x47   :  { %528 = vmatpush1.msra.mxu0 %v130_v8  ;;  %605 = vmatpush1.msra.mxu1 %v132_v9  ;;  %v263_v8 = vld [vmem:[%s2046_s2 + $0x7a8] sm:$0xff]  ;;  %v265_v9 = vld [vmem:[%s2046_s2 + $0x7b8] sm:$0xff] }
  0x48   :  { %529 = vmatprep.subr.mxu0 %v119_v10  ;;  %606 = vmatprep.subr.mxu1 %v121_v11  ;;  %v262_v10 = vld [vmem:[%s2046_s2 + $0x7a0] sm:$0xff]  ;;  %v264_v11 = vld [vmem:[%s2046_s2 + $0x7b0] sm:$0xff] }
  0x49   :  { %530 = vmatpush1.msra.mxu0 %v118_v12  ;;  %607 = vmatpush1.msra.mxu1 %v120_v13  ;;  %v251_v12 = vld [vmem:[%s2046_s2 + $0x748] sm:$0xff]  ;;  %v253_v13 = vld [vmem:[%s2046_s2 + $0x758] sm:$0xff] }
  0x4a   :  { %531 = vmatprep.subr.mxu0 %v107_v14  ;;  %608 = vmatprep.subr.mxu1 %v109_v15  ;;  %v250_v14 = vld [vmem:[%s2046_s2 + $0x740] sm:$0xff]  ;;  %v252_v15 = vld [vmem:[%s2046_s2 + $0x750] sm:$0xff] }
  0x4b   :  { %532 = vmatpush1.msra.mxu0 %v106_v16  ;;  %609 = vmatpush1.msra.mxu1 %v108_v17  ;;  %v1543_v16 = vld [vmem:[%s2047_s0 + $0x18] sm:$0xf]  ;;  %v239_v17 = vld [vmem:[%s2046_s2 + $0x6e8] sm:$0xff] }
  0x4c   :  { %533 = vmatprep.subr.mxu0 %v95_v18  ;;  %610 = vmatprep.subr.mxu1 %v97_v19  ;;  %v241_v18 = vld [vmem:[%s2046_s2 + $0x6f8] sm:$0xff]  ;;  %v1554_v19 = vld [vmem:[%s2047_s0 + $0x10] sm:$0xf] }
  0x4d   :  { %534 = vmatpush1.msra.mxu0 %v94_v20  ;;  %611 = vmatpush1.msra.mxu1 %v96_v21  ;;  %v238_v20 = vld [vmem:[%s2046_s2 + $0x6e0] sm:$0xff]  ;;  %v240_v21 = vld [vmem:[%s2046_s2 + $0x6f0] sm:$0xff] }
  0x4e   :  { %535 = vmatprep.subr.mxu0 %v83_v22  ;;  %612 = vmatprep.subr.mxu1 %v85_v23  ;;  %v227_v22 = vld [vmem:[%s2046_s2 + $0x688] sm:$0xff]  ;;  %v229_v23 = vld [vmem:[%s2046_s2 + $0x698] sm:$0xff] }
  0x4f   :  { %536 = vmatpush1.msra.mxu0 %v82_v24  ;;  %613 = vmatpush1.msra.mxu1 %v84_v25  ;;  %v226_v24 = vld [vmem:[%s2046_s2 + $0x680] sm:$0xff]  ;;  %v228_v25 = vld [vmem:[%s2046_s2 + $0x690] sm:$0xff] }
  0x50   :  { %537 = vmatprep.subr.mxu0 %v71_v26  ;;  %614 = vmatprep.subr.mxu1 %v73_v27  ;;  %v215_v26 = vld [vmem:[%s2046_s2 + $0x628] sm:$0xff]  ;;  %v217_v27 = vld [vmem:[%s2046_s2 + $0x638] sm:$0xff] }
  0x51   :  { %538 = vmatpush1.msra.mxu0 %v70_v28  ;;  %615 = vmatpush1.msra.mxu1 %v72_v29  ;;  %v214_v28 = vld [vmem:[%s2046_s2 + $0x620] sm:$0xff]  ;;  %v216_v29 = vld [vmem:[%s2046_s2 + $0x630] sm:$0xff] }
  0x52   :  { %539 = vmatprep.subr.mxu0 %v59_v30  ;;  %616 = vmatprep.subr.mxu1 %v61_v31  ;;  %v207_v30 = vld [vmem:[%s2046_s2 + $0x5e8] sm:$0xff]  ;;  %v209_v31 = vld [vmem:[%s2046_s2 + $0x5f8] sm:$0xff] }
  0x53   :  { %540 = vmatpush1.msra.mxu0 %v58_v32  ;;  %617 = vmatpush1.msra.mxu1 %v60_v33  ;;  %v206_v32 = vld [vmem:[%s2046_s2 + $0x5e0] sm:$0xff]  ;;  %v208_v33 = vld [vmem:[%s2046_s2 + $0x5f0] sm:$0xff] }
  0x54   :  { %541 = vmatprep.subr.mxu0 %v47_v34  ;;  %618 = vmatprep.subr.mxu1 %v49_v35  ;;  %v195_v34 = vld [vmem:[%s2046_s2 + $0x588] sm:$0xff]  ;;  %v197_v35 = vld [vmem:[%s2046_s2 + $0x598] sm:$0xff] }
  0x55   :  { %542 = vmatpush1.msra.mxu0 %v46_v36  ;;  %619 = vmatpush1.msra.mxu1 %v48_v37  ;;  %v194_v36 = vld [vmem:[%s2046_s2 + $0x580] sm:$0xff]  ;;  %v196_v37 = vld [vmem:[%s2046_s2 + $0x590] sm:$0xff] }
  0x56   :  { %543 = vmatprep.subr.mxu0 %v35_v38  ;;  %620 = vmatprep.subr.mxu1 %v37_v39  ;;  %v183_v38 = vld [vmem:[%s2046_s2 + $0x528] sm:$0xff]  ;;  %v185_v39 = vld [vmem:[%s2046_s2 + $0x538] sm:$0xff] }
  0x57   :  { %544 = vmatpush1.msra.mxu0 %v34_v40  ;;  %621 = vmatpush1.msra.mxu1 %v36_v41  ;;  %v182_v40 = vld [vmem:[%s2046_s2 + $0x520] sm:$0xff]  ;;  %v184_v41 = vld [vmem:[%s2046_s2 + $0x530] sm:$0xff] }
  0x58   :  { %545 = vmatprep.subr.mxu0 %v23_v42  ;;  %622 = vmatprep.subr.mxu1 %v25_v44  ;;  %v171_v42 = vld [vmem:[%s2046_s2 + $0x4c8] sm:$0xff]  ;;  %v173_v44 = vld [vmem:[%s2046_s2 + $0x4d8] sm:$0xff] }
  0x59   :  { %546 = vmatpush1.msra.mxu0 %v22_v46  ;;  %623 = vmatpush1.msra.mxu1 %v24_v47  ;;  %v170_v46 = vld [vmem:[%s2046_s2 + $0x4c0] sm:$0xff]  ;;  %v172_v47 = vld [vmem:[%s2046_s2 + $0x4d0] sm:$0xff] }
  0x5a   :  { %557 = vmatprep.subr.mxu0 %v335_v48  ;;  %634 = vmatprep.subr.mxu1 %v337_v49  ;;  %v159_v48 = vld [vmem:[%s2046_s2 + $0x468] sm:$0xff]  ;;  %v161_v49 = vld [vmem:[%s2046_s2 + $0x478] sm:$0xff] }
  0x5b   :  { %558 = vmatpush2.msra.mxu0 %v334_v50  ;;  %635 = vmatpush2.msra.mxu1 %v336_v51  ;;  %v158_v50 = vld [vmem:[%s2046_s2 + $0x460] sm:$0xff]  ;;  %v160_v51 = vld [vmem:[%s2046_s2 + $0x470] sm:$0xff] }
  0x5c   :  { %559 = vmatprep.subr.mxu0 %v323_v52  ;;  %636 = vmatprep.subr.mxu1 %v325_v53  ;;  %v147_v52 = vld [vmem:[%s2046_s2 + $0x408] sm:$0xff]  ;;  %v149_v53 = vld [vmem:[%s2046_s2 + $0x418] sm:$0xff] }
  0x5d   :  { %560 = vmatpush2.msra.mxu0 %v322_v54  ;;  %637 = vmatpush2.msra.mxu1 %v324_v55  ;;  %v146_v54 = vld [vmem:[%s2046_s2 + $0x400] sm:$0xff]  ;;  %v148_v55 = vld [vmem:[%s2046_s2 + $0x410] sm:$0xff] }
  0x5e   :  { %561 = vmatprep.subr.mxu0 %v311_v56  ;;  %638 = vmatprep.subr.mxu1 %v313_v57  ;;  %v135_v56 = vld [vmem:[%s2046_s2 + $0x3a8] sm:$0xff]  ;;  %v137_v57 = vld [vmem:[%s2046_s2 + $0x3b8] sm:$0xff] }
  0x5f   :  { %562 = vmatpush2.msra.mxu0 %v310_v58  ;;  %639 = vmatpush2.msra.mxu1 %v312_v59  ;;  %v134_v58 = vld [vmem:[%s2046_s2 + $0x3a0] sm:$0xff]  ;;  %v136_v59 = vld [vmem:[%s2046_s2 + $0x3b0] sm:$0xff] }
  0x60   :  { %563 = vmatprep.subr.mxu0 %v299_v60  ;;  %640 = vmatprep.subr.mxu1 %v301_v61  ;;  %v123_v60 = vld [vmem:[%s2046_s2 + $0x348] sm:$0xff]  ;;  %v125_v61 = vld [vmem:[%s2046_s2 + $0x358] sm:$0xff] }
  0x61   :  { %564 = vmatpush2.msra.mxu0 %v298_v62  ;;  %641 = vmatpush2.msra.mxu1 %v300_v63  ;;  %v122_v62 = vld [vmem:[%s2046_s2 + $0x340] sm:$0xff]  ;;  %v124_v63 = vld [vmem:[%s2046_s2 + $0x350] sm:$0xff] }
  0x62   :  { %565 = vmatprep.subr.mxu0 %v287_v0  ;;  %642 = vmatprep.subr.mxu1 %v289_v1  ;;  %v342_v0 = vld [vmem:[%s2048_s1] sm:$0xff]  ;;  %v111_v1 = vld [vmem:[%s2046_s2 + $0x2e8] sm:$0xff] }
  0x63   :  { %566 = vmatpush2.msra.mxu0 %v286_v2  ;;  %643 = vmatpush2.msra.mxu1 %v288_v3  ;;  %v113_v2 = vld [vmem:[%s2046_s2 + $0x2f8] sm:$0xff]  ;;  %v891_v3 = vmov 0  }
  0x64   :  { %567 = vmatprep.subr.mxu0 %v275_v4  ;;  %644 = vmatprep.subr.mxu1 %v277_v5  ;;  %v110_v4 = vld [vmem:[%s2046_s2 + $0x2e0] sm:$0xff]  ;;  %v112_v5 = vld [vmem:[%s2046_s2 + $0x2f0] sm:$0xff] }
  0x65   :  { %568 = vmatpush2.msra.mxu0 %v274_v6  ;;  %645 = vmatpush2.msra.mxu1 %v276_v7  ;;  %v99_v6 = vld [vmem:[%s2046_s2 + $0x288] sm:$0xff]  ;;  %v101_v7 = vld [vmem:[%s2046_s2 + $0x298] sm:$0xff] }
  0x66   :  { %569 = vmatprep.subr.mxu0 %v263_v8  ;;  %646 = vmatprep.subr.mxu1 %v265_v9  ;;  %v98_v8 = vld [vmem:[%s2046_s2 + $0x280] sm:$0xff]  ;;  %v100_v9 = vld [vmem:[%s2046_s2 + $0x290] sm:$0xff] }
  0x67   :  { %570 = vmatpush2.msra.mxu0 %v262_v10  ;;  %647 = vmatpush2.msra.mxu1 %v264_v11  ;;  %v87_v10 = vld [vmem:[%s2046_s2 + $0x228] sm:$0xff]  ;;  %v89_v11 = vld [vmem:[%s2046_s2 + $0x238] sm:$0xff] }
  0x68   :  { %571 = vmatprep.subr.mxu0 %v251_v12  ;;  %648 = vmatprep.subr.mxu1 %v253_v13  ;;  %v86_v12 = vld [vmem:[%s2046_s2 + $0x220] sm:$0xff]  ;;  %v88_v13 = vld [vmem:[%s2046_s2 + $0x230] sm:$0xff] }
  0x69   :  { %572 = vmatpush2.msra.mxu0 %v250_v14  ;;  %649 = vmatpush2.msra.mxu1 %v252_v15  ;;  %v75_v14 = vld [vmem:[%s2046_s2 + $0x1c8] sm:$0xff]  ;;  %v77_v15 = vld [vmem:[%s2046_s2 + $0x1d8] sm:$0xff] }
  0x6a   :  { %878 = vmatprep.mubr.msk.f32.mxu0 %vm354_vm0, %v1543_v16  ;;  %880 = vmatprep.mubr.msk.f32.mxu1 %vm354_vm0, %v1543_v16 }
  0x6b   :  { %573 = vmatprep.subr.mxu0 %v239_v17  ;;  %650 = vmatprep.subr.mxu1 %v241_v18  ;;  %v74_v17 = vld [vmem:[%s2046_s2 + $0x1c0] sm:$0xff]  ;;  %v76_v18 = vld [vmem:[%s2046_s2 + $0x1d0] sm:$0xff] }
  0x6c   :  { %432 = vmatmul.mubr.f32.gmra.mxu0 %v1554_v19  ;;  %509 = vmatmul.mubr.f32.gmra.mxu1 %v1554_v19 }
  0x6d   :  { %574 = vmatpush2.msra.mxu0 %v238_v20  ;;  %651 = vmatpush2.msra.mxu1 %v240_v21  ;;  %v63_v20 = vld [vmem:[%s2046_s2 + $0x168] sm:$0xff]  ;;  %v65_v21 = vld [vmem:[%s2046_s2 + $0x178] sm:$0xff] }
  0x6e   :  { %575 = vmatprep.subr.mxu0 %v227_v22  ;;  %652 = vmatprep.subr.mxu1 %v229_v23  ;;  %v62_v22 = vld [vmem:[%s2046_s2 + $0x160] sm:$0xff]  ;;  %v64_v23 = vld [vmem:[%s2046_s2 + $0x170] sm:$0xff] }
  0x6f   :  { %576 = vmatpush2.msra.mxu0 %v226_v24  ;;  %653 = vmatpush2.msra.mxu1 %v228_v25  ;;  %v51_v24 = vld [vmem:[%s2046_s2 + $0x108] sm:$0xff]  ;;  %v53_v25 = vld [vmem:[%s2046_s2 + $0x118] sm:$0xff] }
  0x70   :  { %577 = vmatprep.subr.mxu0 %v215_v26  ;;  %654 = vmatprep.subr.mxu1 %v217_v27  ;;  %v50_v26 = vld [vmem:[%s2046_s2 + $0x100] sm:$0xff]  ;;  %v52_v27 = vld [vmem:[%s2046_s2 + $0x110] sm:$0xff] }
  0x71   :  { %578 = vmatpush2.msra.mxu0 %v214_v28  ;;  %881 = vmatprep.mubr.msk.f32.mxu0 %vm354_vm0, %v1236_v43  ;;  %v39_v28 = vld [vmem:[%s2046_s2 + $0xa8] sm:$0xff] }
  0x72   :  { %655 = vmatpush2.msra.mxu1 %v216_v29  ;;  %883 = vmatprep.mubr.msk.f32.mxu1 %vm354_vm0, %v1236_v43  ;;  %v41_v29 = vld [vmem:[%s2046_s2 + $0xb8] sm:$0xff] }
  0x73   :  { %580 = vmatmul.mubr.f32.vlgmr.msra.gmra.mxu0 %v1244_v45  ;;  %657 = vmatmul.mubr.f32.vlgmr.msra.gmra.mxu1 %v1244_v45 }
  0x74   :  { %669 = vmatprep.subr.mxu0 %v207_v30  ;;  %746 = vmatprep.subr.mxu1 %v209_v31  ;;  %v38_v30 = vld [vmem:[%s2046_s2 + $0xa0] sm:$0xff]  ;;  %v40_v31 = vld [vmem:[%s2046_s2 + $0xb0] sm:$0xff] }
  0x75   :  { %670 = vmatpush1.msra.mxu0 %v206_v32  ;;  %747 = vmatpush1.msra.mxu1 %v208_v33  ;;  %v27_v32 = vld [vmem:[%s2046_s2 + $0x48] sm:$0xff]  ;;  %v29_v33 = vld [vmem:[%s2046_s2 + $0x58] sm:$0xff] }
  0x76   :  { %671 = vmatprep.subr.mxu0 %v195_v34  ;;  %748 = vmatprep.subr.mxu1 %v197_v35  ;;  %v26_v34 = vld [vmem:[%s2046_s2 + $0x40] sm:$0xff]  ;;  %v28_v35 = vld [vmem:[%s2046_s2 + $0x50] sm:$0xff] }
  0x77   :  { %672 = vmatpush1.msra.mxu0 %v194_v36  ;;  %749 = vmatpush1.msra.mxu1 %v196_v37  ;;  %v339_v36 = vld [vmem:[%s2046_s2 + $0xa08] sm:$0xff]  ;;  %v341_v37 = vld [vmem:[%s2046_s2 + $0xa18] sm:$0xff] }
  0x78   :  { %673 = vmatprep.subr.mxu0 %v183_v38  ;;  %750 = vmatprep.subr.mxu1 %v185_v39  ;;  %v338_v38 = vld [vmem:[%s2046_s2 + $0xa00] sm:$0xff]  ;;  %v340_v39 = vld [vmem:[%s2046_s2 + $0xa10] sm:$0xff] }
  0x79   :  { %674 = vmatpush1.msra.mxu0 %v182_v40  ;;  %751 = vmatpush1.msra.mxu1 %v184_v41  ;;  %v327_v40 = vld [vmem:[%s2046_s2 + $0x9a8] sm:$0xff]  ;;  %v329_v41 = vld [vmem:[%s2046_s2 + $0x9b8] sm:$0xff] }
  0x7a   :  { %675 = vmatprep.subr.mxu0 %v171_v42  ;;  %752 = vmatprep.subr.mxu1 %v173_v44  ;;  %v326_v42 = vld [vmem:[%s2046_s2 + $0x9a0] sm:$0xff]  ;;  %v328_v44 = vld [vmem:[%s2046_s2 + $0x9b0] sm:$0xff] }
  0x7b   :  { %676 = vmatpush1.msra.mxu0 %v170_v46  ;;  %753 = vmatpush1.msra.mxu1 %v172_v47  ;;  %v315_v46 = vld [vmem:[%s2046_s2 + $0x948] sm:$0xff]  ;;  %v317_v47 = vld [vmem:[%s2046_s2 + $0x958] sm:$0xff] }
  0x7c   :  { %677 = vmatprep.subr.mxu0 %v159_v48  ;;  %754 = vmatprep.subr.mxu1 %v161_v49  ;;  %v314_v48 = vld [vmem:[%s2046_s2 + $0x940] sm:$0xff]  ;;  %v316_v49 = vld [vmem:[%s2046_s2 + $0x950] sm:$0xff] }
  0x7d   :  { %678 = vmatpush1.msra.mxu0 %v158_v50  ;;  %755 = vmatpush1.msra.mxu1 %v160_v51  ;;  %v303_v50 = vld [vmem:[%s2046_s2 + $0x8e8] sm:$0xff]  ;;  %v305_v51 = vld [vmem:[%s2046_s2 + $0x8f8] sm:$0xff] }
  0x7e   :  { %679 = vmatprep.subr.mxu0 %v147_v52  ;;  %756 = vmatprep.subr.mxu1 %v149_v53  ;;  %v302_v52 = vld [vmem:[%s2046_s2 + $0x8e0] sm:$0xff]  ;;  %v304_v53 = vld [vmem:[%s2046_s2 + $0x8f0] sm:$0xff] }
  0x7f   :  { %680 = vmatpush1.msra.mxu0 %v146_v54  ;;  %757 = vmatpush1.msra.mxu1 %v148_v55  ;;  %v291_v54 = vld [vmem:[%s2046_s2 + $0x888] sm:$0xff]  ;;  %v293_v55 = vld [vmem:[%s2046_s2 + $0x898] sm:$0xff] }
  0x80   :  { %681 = vmatprep.subr.mxu0 %v135_v56  ;;  %758 = vmatprep.subr.mxu1 %v137_v57  ;;  %v290_v56 = vld [vmem:[%s2046_s2 + $0x880] sm:$0xff]  ;;  %v292_v57 = vld [vmem:[%s2046_s2 + $0x890] sm:$0xff] }
  0x81   :  { %682 = vmatpush1.msra.mxu0 %v134_v58  ;;  %759 = vmatpush1.msra.mxu1 %v136_v59  ;;  %v279_v58 = vld [vmem:[%s2046_s2 + $0x828] sm:$0xff]  ;;  %v281_v59 = vld [vmem:[%s2046_s2 + $0x838] sm:$0xff] }
  0x82   :  { %683 = vmatprep.subr.mxu0 %v123_v60  ;;  %760 = vmatprep.subr.mxu1 %v125_v61  ;;  %v278_v60 = vld [vmem:[%s2046_s2 + $0x820] sm:$0xff]  ;;  %v280_v61 = vld [vmem:[%s2046_s2 + $0x830] sm:$0xff] }
  0x83   :  { %890 = vset.pattern.permute.xlu0 %v891_v3  ;;  %684 = vmatpush1.msra.mxu0 %v122_v62  ;;  %v267_v62 = vld [vmem:[%s2046_s2 + $0x7c8] sm:$0xff]  ;;  %v257_v3 = vld [vmem:[%s2046_s2 + $0x778] sm:$0xff] }
  0x84   :  { %761 = vmatpush1.msra.mxu1 %v124_v63  ;;  %346 = vperm.xlu0 %890, %v342_v0   ;;  %v269_v63 = vld [vmem:[%s2046_s2 + $0x7d8] sm:$0xff]  ;;  %v266_v0 = vld [vmem:[%s2046_s2 + $0x7c0] sm:$0xff] }
  0x85   :  { %685 = vmatprep.subr.mxu0 %v111_v1  ;;  %762 = vmatprep.subr.mxu1 %v113_v2  ;;  %v268_v1 = vld [vmem:[%s2046_s2 + $0x7d0] sm:$0xff]  ;;  %v255_v2 = vld [vmem:[%s2046_s2 + $0x768] sm:$0xff] }
  0x86   :  { %686 = vmatpush1.msra.mxu0 %v110_v4  ;;  %763 = vmatpush1.msra.mxu1 %v112_v5  ;;  %v254_v4 = vld [vmem:[%s2046_s2 + $0x760] sm:$0xff]  ;;  %v256_v5 = vld [vmem:[%s2046_s2 + $0x770] sm:$0xff] }
  0x87   :  { %687 = vmatprep.subr.mxu0 %v99_v6  ;;  %764 = vmatprep.subr.mxu1 %v101_v7  ;;  %v243_v6 = vld [vmem:[%s2046_s2 + $0x708] sm:$0xff]  ;;  %v245_v7 = vld [vmem:[%s2046_s2 + $0x718] sm:$0xff] }
  0x88   :  { %688 = vmatpush1.msra.mxu0 %v98_v8  ;;  %765 = vmatpush1.msra.mxu1 %v100_v9  ;;  %v242_v8 = vld [vmem:[%s2046_s2 + $0x700] sm:$0xff]  ;;  %v244_v9 = vld [vmem:[%s2046_s2 + $0x710] sm:$0xff] }
  0x89   :  { %689 = vmatprep.subr.mxu0 %v87_v10  ;;  %766 = vmatprep.subr.mxu1 %v89_v11  ;;  %v231_v10 = vld [vmem:[%s2046_s2 + $0x6a8] sm:$0xff]  ;;  %v233_v11 = vld [vmem:[%s2046_s2 + $0x6b8] sm:$0xff] }
  0x8a   :  { %690 = vmatpush1.msra.mxu0 %v86_v12  ;;  %767 = vmatpush1.msra.mxu1 %v88_v13  ;;  %v230_v12 = vld [vmem:[%s2046_s2 + $0x6a0] sm:$0xff]  ;;  %v232_v13 = vld [vmem:[%s2046_s2 + $0x6b0] sm:$0xff] }
  0x8b   :  { %691 = vmatprep.subr.mxu0 %v75_v14  ;;  %768 = vmatprep.subr.mxu1 %v77_v15  ;;  %v219_v14 = vld [vmem:[%s2046_s2 + $0x648] sm:$0xff]  ;;  %v221_v15 = vld [vmem:[%s2046_s2 + $0x658] sm:$0xff] }
  0x8c   :  { %692 = vmatpush1.msra.mxu0 %v74_v17  ;;  %769 = vmatpush1.msra.mxu1 %v76_v18  ;;  %v218_v17 = vld [vmem:[%s2046_s2 + $0x640] sm:$0xff]  ;;  %v220_v18 = vld [vmem:[%s2046_s2 + $0x650] sm:$0xff] }
  0x8d   :  { %693 = vmatprep.subr.mxu0 %v63_v20  ;;  %770 = vmatprep.subr.mxu1 %v65_v21  ;;  %v343_v20 = vld [vmem:[%s2048_s1 + $0x8] sm:$0xf] }
  0x8e   :  { %694 = vmatpush1.msra.mxu0 %v62_v22  ;;  %771 = vmatpush1.msra.mxu1 %v64_v23 }
  0x8f   :  { %695 = vmatprep.subr.mxu0 %v51_v24  ;;  %772 = vmatprep.subr.mxu1 %v53_v25 }
  0x90   :  { %696 = vmatpush1.msra.mxu0 %v50_v26  ;;  %773 = vmatpush1.msra.mxu1 %v52_v27 }
  0x91   :  { %697 = vmatprep.subr.mxu0 %v39_v28  ;;  %774 = vmatprep.subr.mxu1 %v41_v29 }
  0x92   :  { %698 = vmatpush1.msra.mxu0 %v38_v30  ;;  %775 = vmatpush1.msra.mxu1 %v40_v31 }
  0x93   :  { %699 = vmatprep.subr.mxu0 %v27_v32  ;;  %776 = vmatprep.subr.mxu1 %v29_v33 }
  0x94   :  { %700 = vmatpush1.msra.mxu0 %v26_v34  ;;  %777 = vmatpush1.msra.mxu1 %v28_v35 }
  0x95   :  { %711 = vmatprep.subr.mxu0 %v339_v36  ;;  %788 = vmatprep.subr.mxu1 %v341_v37 }
  0x96   :  { %712 = vmatpush2.msra.mxu0 %v338_v38  ;;  %789 = vmatpush2.msra.mxu1 %v340_v39 }
  0x97   :  { %713 = vmatprep.subr.mxu0 %v327_v40  ;;  %790 = vmatprep.subr.mxu1 %v329_v41 }
  0x98   :  { %714 = vmatpush2.msra.mxu0 %v326_v42  ;;  %791 = vmatpush2.msra.mxu1 %v328_v44 }
  0x99   :  { %715 = vmatprep.subr.mxu0 %v315_v46  ;;  %792 = vmatprep.subr.mxu1 %v317_v47 }
  0x9a   :  { %716 = vmatpush2.msra.mxu0 %v314_v48  ;;  %793 = vmatpush2.msra.mxu1 %v316_v49 }
  0x9b   :  { %717 = vmatprep.subr.mxu0 %v303_v50  ;;  %794 = vmatprep.subr.mxu1 %v305_v51 }
  0x9c   :  { %718 = vmatpush2.msra.mxu0 %v302_v52  ;;  %795 = vmatpush2.msra.mxu1 %v304_v53 }
  0x9d   :  { %719 = vmatprep.subr.mxu0 %v291_v54  ;;  %796 = vmatprep.subr.mxu1 %v293_v55 }
  0x9e   :  { %720 = vmatpush2.msra.mxu0 %v290_v56  ;;  %797 = vmatpush2.msra.mxu1 %v292_v57 }
  0x9f   :  { %721 = vmatprep.subr.mxu0 %v279_v58  ;;  %798 = vmatprep.subr.mxu1 %v281_v59 }
  0xa0   :  { %722 = vmatpush2.msra.mxu0 %v278_v60  ;;  %799 = vmatpush2.msra.mxu1 %v280_v61 }
  0xa1   :  { %723 = vmatprep.subr.mxu0 %v267_v62  ;;  %800 = vmatprep.subr.mxu1 %v269_v63 }
  0xa2   :  { %724 = vmatpush2.msra.mxu0 %v266_v0  ;;  %801 = vmatpush2.msra.mxu1 %v268_v1 }
  0xa3   :  { %725 = vmatprep.subr.mxu0 %v255_v2  ;;  %802 = vmatprep.subr.mxu1 %v257_v3 }
  0xa4   :  { %882 = vmatprep.mubr.msk.f32.mxu0 %vm354_vm0, %v1543_v16  ;;  %884 = vmatprep.mubr.msk.f32.mxu1 %vm354_vm0, %v1543_v16 }
  0xa5   :  { %726 = vmatpush2.msra.mxu0 %v254_v4  ;;  %803 = vmatpush2.msra.mxu1 %v256_v5 }
  0xa6   :  { %586 = vmatmul.mubr.f32.gmra.mxu0 %v1554_v19  ;;  %663 = vmatmul.mubr.f32.gmra.mxu1 %v1554_v19 }
  0xa7   :  { %727 = vmatprep.subr.mxu0 %v243_v6  ;;  %804 = vmatprep.subr.mxu1 %v245_v7 }
  0xa8   :  { %728 = vmatpush2.msra.mxu0 %v242_v8  ;;  %805 = vmatpush2.msra.mxu1 %v244_v9 }
  0xa9   :  { %729 = vmatprep.subr.mxu0 %v231_v10  ;;  %806 = vmatprep.subr.mxu1 %v233_v11 }
  0xaa   :  { %730 = vmatpush2.msra.mxu0 %v230_v12  ;;  %807 = vmatpush2.msra.mxu1 %v232_v13 }
  0xab   :  { %731 = vmatprep.subr.mxu0 %v219_v14  ;;  %808 = vmatprep.subr.mxu1 %v221_v15 }
  0xac   :  { %732 = vmatpush2.msra.mxu0 %v218_v17  ;;  %885 = vmatprep.mubr.msk.f32.mxu0 %vm354_vm0, %v1236_v43 }
  0xad   :  { %809 = vmatpush2.msra.mxu1 %v220_v18  ;;  %887 = vmatprep.mubr.msk.f32.mxu1 %vm354_vm0, %v1236_v43 }
  0xae   :  { %734 = vmatmul.mubr.f32.vlgmr.msra.gmra.mxu0 %v1244_v45  ;;  %811 = vmatmul.mubr.f32.vlgmr.msra.gmra.mxu1 %v1244_v45 }
  0xaf   :  { %886 = vmatprep.mubr.msk.f32.mxu0 %vm354_vm0, %v1543_v16  ;;  %888 = vmatprep.mubr.msk.f32.mxu1 %vm354_vm0, %v1543_v16 }
  0xb0   :  { %351 = vperm.xlu0 %890, %v343_v20  }
  0xb2   :  { %740 = vmatmul.mubr.f32.gmra.mxu0 %v1554_v19  ;;  %817 = vmatmul.mubr.f32.gmra.mxu1 %v1554_v19 }
  0xf9   :  { %v427_v43 = vpop.f32.mrf.mxu0  ;;  %v504_v21 = vpop.f32.mrf.mxu1 }
  0xfb   :  { %v429_v22 = vpop.f32.mrf.mxu0  ;;  %v506_v23 = vpop.f32.mrf.mxu1 }
  0xff   :  { %v1946_v24 = vpop.permute.xlu0 %346 }
 0x100   :  { %v428_v25 = vadd.f32 %v427_v43, %v1946_v24  ;;  %v505_v45 = vadd.f32 %v504_v21, %v1946_v24  ;;  %v430_v26 = vadd.f32 %v429_v22, %v1946_v24  ;;  %v507_v27 = vadd.f32 %v506_v23, %v1946_v24 }
 0x102   :  { %v823_v16 = vmax.f32 %v428_v25, 0.0  ;;  %v825_v28 = vmax.f32 %v505_v45, 0.0  ;;  %v824_v29 = vmax.f32 %v430_v26, 0.0  ;;  %v826_v30 = vmax.f32 %v507_v27, 0.0 }
 0x104   :  { %847 = vst [vmem:[%s2049_s3] sm:$0xff] %v823_v16  ;;  %849 = vst [vmem:[%s2049_s3 + $0x10] sm:$0xff] %v825_v28 }
 0x105   :  { %848 = vst [vmem:[%s2049_s3 + $0x8] sm:$0xff] %v824_v29  ;;  %850 = vst [vmem:[%s2049_s3 + $0x18] sm:$0xff] %v826_v30 }
 0x12b   :  { %v1964_v19 = vpop.permute.xlu0 %351 }
 0x12c   :  { %v433_v31 = vpop.f32.mrf.mxu0  ;;  %v510_v32 = vpop.f32.mrf.mxu1 }
 0x12d   :  { %v434_v33 = vadd.f32 %v433_v31, %v1964_v19  ;;  %v511_v34 = vadd.f32 %v510_v32, %v1964_v19 }
 0x12e   :  { %v435_v35 = vpop.f32.mrf.mxu0  ;;  %v512_v36 = vpop.f32.mrf.mxu1 }
 0x12f   :  { %v835_v37 = vmax.f32 %v434_v33, 0.0  ;;  %v837_v38 = vmax.f32 %v511_v34, 0.0  ;;  %v436_v39 = vadd.f32 %v435_v35, %v1964_v19  ;;  %v513_v40 = vadd.f32 %v512_v36, %v1964_v19 }
 0x131   :  { %860 = vst [vmem:[%s2049_s3 + $0x60] sm:$0xf] %v835_v37  ;;  %862 = vst [vmem:[%s2049_s3 + $0x70] sm:$0xf] %v837_v38  ;;  %v836_v41 = vmax.f32 %v436_v39, 0.0  ;;  %v838_v42 = vmax.f32 %v513_v40, 0.0 }
 0x133   :  { %861 = vst [vmem:[%s2049_s3 + $0x68] sm:$0xf] %v836_v41  ;;  %863 = vst [vmem:[%s2049_s3 + $0x78] sm:$0xf] %v838_v42  ;;  %v581_v44 = vpop.f32.mrf.mxu0  ;;  %v658_v46 = vpop.f32.mrf.mxu1 }
 0x134   :  { %v582_v47 = vadd.f32 %v581_v44, %v1946_v24  ;;  %v659_v48 = vadd.f32 %v658_v46, %v1946_v24 }
 0x135   :  { %v583_v49 = vpop.f32.mrf.mxu0  ;;  %v660_v50 = vpop.f32.mrf.mxu1 }
 0x136   :  { %v827_v51 = vmax.f32 %v582_v47, 0.0  ;;  %v829_v52 = vmax.f32 %v659_v48, 0.0  ;;  %v584_v53 = vadd.f32 %v583_v49, %v1946_v24  ;;  %v661_v54 = vadd.f32 %v660_v50, %v1946_v24 }
 0x138   :  { %851 = vst [vmem:[%s2049_s3 + $0x20] sm:$0xff] %v827_v51  ;;  %853 = vst [vmem:[%s2049_s3 + $0x30] sm:$0xff] %v829_v52  ;;  %v828_v55 = vmax.f32 %v584_v53, 0.0  ;;  %v830_v56 = vmax.f32 %v661_v54, 0.0 }
 0x13a   :  { %852 = vst [vmem:[%s2049_s3 + $0x28] sm:$0xff] %v828_v55  ;;  %854 = vst [vmem:[%s2049_s3 + $0x38] sm:$0xff] %v830_v56 }
 0x166   :  { %v587_v57 = vpop.f32.mrf.mxu0  ;;  %v664_v58 = vpop.f32.mrf.mxu1 }
 0x167   :  { %v588_v59 = vadd.f32 %v587_v57, %v1964_v19  ;;  %v665_v60 = vadd.f32 %v664_v58, %v1964_v19 }
 0x168   :  { %v589_v61 = vpop.f32.mrf.mxu0  ;;  %v666_v62 = vpop.f32.mrf.mxu1 }
 0x169   :  { %v839_v63 = vmax.f32 %v588_v59, 0.0  ;;  %v841_v0 = vmax.f32 %v665_v60, 0.0  ;;  %v590_v1 = vadd.f32 %v589_v61, %v1964_v19  ;;  %v667_v2 = vadd.f32 %v666_v62, %v1964_v19 }
 0x16b   :  { %864 = vst [vmem:[%s2049_s3 + $0x80] sm:$0xf] %v839_v63  ;;  %866 = vst [vmem:[%s2049_s3 + $0x90] sm:$0xf] %v841_v0  ;;  %v840_v3 = vmax.f32 %v590_v1, 0.0  ;;  %v842_v4 = vmax.f32 %v667_v2, 0.0 }
 0x16d   :  { %865 = vst [vmem:[%s2049_s3 + $0x88] sm:$0xf] %v840_v3  ;;  %867 = vst [vmem:[%s2049_s3 + $0x98] sm:$0xf] %v842_v4 }
 0x16e   :  { %v735_v5 = vpop.f32.mrf.mxu0  ;;  %v812_v6 = vpop.f32.mrf.mxu1 }
 0x16f   :  { %v736_v7 = vadd.f32 %v735_v5, %v1946_v24  ;;  %v813_v8 = vadd.f32 %v812_v6, %v1946_v24 }
 0x170   :  { %v737_v9 = vpop.f32.mrf.mxu0  ;;  %v814_v10 = vpop.f32.mrf.mxu1 }
 0x171   :  { %v831_v11 = vmax.f32 %v736_v7, 0.0  ;;  %v833_v12 = vmax.f32 %v813_v8, 0.0  ;;  %v738_v13 = vadd.f32 %v737_v9, %v1946_v24  ;;  %v815_v14 = vadd.f32 %v814_v10, %v1946_v24 }
 0x172   :  { %v741_v15 = vpop.f32.mrf.mxu0  ;;  %v818_v17 = vpop.f32.mrf.mxu1 }
 0x173   :  { %855 = vst [vmem:[%s2049_s3 + $0x40] sm:$0xff] %v831_v11  ;;  %857 = vst [vmem:[%s2049_s3 + $0x50] sm:$0xff] %v833_v12  ;;  %v832_v18 = vmax.f32 %v738_v13, 0.0  ;;  %v834_v20 = vmax.f32 %v815_v14, 0.0  ;;  %v742_v43 = vadd.f32 %v741_v15, %v1964_v19  ;;  %v819_v21 = vadd.f32 %v818_v17, %v1964_v19 }
 0x174   :  { %v743_v22 = vpop.f32.mrf.mxu0  ;;  %v820_v23 = vpop.f32.mrf.mxu1 }
 0x175   :  { %856 = vst [vmem:[%s2049_s3 + $0x48] sm:$0xff] %v832_v18  ;;  %859 = vst.msk [vmem:[%s2049_s3 + $0x58] sm:$0xff] %vm858_vm1, %v834_v20  ;;  %v843_v24 = vmax.f32 %v742_v43, 0.0  ;;  %v845_v25 = vmax.f32 %v819_v21, 0.0  ;;  %v744_v45 = vadd.f32 %v743_v22, %v1964_v19  ;;  %v821_v26 = vadd.f32 %v820_v23, %v1964_v19 }
 0x177   :  { %868 = vst [vmem:[%s2049_s3 + $0xa0] sm:$0xf] %v843_v24  ;;  %870 = vst [vmem:[%s2049_s3 + $0xb0] sm:$0xf] %v845_v25  ;;  %v844_v27 = vmax.f32 %v744_v45, 0.0  ;;  %v846_v16 = vmax.f32 %v821_v26, 0.0 }
 0x179   :  { %869 = vst [vmem:[%s2049_s3 + $0xa8] sm:$0xf] %v844_v27  ;;  %872 = vst.msk [vmem:[%s2049_s3 + $0xb8] sm:$0xf] %vm871_vm2, %v846_v16 }

// kernel: pinno_forward.6
= control target key start
LH: loop header
LB: loop body
LE: loop exit
PB: predicated region body
PF: predicated region fallthrough
CT: control target
= control target key end

     0   :  { %v326_v0 = vmov 0.0   ;;  %v327_v4 = vmov 0   ;;  %vm98_vm0 = vcmask 392192   ;;  %s591_s2 = inlined_call_operand.vmem [shape: f32[432,128], index: 2, kind: input, shape index: {}]   ;;  %s592_s0 = inlined_call_operand.vmem [shape: f32[24,432], index: 0, kind: input, shape index: {}]   ;;  %s593_s1 = inlined_call_operand.vmem [shape: f32[24,1], index: 1, kind: input, shape index: {}]   ;;  %s594_s3 = inlined_call_operand.vmem [shape: f32[24,128], index: 3, kind: output, shape index: {}]  }
   0x1   :  { %188 = vmatprep.subr.mxu1 %v326_v0  ;;  %v73_v1 = vld [vmem:[%s591_s2 + $0x178] sm:$0xff]  ;;  %v72_v2 = vld [vmem:[%s591_s2 + $0x170] sm:$0xff]  ;;  %324 = vset.pattern.permute.xlu0 %v327_v4  ;;  %v71_v7 = vld [vmem:[%s591_s2 + $0x168] sm:$0xff] }
   0x2   :  { %v57_v3 = vld [vmem:[%s591_s2 + $0xf8] sm:$0xff]  ;;  %189 = vmatpush1.msra.mxu1 %v73_v1  ;;  %v56_v6 = vld [vmem:[%s591_s2 + $0xf0] sm:$0xff]  ;;  %v55_v9 = vld [vmem:[%s591_s2 + $0xe8] sm:$0xff]  ;;  %325 = vset.pattern.permute.xlu1 %v327_v4 }
   0x3   :  { %281 = vmatprep.subr.mxu0 %v57_v3  ;;  %v41_v5 = vld [vmem:[%s591_s2 + $0x78] sm:$0xff]  ;;  %190 = vmatprep.subr.mxu1 %v326_v0  ;;  %v40_v8 = vld [vmem:[%s591_s2 + $0x70] sm:$0xff]  ;;  %v39_v10 = vld [vmem:[%s591_s2 + $0x68] sm:$0xff] }
   0x4   :  { %282 = vmatpush3.msra.mxu0 %v41_v5  ;;  %191 = vmatpush1.msra.mxu1 %v72_v2  ;;  %v70_v11 = vld [vmem:[%s591_s2 + $0x160] sm:$0xff]  ;;  %v69_v14 = vld [vmem:[%s591_s2 + $0x158] sm:$0xff]  ;;  %v68_v17 = vld [vmem:[%s591_s2 + $0x150] sm:$0xff] }
   0x5   :  { %283 = vmatprep.subr.mxu0 %v56_v6  ;;  %192 = vmatprep.subr.mxu1 %v326_v0  ;;  %v54_v12 = vld [vmem:[%s591_s2 + $0xe0] sm:$0xff]  ;;  %v53_v15 = vld [vmem:[%s591_s2 + $0xd8] sm:$0xff]  ;;  %v52_v18 = vld [vmem:[%s591_s2 + $0xd0] sm:$0xff] }
   0x6   :  { %284 = vmatpush3.msra.mxu0 %v40_v8  ;;  %193 = vmatpush1.msra.mxu1 %v71_v7  ;;  %v38_v13 = vld [vmem:[%s591_s2 + $0x60] sm:$0xff]  ;;  %v37_v16 = vld [vmem:[%s591_s2 + $0x58] sm:$0xff]  ;;  %v36_v19 = vld [vmem:[%s591_s2 + $0x50] sm:$0xff] }
   0x7   :  { %285 = vmatprep.subr.mxu0 %v55_v9  ;;  %194 = vmatprep.subr.mxu1 %v326_v0  ;;  %v67_v20 = vld [vmem:[%s591_s2 + $0x148] sm:$0xff]  ;;  %v66_v23 = vld [vmem:[%s591_s2 + $0x140] sm:$0xff]  ;;  %v65_v26 = vld [vmem:[%s591_s2 + $0x138] sm:$0xff] }
   0x8   :  { %286 = vmatpush3.msra.mxu0 %v39_v10  ;;  %195 = vmatpush1.msra.mxu1 %v70_v11  ;;  %v51_v21 = vld [vmem:[%s591_s2 + $0xc8] sm:$0xff]  ;;  %v50_v24 = vld [vmem:[%s591_s2 + $0xc0] sm:$0xff]  ;;  %v49_v27 = vld [vmem:[%s591_s2 + $0xb8] sm:$0xff] }
   0x9   :  { %287 = vmatprep.subr.mxu0 %v54_v12  ;;  %196 = vmatprep.subr.mxu1 %v326_v0  ;;  %v35_v22 = vld [vmem:[%s591_s2 + $0x48] sm:$0xff]  ;;  %v34_v25 = vld [vmem:[%s591_s2 + $0x40] sm:$0xff]  ;;  %v33_v28 = vld [vmem:[%s591_s2 + $0x38] sm:$0xff] }
   0xa   :  { %288 = vmatpush3.msra.mxu0 %v38_v13  ;;  %197 = vmatpush1.msra.mxu1 %v69_v14  ;;  %v64_v29 = vld [vmem:[%s591_s2 + $0x130] sm:$0xff]  ;;  %v63_v32 = vld [vmem:[%s591_s2 + $0x128] sm:$0xff]  ;;  %v62_v35 = vld [vmem:[%s591_s2 + $0x120] sm:$0xff] }
   0xb   :  { %289 = vmatprep.subr.mxu0 %v53_v15  ;;  %198 = vmatprep.subr.mxu1 %v326_v0  ;;  %v48_v30 = vld [vmem:[%s591_s2 + $0xb0] sm:$0xff]  ;;  %v47_v33 = vld [vmem:[%s591_s2 + $0xa8] sm:$0xff]  ;;  %v46_v36 = vld [vmem:[%s591_s2 + $0xa0] sm:$0xff] }
   0xc   :  { %290 = vmatpush3.msra.mxu0 %v37_v16  ;;  %199 = vmatpush1.msra.mxu1 %v68_v17  ;;  %v32_v31 = vld [vmem:[%s591_s2 + $0x30] sm:$0xff]  ;;  %v31_v34 = vld [vmem:[%s591_s2 + $0x28] sm:$0xff]  ;;  %v30_v37 = vld [vmem:[%s591_s2 + $0x20] sm:$0xff] }
   0xd   :  { %291 = vmatprep.subr.mxu0 %v52_v18  ;;  %200 = vmatprep.subr.mxu1 %v326_v0  ;;  %v61_v38 = vld [vmem:[%s591_s2 + $0x118] sm:$0xff]  ;;  %v60_v41 = vld [vmem:[%s591_s2 + $0x110] sm:$0xff]  ;;  %v59_v44 = vld [vmem:[%s591_s2 + $0x108] sm:$0xff] }
   0xe   :  { %292 = vmatpush3.msra.mxu0 %v36_v19  ;;  %201 = vmatpush1.msra.mxu1 %v67_v20  ;;  %v45_v39 = vld [vmem:[%s591_s2 + $0x98] sm:$0xff]  ;;  %v44_v42 = vld [vmem:[%s591_s2 + $0x90] sm:$0xff]  ;;  %v43_v45 = vld [vmem:[%s591_s2 + $0x88] sm:$0xff] }
   0xf   :  { %293 = vmatprep.subr.mxu0 %v51_v21  ;;  %202 = vmatprep.subr.mxu1 %v326_v0  ;;  %v29_v40 = vld [vmem:[%s591_s2 + $0x18] sm:$0xff]  ;;  %v28_v43 = vld [vmem:[%s591_s2 + $0x10] sm:$0xff]  ;;  %v27_v46 = vld [vmem:[%s591_s2 + $0x8] sm:$0xff] }
  0x10   :  { %294 = vmatpush3.msra.mxu0 %v35_v22  ;;  %203 = vmatpush1.msra.mxu1 %v66_v23  ;;  %v58_v47 = vld [vmem:[%s591_s2 + $0x100] sm:$0xff]  ;;  %v79_v50 = vld [vmem:[%s591_s2 + $0x1a8] sm:$0xff]  ;;  %v17_v55 = vld [vmem:[%s592_s0 + $0x18] sm:$0xff] }
  0x11   :  { %295 = vmatprep.subr.mxu0 %v50_v24  ;;  %204 = vmatprep.subr.mxu1 %v326_v0  ;;  %v42_v48 = vld [vmem:[%s591_s2 + $0x80] sm:$0xff]  ;;  %v15_v51 = vld [vmem:[%s592_s0 + $0x8] sm:$0xff]  ;;  %v77_v56 = vld [vmem:[%s591_s2 + $0x198] sm:$0xff] }
  0x12   :  { %296 = vmatpush3.msra.mxu0 %v34_v25  ;;  %205 = vmatpush1.msra.mxu1 %v65_v26  ;;  %v26_v49 = vld [vmem:[%s591_s2] sm:$0xff]  ;;  %v19_v54 = vld [vmem:[%s592_s0 + $0x28] sm:$0xff]  ;;  %v76_v59 = vld [vmem:[%s591_s2 + $0x190] sm:$0xff] }
  0x13   :  { %297 = vmatprep.subr.mxu0 %v49_v27  ;;  %206 = vmatprep.subr.mxu1 %v326_v0  ;;  %v14_v52 = vld [vmem:[%s592_s0] sm:$0xff]  ;;  %v23_v60 = vld [vmem:[%s592_s0 + $0x48] sm:$0xff]  ;;  %v82_v2 = vld [vmem:[%s593_s1 + $0x10] sm:$0xff] }
  0x14   :  { %298 = vmatpush3.msra.mxu0 %v33_v28  ;;  %207 = vmatpush1.msra.mxu1 %v64_v29  ;;  %v78_v53 = vld [vmem:[%s591_s2 + $0x1a0] sm:$0xff]  ;;  %v75_v61 = vld [vmem:[%s591_s2 + $0x188] sm:$0xff]  ;;  %v16_v3 = vld [vmem:[%s592_s0 + $0x10] sm:$0xff] }
  0x15   :  { %299 = vmatprep.subr.mxu0 %v48_v30  ;;  %208 = vmatprep.subr.mxu1 %v326_v0  ;;  %v80_v57 = vld [vmem:[%s593_s1] sm:$0xff]  ;;  %v81_v62 = vld [vmem:[%s593_s1 + $0x8] sm:$0xff]  ;;  %v21_v5 = vld [vmem:[%s592_s0 + $0x38] sm:$0xff] }
  0x16   :  { %300 = vmatpush3.msra.mxu0 %v32_v31  ;;  %209 = vmatpush1.msra.mxu1 %v63_v32  ;;  %v18_v58 = vld [vmem:[%s592_s0 + $0x20] sm:$0xff]  ;;  %v20_v4 = vld [vmem:[%s592_s0 + $0x30] sm:$0xff]  ;;  %v25_v6 = vld [vmem:[%s592_s0 + $0x58] sm:$0xff] }
  0x17   :  { %301 = vmatprep.subr.mxu0 %v47_v33  ;;  %210 = vmatprep.subr.mxu1 %v326_v0  ;;  %v22_v63 = vld [vmem:[%s592_s0 + $0x40] sm:$0xff] }
  0x18   :  { %302 = vmatpush3.msra.mxu0 %v31_v34  ;;  %211 = vmatpush1.msra.mxu1 %v62_v35  ;;  %v74_v1 = vld [vmem:[%s591_s2 + $0x180] sm:$0xff] }
  0x19   :  { %303 = vmatprep.subr.mxu0 %v46_v36  ;;  %212 = vmatprep.subr.mxu1 %v326_v0 }
  0x1a   :  { %304 = vmatpush3.msra.mxu0 %v30_v37  ;;  %213 = vmatpush1.msra.mxu1 %v61_v38 }
  0x1b   :  { %305 = vmatprep.subr.mxu0 %v45_v39  ;;  %214 = vmatprep.subr.mxu1 %v326_v0 }
  0x1c   :  { %306 = vmatpush3.msra.mxu0 %v29_v40  ;;  %215 = vmatpush1.msra.mxu1 %v60_v41 }
  0x1d   :  { %307 = vmatprep.subr.mxu0 %v44_v42  ;;  %216 = vmatprep.subr.mxu1 %v326_v0 }
  0x1e   :  { %308 = vmatpush3.msra.mxu0 %v28_v43  ;;  %217 = vmatpush1.msra.mxu1 %v59_v44 }
  0x1f   :  { %309 = vmatprep.subr.mxu0 %v43_v45  ;;  %218 = vmatprep.subr.mxu1 %v326_v0 }
  0x20   :  { %310 = vmatpush3.msra.mxu0 %v27_v46  ;;  %219 = vmatpush1.msra.mxu1 %v58_v47 }
  0x21   :  { %311 = vmatprep.subr.mxu0 %v42_v48  ;;  %240 = vmatprep.subr.mxu1 %v326_v0 }
  0x22   :  { %312 = vmatpush3.msra.mxu0 %v26_v49  ;;  %241 = vmatpush2.msra.mxu1 %v79_v50 }
  0x23   :  { %172 = vmatprep.mubr.f32.mxu0 %v15_v51  ;;  %242 = vmatprep.subr.mxu1 %v326_v0 }
  0x24   :  { %173 = vmatmul.mubr.f32.vlgmr.msra.gmra.mxu0 %v14_v52  ;;  %243 = vmatpush2.msra.mxu1 %v78_v53 }
  0x25   :  { %177 = vmatprep.mubr.f32.mxu0 %v19_v54  ;;  %244 = vmatprep.subr.mxu1 %v326_v0 }
  0x26   :  { %278 = vmatprep.mubr.msk.f32.mxu1 %vm98_vm0, %v17_v55  ;;  %245 = vmatpush2.msra.mxu1 %v77_v56 }
  0x27   :  { %85 = vperm.xlu0 %324, %v80_v57   ;;  %246 = vmatprep.subr.mxu1 %v326_v0 }
  0x28   :  { %178 = vmatmul.mubr.f32.gmra.mxu0 %v18_v58  ;;  %247 = vmatpush2.msra.mxu1 %v76_v59 }
  0x29   :  { %182 = vmatprep.mubr.f32.mxu0 %v23_v60  ;;  %248 = vmatprep.subr.mxu1 %v326_v0 }
  0x2a   :  { %249 = vmatpush2.msra.mxu1 %v75_v61  ;;  %95 = vperm.xlu1 %325, %v82_v2  }
  0x2b   :  { %90 = vperm.xlu0 %324, %v81_v62   ;;  %250 = vmatprep.subr.mxu1 %v326_v0  ;;  %v24_v0 = vld [vmem:[%s592_s0 + $0x50] sm:$0xff] }
  0x2c   :  { %183 = vmatmul.mubr.f32.gmra.mxu0 %v22_v63  ;;  %251 = vmatpush2.msra.mxu1 %v74_v1 }
  0x2d   :  { %253 = vmatmul.mubr.f32.vlgmr.msra.gmra.mxu1 %v16_v3 }
  0x2e   :  { %279 = vmatprep.mubr.msk.f32.mxu1 %vm98_vm0, %v21_v5 }
  0x31   :  { %258 = vmatmul.mubr.f32.gmra.mxu1 %v20_v4 }
  0x32   :  { %280 = vmatprep.mubr.msk.f32.mxu1 %vm98_vm0, %v25_v6 }
  0x35   :  { %263 = vmatmul.mubr.f32.gmra.mxu1 %v24_v0 }
  0xa2   :  { %v86_v9 = vpop.permute.xlu0 %85 }
  0xa5   :  { %v96_v24 = vpop.permute.xlu1 %95 }
  0xa6   :  { %v91_v16 = vpop.permute.xlu0 %90 }
  0xe4   :  { %v313_v7 = vpop.f32.mrf.mxu0 }
  0xe6   :  { %v314_v8 = vpop.f32.mrf.mxu0 }
  0xe7   :  { %v315_v11 = vadd.f32 %v314_v8, %v313_v7 }
  0xe8   :  { %v316_v10 = vpop.f32.mrf.mxu0 }
  0xe9   :  { %v175_v14 = vadd.f32 %v315_v11, %v86_v9 }
  0xea   :  { %v317_v12 = vpop.f32.mrf.mxu0 }
  0xeb   :  { %v318_v15 = vadd.f32 %v317_v12, %v316_v10 }
  0xec   :  { %v319_v13 = vpop.f32.mrf.mxu0 }
  0xed   :  { %v254_v17 = vpop.f32.mrf.mxu1  ;;  %v180_v21 = vadd.f32 %v318_v15, %v91_v16 }
  0xee   :  { %v320_v18 = vpop.f32.mrf.mxu0  ;;  %v255_v19 = vadd.f32 %v254_v17, %v175_v14 }
  0xef   :  { %v256_v20 = vpop.f32.mrf.mxu1  ;;  %v321_v23 = vadd.f32 %v320_v18, %v319_v13 }
  0xf0   :  { %v268_v22 = vmax.f32 %v255_v19, 0.0 }
  0xf1   :  { %v259_v25 = vpop.f32.mrf.mxu1  ;;  %v185_v28 = vadd.f32 %v321_v23, %v96_v24 }
  0xf2   :  { %271 = vst [vmem:[%s594_s3] sm:$0xff] %v268_v22  ;;  %v260_v26 = vadd.f32 %v259_v25, %v180_v21 }
  0xf3   :  { %v261_v27 = vpop.f32.mrf.mxu1 }
  0xf4   :  { %v269_v29 = vmax.f32 %v260_v26, 0.0 }
  0xf5   :  { %v264_v30 = vpop.f32.mrf.mxu1 }
  0xf6   :  { %272 = vst [vmem:[%s594_s3 + $0x8] sm:$0xff] %v269_v29  ;;  %v265_v31 = vadd.f32 %v264_v30, %v185_v28 }
  0xf7   :  { %v266_v32 = vpop.f32.mrf.mxu1 }
  0xf8   :  { %v270_v33 = vmax.f32 %v265_v31, 0.0 }
  0xfa   :  { %273 = vst [vmem:[%s594_s3 + $0x10] sm:$0xff] %v270_v33 }

// kernel: pinno_forward.7
= control target key start
LH: loop header
LB: loop body
LE: loop exit
PB: predicated region body
PF: predicated region fallthrough
CT: control target
= control target key end

     0   :  { %s3785_s0 = inlined_call_operand.vmem [shape: f32[1536,2], index: 0, kind: input, shape index: {}]   ;;  %s3786_s1 = inlined_call_operand.vmem [shape: f32[3,2], index: 1, kind: input, shape index: {}]   ;;  %s3787_s2 = inlined_call_operand.vmem [shape: f32[48,1536], index: 2, kind: input, shape index: {}]   ;;  %s3788_s3 = inlined_call_operand.vmem [shape: f32[48,1], index: 3, kind: input, shape index: {}]   ;;  %s3789_s4 = inlined_call_operand.vmem [shape: f32[32,48], index: 4, kind: input, shape index: {}]   ;;  %s3790_s5 = inlined_call_operand.vmem [shape: f32[32,3], index: 5, kind: input, shape index: {}]   ;;  %s3791_s6 = inlined_call_operand.vmem [shape: f32[32,1], index: 6, kind: input, shape index: {}]   ;;  %s3792_s7 = inlined_call_operand.vmem [shape: f32[32,32], index: 7, kind: input, shape index: {}]   ;;  %s3793_s8 = inlined_call_operand.vmem [shape: f32[32,1], index: 8, kind: input, shape index: {}]   ;;  %s3794_s9 = inlined_call_operand.vmem [shape: f32[32,32], index: 9, kind: input, shape index: {}]   ;;  %s3795_s10 = inlined_call_operand.vmem [shape: f32[32,1], index: 10, kind: input, shape index: {}]   ;;  %s3796_s11 = inlined_call_operand.vmem [shape: f32[32,1], index: 11, kind: input, shape index: {}]   ;;  %s3797_s12 = inlined_call_operand.vmem [shape: f32[32,1], index: 12, kind: input, shape index: {}]   ;;  %s3798_s13 = inlined_call_operand.vmem [shape: f32[32,32], index: 13, kind: input, shape index: {}]   ;;  %s3799_s14 = inlined_call_operand.vmem [shape: f32[32,1], index: 14, kind: input, shape index: {}]   ;;  %s3800_s15 = inlined_call_operand.vmem [shape: f32[32,32], index: 15, kind: input, shape index: {}]   ;;  %s3801_s16 = inlined_call_operand.vmem [shape: f32[32,1], index: 16, kind: input, shape index: {}]   ;;  %s3802_s17 = inlined_call_operand.vmem [shape: f32[32,1], index: 17, kind: input, shape index: {}]   ;;  %s3803_s18 = inlined_call_operand.vmem [shape: f32[32,1], index: 18, kind: input, shape index: {}]   ;;  %s3804_s19 = inlined_call_operand.vmem [shape: f32[1,32], index: 19, kind: input, shape index: {}]   ;;  %s3805_s20 = inlined_call_operand.<no memory space> [shape: f32[1,1], index: 20, kind: input, shape index: {}]   ;;  %s3806_s21 = inlined_call_operand.hbm [shape: f32[1,2], index: 21, kind: output, shape index: {}]  }
   0x1   :  { %3812 = sst [smem:[#allocation11_spill]] %s3785_s0  ;;  %v26_v0 = vstv %s3805_s20 }
   0x2   :  { %3813 = sst [smem:[#allocation12_spill]] %s3786_s1  ;;  %27 = vst [vmem:[#allocation2] sm:$0x1] %v26_v0 }
   0x3   :  { %3814 = sst [smem:[#allocation13_spill]] %s3787_s2 }
   0x4   :  { %3815 = sst [smem:[#allocation14_spill]] %s3788_s3 }
   0x5   :  { %3816 = sst [smem:[#allocation15_spill]] %s3789_s4 }
   0x6   :  { %3817 = sst [smem:[#allocation16_spill]] %s3790_s5 }
   0x7   :  { %s3818_s3 = sld [smem:[#allocation11_spill]] }
   0x8   :  { %s3819_s20 = sld [smem:[#allocation13_spill]] }
   0xd   :  { %v174_v1 = vld [vmem:[%s3818_s3 + $0xf8] sm:$0xff]  ;;  %v173_v5 = vld [vmem:[%s3818_s3 + $0xf0] sm:$0xff]  ;;  %v172_v9 = vld [vmem:[%s3818_s3 + $0xe8] sm:$0xff] }
   0xe   :  { %v206_v2 = vld [vmem:[%s3818_s3 + $0x1f8] sm:$0xff]  ;;  %2023 = vmatprep.subr.mxu0 %v174_v1  ;;  %v205_v6 = vld [vmem:[%s3818_s3 + $0x1f0] sm:$0xff]  ;;  %v204_v10 = vld [vmem:[%s3818_s3 + $0x1e8] sm:$0xff] }
   0xf   :  { %v158_v3 = vld [vmem:[%s3818_s3 + $0x78] sm:$0xff]  ;;  %2073 = vmatprep.subr.mxu1 %v206_v2  ;;  %v157_v7 = vld [vmem:[%s3818_s3 + $0x70] sm:$0xff]  ;;  %v156_v11 = vld [vmem:[%s3818_s3 + $0x68] sm:$0xff] }
  0x10   :  { %v190_v4 = vld [vmem:[%s3818_s3 + $0x178] sm:$0xff]  ;;  %2024 = vmatpush3.msra.mxu0 %v158_v3  ;;  %v189_v8 = vld [vmem:[%s3818_s3 + $0x170] sm:$0xff]  ;;  %v188_v12 = vld [vmem:[%s3818_s3 + $0x168] sm:$0xff] }
  0x11   :  { %2074 = vmatpush3.msra.mxu1 %v190_v4  ;;  %2025 = vmatprep.subr.mxu0 %v173_v5  ;;  %v171_v13 = vld [vmem:[%s3818_s3 + $0xe0] sm:$0xff]  ;;  %v170_v17 = vld [vmem:[%s3818_s3 + $0xd8] sm:$0xff]  ;;  %v169_v21 = vld [vmem:[%s3818_s3 + $0xd0] sm:$0xff] }
  0x12   :  { %2075 = vmatprep.subr.mxu1 %v205_v6  ;;  %2026 = vmatpush3.msra.mxu0 %v157_v7  ;;  %v203_v14 = vld [vmem:[%s3818_s3 + $0x1e0] sm:$0xff]  ;;  %v202_v18 = vld [vmem:[%s3818_s3 + $0x1d8] sm:$0xff]  ;;  %v201_v22 = vld [vmem:[%s3818_s3 + $0x1d0] sm:$0xff] }
  0x13   :  { %2076 = vmatpush3.msra.mxu1 %v189_v8  ;;  %2027 = vmatprep.subr.mxu0 %v172_v9  ;;  %v155_v15 = vld [vmem:[%s3818_s3 + $0x60] sm:$0xff]  ;;  %v154_v19 = vld [vmem:[%s3818_s3 + $0x58] sm:$0xff]  ;;  %v153_v23 = vld [vmem:[%s3818_s3 + $0x50] sm:$0xff] }
  0x14   :  { %2077 = vmatprep.subr.mxu1 %v204_v10  ;;  %v187_v16 = vld [vmem:[%s3818_s3 + $0x160] sm:$0xff]  ;;  %2028 = vmatpush3.msra.mxu0 %v156_v11  ;;  %v186_v20 = vld [vmem:[%s3818_s3 + $0x158] sm:$0xff]  ;;  %v185_v24 = vld [vmem:[%s3818_s3 + $0x150] sm:$0xff] }
  0x15   :  { %2078 = vmatpush3.msra.mxu1 %v188_v12  ;;  %2029 = vmatprep.subr.mxu0 %v171_v13  ;;  %v168_v25 = vld [vmem:[%s3818_s3 + $0xc8] sm:$0xff]  ;;  %v167_v29 = vld [vmem:[%s3818_s3 + $0xc0] sm:$0xff]  ;;  %v166_v33 = vld [vmem:[%s3818_s3 + $0xb8] sm:$0xff] }
  0x16   :  { %2079 = vmatprep.subr.mxu1 %v203_v14  ;;  %2030 = vmatpush3.msra.mxu0 %v155_v15  ;;  %v200_v26 = vld [vmem:[%s3818_s3 + $0x1c8] sm:$0xff]  ;;  %v199_v30 = vld [vmem:[%s3818_s3 + $0x1c0] sm:$0xff]  ;;  %v198_v34 = vld [vmem:[%s3818_s3 + $0x1b8] sm:$0xff] }
  0x17   :  { %2080 = vmatpush3.msra.mxu1 %v187_v16  ;;  %2031 = vmatprep.subr.mxu0 %v170_v17  ;;  %v152_v27 = vld [vmem:[%s3818_s3 + $0x48] sm:$0xff]  ;;  %v151_v31 = vld [vmem:[%s3818_s3 + $0x40] sm:$0xff]  ;;  %v150_v35 = vld [vmem:[%s3818_s3 + $0x38] sm:$0xff] }
  0x18   :  { %2081 = vmatprep.subr.mxu1 %v202_v18  ;;  %2032 = vmatpush3.msra.mxu0 %v154_v19  ;;  %v184_v28 = vld [vmem:[%s3818_s3 + $0x148] sm:$0xff]  ;;  %v183_v32 = vld [vmem:[%s3818_s3 + $0x140] sm:$0xff]  ;;  %v182_v36 = vld [vmem:[%s3818_s3 + $0x138] sm:$0xff] }
  0x19   :  { %2082 = vmatpush3.msra.mxu1 %v186_v20  ;;  %2033 = vmatprep.subr.mxu0 %v169_v21  ;;  %v165_v37 = vld [vmem:[%s3818_s3 + $0xb0] sm:$0xff]  ;;  %v164_v41 = vld [vmem:[%s3818_s3 + $0xa8] sm:$0xff]  ;;  %v163_v45 = vld [vmem:[%s3818_s3 + $0xa0] sm:$0xff] }
  0x1a   :  { %2083 = vmatprep.subr.mxu1 %v201_v22  ;;  %2034 = vmatpush3.msra.mxu0 %v153_v23  ;;  %v197_v38 = vld [vmem:[%s3818_s3 + $0x1b0] sm:$0xff]  ;;  %v196_v42 = vld [vmem:[%s3818_s3 + $0x1a8] sm:$0xff]  ;;  %v195_v46 = vld [vmem:[%s3818_s3 + $0x1a0] sm:$0xff] }
  0x1b   :  { %2084 = vmatpush3.msra.mxu1 %v185_v24  ;;  %2035 = vmatprep.subr.mxu0 %v168_v25  ;;  %v149_v39 = vld [vmem:[%s3818_s3 + $0x30] sm:$0xff]  ;;  %v148_v43 = vld [vmem:[%s3818_s3 + $0x28] sm:$0xff]  ;;  %v147_v47 = vld [vmem:[%s3818_s3 + $0x20] sm:$0xff] }
  0x1c   :  { %2085 = vmatprep.subr.mxu1 %v200_v26  ;;  %2036 = vmatpush3.msra.mxu0 %v152_v27  ;;  %v181_v40 = vld [vmem:[%s3818_s3 + $0x130] sm:$0xff]  ;;  %v180_v44 = vld [vmem:[%s3818_s3 + $0x128] sm:$0xff]  ;;  %v179_v48 = vld [vmem:[%s3818_s3 + $0x120] sm:$0xff] }
  0x1d   :  { %2086 = vmatpush3.msra.mxu1 %v184_v28  ;;  %2037 = vmatprep.subr.mxu0 %v167_v29  ;;  %v162_v49 = vld [vmem:[%s3818_s3 + $0x98] sm:$0xff]  ;;  %v161_v53 = vld [vmem:[%s3818_s3 + $0x90] sm:$0xff]  ;;  %v160_v57 = vld [vmem:[%s3818_s3 + $0x88] sm:$0xff] }
  0x1e   :  { %2087 = vmatprep.subr.mxu1 %v199_v30  ;;  %2038 = vmatpush3.msra.mxu0 %v151_v31  ;;  %v194_v50 = vld [vmem:[%s3818_s3 + $0x198] sm:$0xff]  ;;  %v193_v54 = vld [vmem:[%s3818_s3 + $0x190] sm:$0xff]  ;;  %v192_v58 = vld [vmem:[%s3818_s3 + $0x188] sm:$0xff] }
  0x1f   :  { %2088 = vmatpush3.msra.mxu1 %v183_v32  ;;  %2039 = vmatprep.subr.mxu0 %v166_v33  ;;  %v146_v51 = vld [vmem:[%s3818_s3 + $0x18] sm:$0xff]  ;;  %v145_v55 = vld [vmem:[%s3818_s3 + $0x10] sm:$0xff]  ;;  %v144_v59 = vld [vmem:[%s3818_s3 + $0x8] sm:$0xff] }
  0x20   :  { %2089 = vmatprep.subr.mxu1 %v198_v34  ;;  %2040 = vmatpush3.msra.mxu0 %v150_v35  ;;  %v178_v52 = vld [vmem:[%s3818_s3 + $0x118] sm:$0xff]  ;;  %v177_v56 = vld [vmem:[%s3818_s3 + $0x110] sm:$0xff]  ;;  %v176_v60 = vld [vmem:[%s3818_s3 + $0x108] sm:$0xff] }
  0x21   :  { %2090 = vmatpush3.msra.mxu1 %v182_v36  ;;  %2041 = vmatprep.subr.mxu0 %v165_v37  ;;  %v159_v61 = vld [vmem:[%s3818_s3 + $0x80] sm:$0xff]  ;;  %v72_v0 = vld [vmem:[%s3819_s20 + $0x8] sm:$0xff]  ;;  %v74_v3 = vld [vmem:[%s3819_s20 + $0x18] sm:$0xff] }
  0x22   :  { %2091 = vmatprep.subr.mxu1 %v197_v38  ;;  %2042 = vmatpush3.msra.mxu0 %v149_v39  ;;  %v191_v62 = vld [vmem:[%s3818_s3 + $0x180] sm:$0xff]  ;;  %v238_v4 = vld [vmem:[%s3818_s3 + $0x2f8] sm:$0xff]  ;;  %v73_v6 = vld [vmem:[%s3819_s20 + $0x10] sm:$0xff] }
  0x23   :  { %2092 = vmatpush3.msra.mxu1 %v181_v40  ;;  %2043 = vmatprep.subr.mxu0 %v164_v41  ;;  %v143_v63 = vld [vmem:[%s3818_s3] sm:$0xff]  ;;  %v270_v5 = vld [vmem:[%s3818_s3 + $0x3f8] sm:$0xff]  ;;  %v237_v9 = vld [vmem:[%s3818_s3 + $0x2f0] sm:$0xff] }
  0x24   :  { %2093 = vmatprep.subr.mxu1 %v196_v42  ;;  %2044 = vmatpush3.msra.mxu0 %v148_v43  ;;  %v175_v1 = vld [vmem:[%s3818_s3 + $0x100] sm:$0xff]  ;;  %v222_v7 = vld [vmem:[%s3818_s3 + $0x278] sm:$0xff]  ;;  %v269_v10 = vld [vmem:[%s3818_s3 + $0x3f0] sm:$0xff] }
  0x25   :  { %2094 = vmatpush3.msra.mxu1 %v180_v44  ;;  %2045 = vmatprep.subr.mxu0 %v163_v45  ;;  %v71_v2 = vld [vmem:[%s3819_s20] sm:$0xff]  ;;  %v254_v8 = vld [vmem:[%s3818_s3 + $0x378] sm:$0xff]  ;;  %v221_v11 = vld [vmem:[%s3818_s3 + $0x270] sm:$0xff] }
  0x26   :  { %2095 = vmatprep.subr.mxu1 %v195_v46  ;;  %2046 = vmatpush3.msra.mxu0 %v147_v47  ;;  %v253_v12 = vld [vmem:[%s3818_s3 + $0x370] sm:$0xff]  ;;  %v236_v13 = vld [vmem:[%s3818_s3 + $0x2e8] sm:$0xff]  ;;  %v235_v17 = vld [vmem:[%s3818_s3 + $0x2e0] sm:$0xff] }
  0x27   :  { %2096 = vmatpush3.msra.mxu1 %v179_v48  ;;  %2047 = vmatprep.subr.mxu0 %v162_v49  ;;  %v268_v14 = vld [vmem:[%s3818_s3 + $0x3e8] sm:$0xff]  ;;  %v267_v18 = vld [vmem:[%s3818_s3 + $0x3e0] sm:$0xff]  ;;  %v234_v21 = vld [vmem:[%s3818_s3 + $0x2d8] sm:$0xff] }
  0x28   :  { %2097 = vmatprep.subr.mxu1 %v194_v50  ;;  %2048 = vmatpush3.msra.mxu0 %v146_v51  ;;  %v220_v15 = vld [vmem:[%s3818_s3 + $0x268] sm:$0xff]  ;;  %v219_v19 = vld [vmem:[%s3818_s3 + $0x260] sm:$0xff]  ;;  %v266_v22 = vld [vmem:[%s3818_s3 + $0x3d8] sm:$0xff] }
  0x29   :  { %2098 = vmatpush3.msra.mxu1 %v178_v52  ;;  %2049 = vmatprep.subr.mxu0 %v161_v53  ;;  %v252_v16 = vld [vmem:[%s3818_s3 + $0x368] sm:$0xff]  ;;  %v251_v20 = vld [vmem:[%s3818_s3 + $0x360] sm:$0xff]  ;;  %v218_v23 = vld [vmem:[%s3818_s3 + $0x258] sm:$0xff] }
  0x2a   :  { %2099 = vmatprep.subr.mxu1 %v193_v54  ;;  %2050 = vmatpush3.msra.mxu0 %v145_v55  ;;  %v250_v24 = vld [vmem:[%s3818_s3 + $0x358] sm:$0xff]  ;;  %v84_v25 = vld [vmem:[%s3819_s20 + $0x68] sm:$0xff]  ;;  %v233_v26 = vld [vmem:[%s3818_s3 + $0x2d0] sm:$0xff] }
  0x2b   :  { %2100 = vmatpush3.msra.mxu1 %v177_v56  ;;  %2051 = vmatprep.subr.mxu0 %v160_v57  ;;  %v265_v27 = vld [vmem:[%s3818_s3 + $0x3d0] sm:$0xff]  ;;  %v83_v28 = vld [vmem:[%s3819_s20 + $0x60] sm:$0xff]  ;;  %v86_v31 = vld [vmem:[%s3819_s20 + $0x78] sm:$0xff] }
  0x2c   :  { %2101 = vmatprep.subr.mxu1 %v192_v58  ;;  %2052 = vmatpush3.msra.mxu0 %v144_v59  ;;  %v217_v29 = vld [vmem:[%s3818_s3 + $0x250] sm:$0xff]  ;;  %v232_v32 = vld [vmem:[%s3818_s3 + $0x2c8] sm:$0xff]  ;;  %v231_v38 = vld [vmem:[%s3818_s3 + $0x2c0] sm:$0xff] }
  0x2d   :  { %2102 = vmatpush3.msra.mxu1 %v176_v60  ;;  %2053 = vmatprep.subr.mxu0 %v159_v61  ;;  %v249_v30 = vld [vmem:[%s3818_s3 + $0x350] sm:$0xff]  ;;  %v264_v33 = vld [vmem:[%s3818_s3 + $0x3c8] sm:$0xff]  ;;  %v263_v39 = vld [vmem:[%s3818_s3 + $0x3c0] sm:$0xff] }
  0x2e   :  { %2103 = vmatprep.subr.mxu1 %v191_v62  ;;  %2054 = vmatpush3.msra.mxu0 %v143_v63  ;;  %v85_v34 = vld [vmem:[%s3819_s20 + $0x70] sm:$0xff]  ;;  %v216_v35 = vld [vmem:[%s3818_s3 + $0x248] sm:$0xff]  ;;  %v95_v40 = vld [vmem:[%s3819_s20 + $0xc0] sm:$0xff] }
  0x2f   :  { %435 = vmatprep.mubr.f32.mxu0 %v72_v0  ;;  %2104 = vmatpush3.msra.mxu1 %v175_v1  ;;  %v248_v36 = vld [vmem:[%s3818_s3 + $0x348] sm:$0xff]  ;;  %v215_v41 = vld [vmem:[%s3818_s3 + $0x240] sm:$0xff]  ;;  %v98_v43 = vld [vmem:[%s3819_s20 + $0xd8] sm:$0xff] }
  0x30   :  { %436 = vmatmul.mubr.f32.vlgmr.msra.gmra.mxu0 %v71_v2  ;;  %530 = vmatprep.mubr.f32.mxu1 %v74_v3  ;;  %v96_v37 = vld [vmem:[%s3819_s20 + $0xc8] sm:$0xff]  ;;  %v247_v42 = vld [vmem:[%s3818_s3 + $0x340] sm:$0xff]  ;;  %v230_v44 = vld [vmem:[%s3818_s3 + $0x2b8] sm:$0xff] }
  0x31   :  { %2123 = vmatprep.subr.mxu0 %v238_v4  ;;  %2173 = vmatprep.subr.mxu1 %v270_v5  ;;  %v262_v45 = vld [vmem:[%s3818_s3 + $0x3b8] sm:$0xff]  ;;  %v97_v46 = vld [vmem:[%s3819_s20 + $0xd0] sm:$0xff]  ;;  %v108_v49 = vld [vmem:[%s3819_s20 + $0x128] sm:$0xff] }
  0x32   :  { %531 = vmatmul.mubr.f32.vlgmr.msra.gmra.mxu1 %v73_v6  ;;  %2124 = vmatpush3.msra.mxu0 %v222_v7  ;;  %v214_v47 = vld [vmem:[%s3818_s3 + $0x238] sm:$0xff]  ;;  %v229_v50 = vld [vmem:[%s3818_s3 + $0x2b0] sm:$0xff]  ;;  %v107_v52 = vld [vmem:[%s3819_s20 + $0x120] sm:$0xff] }
  0x33   :  { %2174 = vmatpush3.msra.mxu1 %v254_v8  ;;  %2125 = vmatprep.subr.mxu0 %v237_v9  ;;  %v246_v48 = vld [vmem:[%s3818_s3 + $0x338] sm:$0xff]  ;;  %v261_v51 = vld [vmem:[%s3818_s3 + $0x3b0] sm:$0xff]  ;;  %v228_v56 = vld [vmem:[%s3818_s3 + $0x2a8] sm:$0xff] }
  0x34   :  { %2175 = vmatprep.subr.mxu1 %v269_v10  ;;  %2126 = vmatpush3.msra.mxu0 %v221_v11  ;;  %v213_v53 = vld [vmem:[%s3818_s3 + $0x230] sm:$0xff]  ;;  %v110_v55 = vld [vmem:[%s3819_s20 + $0x138] sm:$0xff]  ;;  %v260_v57 = vld [vmem:[%s3818_s3 + $0x3a8] sm:$0xff] }
  0x35   :  { %2176 = vmatpush3.msra.mxu1 %v253_v12  ;;  %2127 = vmatprep.subr.mxu0 %v236_v13  ;;  %v245_v54 = vld [vmem:[%s3818_s3 + $0x330] sm:$0xff]  ;;  %v212_v59 = vld [vmem:[%s3818_s3 + $0x228] sm:$0xff]  ;;  %v227_v62 = vld [vmem:[%s3818_s3 + $0x2a0] sm:$0xff] }
  0x36   :  { %2177 = vmatprep.subr.mxu1 %v268_v14  ;;  %2128 = vmatpush3.msra.mxu0 %v220_v15  ;;  %v109_v58 = vld [vmem:[%s3819_s20 + $0x130] sm:$0xff]  ;;  %v244_v60 = vld [vmem:[%s3818_s3 + $0x328] sm:$0xff]  ;;  %v259_v63 = vld [vmem:[%s3818_s3 + $0x3a0] sm:$0xff] }
  0x37   :  { %2178 = vmatpush3.msra.mxu1 %v252_v16  ;;  %2129 = vmatprep.subr.mxu0 %v235_v17  ;;  %v120_v61 = vld [vmem:[%s3819_s20 + $0x188] sm:$0xff]  ;;  %v119_v0 = vld [vmem:[%s3819_s20 + $0x180] sm:$0xff]  ;;  %v122_v3 = vld [vmem:[%s3819_s20 + $0x198] sm:$0xff] }
  0x38   :  { %2179 = vmatprep.subr.mxu1 %v267_v18  ;;  %2130 = vmatpush3.msra.mxu0 %v219_v19  ;;  %v211_v1 = vld [vmem:[%s3818_s3 + $0x220] sm:$0xff]  ;;  %v226_v4 = vld [vmem:[%s3818_s3 + $0x298] sm:$0xff]  ;;  %v121_v6 = vld [vmem:[%s3819_s20 + $0x190] sm:$0xff] }
  0x39   :  { %2180 = vmatpush3.msra.mxu1 %v251_v20  ;;  %2131 = vmatprep.subr.mxu0 %v234_v21  ;;  %v243_v2 = vld [vmem:[%s3818_s3 + $0x320] sm:$0xff]  ;;  %v258_v5 = vld [vmem:[%s3818_s3 + $0x398] sm:$0xff]  ;;  %v132_v9 = vld [vmem:[%s3819_s20 + $0x1e8] sm:$0xff] }
  0x3a   :  { %2181 = vmatprep.subr.mxu1 %v266_v22  ;;  %2132 = vmatpush3.msra.mxu0 %v218_v23  ;;  %v210_v7 = vld [vmem:[%s3818_s3 + $0x218] sm:$0xff]  ;;  %v225_v10 = vld [vmem:[%s3818_s3 + $0x290] sm:$0xff]  ;;  %v131_v12 = vld [vmem:[%s3819_s20 + $0x1e0] sm:$0xff] }
  0x3b   :  { %2182 = vmatpush3.msra.mxu1 %v250_v24  ;;  %440 = vmatprep.mubr.f32.mxu0 %v84_v25  ;;  %v242_v8 = vld [vmem:[%s3818_s3 + $0x318] sm:$0xff]  ;;  %v257_v11 = vld [vmem:[%s3818_s3 + $0x390] sm:$0xff]  ;;  %v224_v16 = vld [vmem:[%s3818_s3 + $0x288] sm:$0xff] }
  0x3c   :  { %2133 = vmatprep.subr.mxu0 %v233_v26  ;;  %2183 = vmatprep.subr.mxu1 %v265_v27  ;;  %v209_v13 = vld [vmem:[%s3818_s3 + $0x210] sm:$0xff]  ;;  %v134_v15 = vld [vmem:[%s3819_s20 + $0x1f8] sm:$0xff]  ;;  %v256_v17 = vld [vmem:[%s3818_s3 + $0x388] sm:$0xff] }
  0x3d   :  { %441 = vmatmul.mubr.f32.gmra.mxu0 %v83_v28  ;;  %2184 = vmatpush3.msra.mxu1 %v249_v30  ;;  %v241_v14 = vld [vmem:[%s3818_s3 + $0x310] sm:$0xff]  ;;  %v208_v19 = vld [vmem:[%s3818_s3 + $0x208] sm:$0xff]  ;;  %v223_v21 = vld [vmem:[%s3818_s3 + $0x280] sm:$0xff] }
  0x3e   :  { %2134 = vmatpush3.msra.mxu0 %v217_v29  ;;  %535 = vmatprep.mubr.f32.mxu1 %v86_v31  ;;  %v133_v18 = vld [vmem:[%s3819_s20 + $0x1f0] sm:$0xff]  ;;  %v240_v20 = vld [vmem:[%s3818_s3 + $0x308] sm:$0xff]  ;;  %v255_v22 = vld [vmem:[%s3818_s3 + $0x380] sm:$0xff] }
  0x3f   :  { %2135 = vmatprep.subr.mxu0 %v232_v32  ;;  %2185 = vmatprep.subr.mxu1 %v264_v33  ;;  %v207_v23 = vld [vmem:[%s3818_s3 + $0x200] sm:$0xff]  ;;  %v76_v24 = vld [vmem:[%s3819_s20 + $0x28] sm:$0xff]  ;;  %v78_v27 = vld [vmem:[%s3819_s20 + $0x38] sm:$0xff] }
  0x40   :  { %536 = vmatmul.mubr.f32.gmra.mxu1 %v85_v34  ;;  %2136 = vmatpush3.msra.mxu0 %v216_v35  ;;  %v239_v25 = vld [vmem:[%s3818_s3 + $0x300] sm:$0xff]  ;;  %v302_v28 = vld [vmem:[%s3818_s3 + $0x4f8] sm:$0xff]  ;;  %v77_v30 = vld [vmem:[%s3819_s20 + $0x30] sm:$0xff] }
  0x41   :  { %2186 = vmatpush3.msra.mxu1 %v248_v36  ;;  %445 = vmatprep.mubr.f32.mxu0 %v96_v37  ;;  %v75_v26 = vld [vmem:[%s3819_s20 + $0x20] sm:$0xff]  ;;  %v334_v29 = vld [vmem:[%s3818_s3 + $0x5f8] sm:$0xff]  ;;  %v301_v33 = vld [vmem:[%s3818_s3 + $0x4f0] sm:$0xff] }
  0x42   :  { %2137 = vmatprep.subr.mxu0 %v231_v38  ;;  %2187 = vmatprep.subr.mxu1 %v263_v39  ;;  %v286_v31 = vld [vmem:[%s3818_s3 + $0x478] sm:$0xff]  ;;  %v333_v34 = vld [vmem:[%s3818_s3 + $0x5f0] sm:$0xff]  ;;  %v88_v35 = vld [vmem:[%s3819_s20 + $0x88] sm:$0xff] }
  0x43   :  { %446 = vmatmul.mubr.f32.gmra.mxu0 %v95_v40  ;;  %2188 = vmatpush3.msra.mxu1 %v247_v42  ;;  %v318_v32 = vld [vmem:[%s3818_s3 + $0x578] sm:$0xff]  ;;  %v285_v36 = vld [vmem:[%s3818_s3 + $0x470] sm:$0xff]  ;;  %v87_v38 = vld [vmem:[%s3819_s20 + $0x80] sm:$0xff] }
  0x44   :  { %2138 = vmatpush3.msra.mxu0 %v215_v41  ;;  %540 = vmatprep.mubr.f32.mxu1 %v98_v43  ;;  %v317_v37 = vld [vmem:[%s3818_s3 + $0x570] sm:$0xff]  ;;  %v300_v39 = vld [vmem:[%s3818_s3 + $0x4e8] sm:$0xff]  ;;  %v90_v41 = vld [vmem:[%s3819_s20 + $0x98] sm:$0xff] }
  0x45   :  { %2139 = vmatprep.subr.mxu0 %v230_v44  ;;  %2189 = vmatprep.subr.mxu1 %v262_v45  ;;  %v332_v40 = vld [vmem:[%s3818_s3 + $0x5e8] sm:$0xff]  ;;  %v299_v44 = vld [vmem:[%s3818_s3 + $0x4e0] sm:$0xff]  ;;  %v89_v45 = vld [vmem:[%s3819_s20 + $0x90] sm:$0xff] }
  0x46   :  { %541 = vmatmul.mubr.f32.gmra.mxu1 %v97_v46  ;;  %2140 = vmatpush3.msra.mxu0 %v214_v47  ;;  %v284_v42 = vld [vmem:[%s3818_s3 + $0x468] sm:$0xff]  ;;  %v331_v46 = vld [vmem:[%s3818_s3 + $0x5e0] sm:$0xff] }
  0x47   :  { %2190 = vmatpush3.msra.mxu1 %v246_v48  ;;  %450 = vmatprep.mubr.f32.mxu0 %v108_v49  ;;  %v316_v43 = vld [vmem:[%s3818_s3 + $0x568] sm:$0xff]  ;;  %v283_v48 = vld [vmem:[%s3818_s3 + $0x460] sm:$0xff] }
  0x48   :  { %2141 = vmatprep.subr.mxu0 %v229_v50  ;;  %2191 = vmatprep.subr.mxu1 %v261_v51  ;;  %v100_v47 = vld [vmem:[%s3819_s20 + $0xe8] sm:$0xff]  ;;  %v315_v49 = vld [vmem:[%s3818_s3 + $0x560] sm:$0xff]  ;;  %v298_v51 = vld [vmem:[%s3818_s3 + $0x4d8] sm:$0xff] }
  0x49   :  { %451 = vmatmul.mubr.f32.gmra.mxu0 %v107_v52  ;;  %2192 = vmatpush3.msra.mxu1 %v245_v54  ;;  %v99_v50 = vld [vmem:[%s3819_s20 + $0xe0] sm:$0xff]  ;;  %v330_v52 = vld [vmem:[%s3818_s3 + $0x5d8] sm:$0xff] }
  0x4a   :  { %2142 = vmatpush3.msra.mxu0 %v213_v53  ;;  %545 = vmatprep.mubr.f32.mxu1 %v110_v55  ;;  %v102_v53 = vld [vmem:[%s3819_s20 + $0xf8] sm:$0xff] }
  0x4b   :  { %2143 = vmatprep.subr.mxu0 %v228_v56  ;;  %2193 = vmatprep.subr.mxu1 %v260_v57  ;;  %v282_v54 = vld [vmem:[%s3818_s3 + $0x458] sm:$0xff]  ;;  %v297_v56 = vld [vmem:[%s3818_s3 + $0x4d0] sm:$0xff] }
  0x4c   :  { %546 = vmatmul.mubr.f32.gmra.mxu1 %v109_v58  ;;  %2144 = vmatpush3.msra.mxu0 %v212_v59  ;;  %v314_v55 = vld [vmem:[%s3818_s3 + $0x558] sm:$0xff]  ;;  %v101_v57 = vld [vmem:[%s3819_s20 + $0xf0] sm:$0xff]  ;;  %v112_v59 = vld [vmem:[%s3819_s20 + $0x148] sm:$0xff] }
  0x4d   :  { %2194 = vmatpush3.msra.mxu1 %v244_v60  ;;  %455 = vmatprep.mubr.f32.mxu0 %v120_v61  ;;  %v329_v58 = vld [vmem:[%s3818_s3 + $0x5d0] sm:$0xff] }
  0x4e   :  { %2145 = vmatprep.subr.mxu0 %v227_v62  ;;  %2195 = vmatprep.subr.mxu1 %v259_v63  ;;  %v281_v60 = vld [vmem:[%s3818_s3 + $0x450] sm:$0xff]  ;;  %v111_v62 = vld [vmem:[%s3819_s20 + $0x140] sm:$0xff]  ;;  %v296_v63 = vld [vmem:[%s3818_s3 + $0x4c8] sm:$0xff] }
  0x4f   :  { %456 = vmatmul.mubr.f32.gmra.mxu0 %v119_v0  ;;  %2196 = vmatpush3.msra.mxu1 %v243_v2  ;;  %v313_v61 = vld [vmem:[%s3818_s3 + $0x550] sm:$0xff]  ;;  %v328_v0 = vld [vmem:[%s3818_s3 + $0x5c8] sm:$0xff] }
  0x50   :  { %2146 = vmatpush3.msra.mxu0 %v211_v1  ;;  %550 = vmatprep.mubr.f32.mxu1 %v122_v3  ;;  %v114_v1 = vld [vmem:[%s3819_s20 + $0x158] sm:$0xff]  ;;  %v280_v2 = vld [vmem:[%s3818_s3 + $0x448] sm:$0xff] }
  0x51   :  { %2147 = vmatprep.subr.mxu0 %v226_v4  ;;  %2197 = vmatprep.subr.mxu1 %v258_v5  ;;  %v312_v3 = vld [vmem:[%s3818_s3 + $0x548] sm:$0xff]  ;;  %v295_v4 = vld [vmem:[%s3818_s3 + $0x4c0] sm:$0xff]  ;;  %v113_v5 = vld [vmem:[%s3819_s20 + $0x150] sm:$0xff] }
  0x52   :  { %551 = vmatmul.mubr.f32.gmra.mxu1 %v121_v6  ;;  %2148 = vmatpush3.msra.mxu0 %v210_v7  ;;  %v327_v6 = vld [vmem:[%s3818_s3 + $0x5c0] sm:$0xff]  ;;  %v124_v7 = vld [vmem:[%s3819_s20 + $0x1a8] sm:$0xff] }
  0x53   :  { %2198 = vmatpush3.msra.mxu1 %v242_v8  ;;  %460 = vmatprep.mubr.f32.mxu0 %v132_v9  ;;  %v279_v8 = vld [vmem:[%s3818_s3 + $0x440] sm:$0xff] }
  0x54   :  { %2149 = vmatprep.subr.mxu0 %v225_v10  ;;  %2199 = vmatprep.subr.mxu1 %v257_v11  ;;  %v311_v9 = vld [vmem:[%s3818_s3 + $0x540] sm:$0xff]  ;;  %v294_v11 = vld [vmem:[%s3818_s3 + $0x4b8] sm:$0xff] }
  0x55   :  { %461 = vmatmul.mubr.f32.gmra.mxu0 %v131_v12  ;;  %2200 = vmatpush3.msra.mxu1 %v241_v14  ;;  %v123_v10 = vld [vmem:[%s3819_s20 + $0x1a0] sm:$0xff]  ;;  %v326_v12 = vld [vmem:[%s3818_s3 + $0x5b8] sm:$0xff] }
  0x56   :  { %2150 = vmatpush3.msra.mxu0 %v209_v13  ;;  %555 = vmatprep.mubr.f32.mxu1 %v134_v15  ;;  %v126_v13 = vld [vmem:[%s3819_s20 + $0x1b8] sm:$0xff] }
  0x57   :  { %2151 = vmatprep.subr.mxu0 %v224_v16  ;;  %2201 = vmatprep.subr.mxu1 %v256_v17  ;;  %v278_v14 = vld [vmem:[%s3818_s3 + $0x438] sm:$0xff]  ;;  %v293_v16 = vld [vmem:[%s3818_s3 + $0x4b0] sm:$0xff] }
  0x58   :  { %556 = vmatmul.mubr.f32.gmra.mxu1 %v133_v18  ;;  %2152 = vmatpush3.msra.mxu0 %v208_v19  ;;  %v310_v15 = vld [vmem:[%s3818_s3 + $0x538] sm:$0xff]  ;;  %v125_v17 = vld [vmem:[%s3819_s20 + $0x1b0] sm:$0xff] }
  0x59   :  { %2202 = vmatpush3.msra.mxu1 %v240_v20  ;;  %2153 = vmatprep.subr.mxu0 %v223_v21  ;;  %v325_v18 = vld [vmem:[%s3818_s3 + $0x5b0] sm:$0xff] }
  0x5a   :  { %2203 = vmatprep.subr.mxu1 %v255_v22  ;;  %2154 = vmatpush3.msra.mxu0 %v207_v23 }
  0x5b   :  { %625 = vmatprep.mubr.f32.mxu0 %v76_v24  ;;  %2204 = vmatpush3.msra.mxu1 %v239_v25 }
  0x5c   :  { %626 = vmatmul.mubr.f32.vlgmr.msra.gmra.mxu0 %v75_v26  ;;  %720 = vmatprep.mubr.f32.mxu1 %v78_v27 }
  0x5d   :  { %2223 = vmatprep.subr.mxu0 %v302_v28  ;;  %2273 = vmatprep.subr.mxu1 %v334_v29 }
  0x5e   :  { %721 = vmatmul.mubr.f32.vlgmr.msra.gmra.mxu1 %v77_v30  ;;  %2224 = vmatpush3.msra.mxu0 %v286_v31 }
  0x5f   :  { %2274 = vmatpush3.msra.mxu1 %v318_v32  ;;  %2225 = vmatprep.subr.mxu0 %v301_v33 }
  0x60   :  { %2275 = vmatprep.subr.mxu1 %v333_v34  ;;  %630 = vmatprep.mubr.f32.mxu0 %v88_v35 }
  0x61   :  { %2226 = vmatpush3.msra.mxu0 %v285_v36  ;;  %2276 = vmatpush3.msra.mxu1 %v317_v37 }
  0x62   :  { %631 = vmatmul.mubr.f32.gmra.mxu0 %v87_v38  ;;  %2227 = vmatprep.subr.mxu0 %v300_v39 }
  0x63   :  { %2277 = vmatprep.subr.mxu1 %v332_v40  ;;  %725 = vmatprep.mubr.f32.mxu1 %v90_v41 }
  0x64   :  { %2228 = vmatpush3.msra.mxu0 %v284_v42  ;;  %2278 = vmatpush3.msra.mxu1 %v316_v43 }
  0x65   :  { %2229 = vmatprep.subr.mxu0 %v299_v44  ;;  %726 = vmatmul.mubr.f32.gmra.mxu1 %v89_v45 }
  0x66   :  { %2279 = vmatprep.subr.mxu1 %v331_v46  ;;  %635 = vmatprep.mubr.f32.mxu0 %v100_v47 }
  0x67   :  { %2230 = vmatpush3.msra.mxu0 %v283_v48  ;;  %2280 = vmatpush3.msra.mxu1 %v315_v49 }
  0x68   :  { %636 = vmatmul.mubr.f32.gmra.mxu0 %v99_v50  ;;  %2231 = vmatprep.subr.mxu0 %v298_v51 }
  0x69   :  { %2281 = vmatprep.subr.mxu1 %v330_v52  ;;  %730 = vmatprep.mubr.f32.mxu1 %v102_v53 }
  0x6a   :  { %2232 = vmatpush3.msra.mxu0 %v282_v54  ;;  %2282 = vmatpush3.msra.mxu1 %v314_v55 }
  0x6b   :  { %2233 = vmatprep.subr.mxu0 %v297_v56  ;;  %731 = vmatmul.mubr.f32.gmra.mxu1 %v101_v57 }
  0x6c   :  { %2283 = vmatprep.subr.mxu1 %v329_v58  ;;  %640 = vmatprep.mubr.f32.mxu0 %v112_v59 }
  0x6d   :  { %2234 = vmatpush3.msra.mxu0 %v281_v60  ;;  %2284 = vmatpush3.msra.mxu1 %v313_v61 }
  0x6e   :  { %641 = vmatmul.mubr.f32.gmra.mxu0 %v111_v62  ;;  %2235 = vmatprep.subr.mxu0 %v296_v63 }
  0x6f   :  { %2285 = vmatprep.subr.mxu1 %v328_v0  ;;  %735 = vmatprep.mubr.f32.mxu1 %v114_v1 }
  0x70   :  { %2236 = vmatpush3.msra.mxu0 %v280_v2  ;;  %2286 = vmatpush3.msra.mxu1 %v312_v3 }
  0x71   :  { %2237 = vmatprep.subr.mxu0 %v295_v4  ;;  %736 = vmatmul.mubr.f32.gmra.mxu1 %v113_v5 }
  0x72   :  { %2287 = vmatprep.subr.mxu1 %v327_v6  ;;  %645 = vmatprep.mubr.f32.mxu0 %v124_v7 }
  0x73   :  { %2238 = vmatpush3.msra.mxu0 %v279_v8  ;;  %2288 = vmatpush3.msra.mxu1 %v311_v9 }
  0x74   :  { %646 = vmatmul.mubr.f32.gmra.mxu0 %v123_v10  ;;  %2239 = vmatprep.subr.mxu0 %v294_v11 }
  0x75   :  { %2289 = vmatprep.subr.mxu1 %v326_v12 }
  0x76   :  { %28 = vsyncpa [#allocation4], 0  ;;  %740 = vmatprep.mubr.f32.mxu1 %v126_v13  ;;  %2240 = vmatpush3.msra.mxu0 %v278_v14  ;;  %v136_v19 = vld [vmem:[%s3819_s20 + $0x208] sm:$0xff]  ;;  %v277_v20 = vld [vmem:[%s3818_s3 + $0x430] sm:$0xff]  ;;  %s3820_s4 = sld [smem:[#allocation14_spill]]  ;;  %v2500_v55 = vmov 0  }
  0x77   :  { %2290 = vmatpush3.msra.mxu1 %v310_v15  ;;  %2241 = vmatprep.subr.mxu0 %v293_v16  ;;  %v309_v21 = vld [vmem:[%s3818_s3 + $0x530] sm:$0xff]  ;;  %v135_v22 = vld [vmem:[%s3819_s20 + $0x200] sm:$0xff]  ;;  %v292_v23 = vld [vmem:[%s3818_s3 + $0x4a8] sm:$0xff]  ;;  %s3821_s23 = sld [smem:[#allocation12_spill]]  ;;  %vm963_vm0 = vcmask 1042432   ;;  %vm950_vm1 = vcmask 23552  }
  0x78   :  { %741 = vmatmul.mubr.f32.gmra.mxu1 %v125_v17  ;;  %2291 = vmatprep.subr.mxu1 %v325_v18  ;;  %v324_v24 = vld [vmem:[%s3818_s3 + $0x5a8] sm:$0xff]  ;;  %v138_v25 = vld [vmem:[%s3819_s20 + $0x218] sm:$0xff]  ;;  %v291_v28 = vld [vmem:[%s3818_s3 + $0x4a0] sm:$0xff]  ;;  %vm1052_vm2 = vcmask 392192   ;;  %vm1210_vm3 = vcmask 261120   ;;  %vm1437_vm4 = vcmask 15360  }
  0x79   :  { %650 = vmatprep.mubr.f32.mxu0 %v136_v19  ;;  %2242 = vmatpush3.msra.mxu0 %v277_v20  ;;  %v276_v26 = vld [vmem:[%s3818_s3 + $0x428] sm:$0xff]  ;;  %v137_v29 = vld [vmem:[%s3819_s20 + $0x210] sm:$0xff]  ;;  %v323_v30 = vld [vmem:[%s3818_s3 + $0x5a0] sm:$0xff]  ;;  %vm2502_vm5 = vmmov 0   ;;  %vm1981_vm6 = vcmask 8192  }
  0x7a   :  { %2292 = vmatpush3.msra.mxu1 %v309_v21  ;;  %651 = vmatmul.mubr.f32.gmra.mxu0 %v135_v22  ;;  %v308_v27 = vld [vmem:[%s3818_s3 + $0x528] sm:$0xff]  ;;  %v275_v31 = vld [vmem:[%s3818_s3 + $0x420] sm:$0xff]  ;;  %v290_v33 = vld [vmem:[%s3818_s3 + $0x498] sm:$0xff] }
  0x7b   :  { %2243 = vmatprep.subr.mxu0 %v292_v23  ;;  %2293 = vmatprep.subr.mxu1 %v324_v24  ;;  %v307_v32 = vld [vmem:[%s3818_s3 + $0x520] sm:$0xff]  ;;  %v322_v34 = vld [vmem:[%s3818_s3 + $0x598] sm:$0xff]  ;;  %v289_v37 = vld [vmem:[%s3818_s3 + $0x490] sm:$0xff] }
  0x7c   :  { %745 = vmatprep.mubr.f32.mxu1 %v138_v25  ;;  %2244 = vmatpush3.msra.mxu0 %v276_v26  ;;  %v274_v35 = vld [vmem:[%s3818_s3 + $0x418] sm:$0xff]  ;;  %v321_v38 = vld [vmem:[%s3818_s3 + $0x590] sm:$0xff]  ;;  %v288_v41 = vld [vmem:[%s3818_s3 + $0x488] sm:$0xff] }
  0x7d   :  { %2294 = vmatpush3.msra.mxu1 %v308_v27  ;;  %2245 = vmatprep.subr.mxu0 %v291_v28  ;;  %v306_v36 = vld [vmem:[%s3818_s3 + $0x518] sm:$0xff]  ;;  %v273_v39 = vld [vmem:[%s3818_s3 + $0x410] sm:$0xff]  ;;  %v320_v42 = vld [vmem:[%s3818_s3 + $0x588] sm:$0xff] }
  0x7e   :  { %746 = vmatmul.mubr.f32.gmra.mxu1 %v137_v29  ;;  %2295 = vmatprep.subr.mxu1 %v323_v30  ;;  %v305_v40 = vld [vmem:[%s3818_s3 + $0x510] sm:$0xff]  ;;  %v272_v43 = vld [vmem:[%s3818_s3 + $0x408] sm:$0xff]  ;;  %v287_v45 = vld [vmem:[%s3818_s3 + $0x480] sm:$0xff] }
  0x7f   :  { %2246 = vmatpush3.msra.mxu0 %v275_v31  ;;  %2296 = vmatpush3.msra.mxu1 %v307_v32  ;;  %v304_v44 = vld [vmem:[%s3818_s3 + $0x508] sm:$0xff]  ;;  %v319_v46 = vld [vmem:[%s3818_s3 + $0x580] sm:$0xff]  ;;  %v82_v50 = vld [vmem:[%s3819_s20 + $0x58] sm:$0xff] }
  0x80   :  { %2247 = vmatprep.subr.mxu0 %v290_v33  ;;  %2297 = vmatprep.subr.mxu1 %v322_v34  ;;  %v271_v47 = vld [vmem:[%s3818_s3 + $0x400] sm:$0xff]  ;;  %v80_v48 = vld [vmem:[%s3819_s20 + $0x48] sm:$0xff]  ;;  %v81_v52 = vld [vmem:[%s3819_s20 + $0x50] sm:$0xff] }
  0x81   :  { %2248 = vmatpush3.msra.mxu0 %v274_v35  ;;  %2298 = vmatpush3.msra.mxu1 %v306_v36  ;;  %v303_v49 = vld [vmem:[%s3818_s3 + $0x500] sm:$0xff]  ;;  %v340_v53 = vld [vmem:[%s3820_s4 + $0x28] sm:$0xff]  ;;  %v338_v54 = vld [vmem:[%s3820_s4 + $0x18] sm:$0xff] }
  0x82   :  { %2249 = vmatprep.subr.mxu0 %v289_v37  ;;  %2299 = vmatprep.subr.mxu1 %v321_v38  ;;  %v79_v51 = vld [vmem:[%s3819_s20 + $0x40] sm:$0xff]  ;;  %v92_v56 = vld [vmem:[%s3819_s20 + $0xa8] sm:$0xff]  ;;  %v94_v57 = vld [vmem:[%s3819_s20 + $0xb8] sm:$0xff] }
  0x83   :  { %2250 = vmatpush3.msra.mxu0 %v273_v39  ;;  %2300 = vmatpush3.msra.mxu1 %v305_v40  ;;  %v91_v58 = vld [vmem:[%s3819_s20 + $0xa0] sm:$0xff]  ;;  %v93_v59 = vld [vmem:[%s3819_s20 + $0xb0] sm:$0xff]  ;;  %v104_v62 = vld [vmem:[%s3819_s20 + $0x108] sm:$0xff] }
  0x84   :  { %2251 = vmatprep.subr.mxu0 %v288_v41  ;;  %2301 = vmatprep.subr.mxu1 %v320_v42  ;;  %v339_v60 = vld [vmem:[%s3820_s4 + $0x20] sm:$0xff]  ;;  %v337_v61 = vld [vmem:[%s3820_s4 + $0x10] sm:$0xff]  ;;  %v106_v63 = vld [vmem:[%s3819_s20 + $0x118] sm:$0xff] }
  0x85   :  { %2252 = vmatpush3.msra.mxu0 %v272_v43  ;;  %2302 = vmatpush3.msra.mxu1 %v304_v44  ;;  %v103_v0 = vld [vmem:[%s3819_s20 + $0x100] sm:$0xff]  ;;  %v105_v1 = vld [vmem:[%s3819_s20 + $0x110] sm:$0xff]  ;;  %v336_v2 = vld [vmem:[%s3820_s4 + $0x8] sm:$0xff] }
  0x86   :  { %2253 = vmatprep.subr.mxu0 %v287_v45  ;;  %2303 = vmatprep.subr.mxu1 %v319_v46  ;;  %v335_v3 = vld [vmem:[%s3820_s4] sm:$0xff]  ;;  %v116_v4 = vld [vmem:[%s3819_s20 + $0x168] sm:$0xff]  ;;  %v118_v5 = vld [vmem:[%s3819_s20 + $0x178] sm:$0xff] }
  0x87   :  { %2254 = vmatpush3.msra.mxu0 %v271_v47  ;;  %815 = vmatprep.mubr.f32.mxu0 %v80_v48  ;;  %v115_v6 = vld [vmem:[%s3819_s20 + $0x160] sm:$0xff]  ;;  %v117_v7 = vld [vmem:[%s3819_s20 + $0x170] sm:$0xff]  ;;  %v1153_v8 = vld [vmem:[%s3791_s6 + $0x18] sm:$0xff] }
  0x88   :  { %2304 = vmatpush3.msra.mxu1 %v303_v49  ;;  %910 = vmatprep.mubr.f32.mxu1 %v82_v50  ;;  %v128_v9 = vld [vmem:[%s3819_s20 + $0x1c8] sm:$0xff]  ;;  %v130_v10 = vld [vmem:[%s3819_s20 + $0x1d8] sm:$0xff]  ;;  %v1152_v11 = vld [vmem:[%s3791_s6 + $0x10] sm:$0xff] }
  0x89   :  { %2473 = vset.pattern.permute.xlu1 %v2500_v55  ;;  %2472 = vset.pattern.permute.xlu0 %v2500_v55  ;;  %v127_v12 = vld [vmem:[%s3819_s20 + $0x1c0] sm:$0xff]  ;;  %v129_v13 = vld [vmem:[%s3819_s20 + $0x1d0] sm:$0xff]  ;;  %v1151_v14 = vld [vmem:[%s3791_s6 + $0x8] sm:$0xff] }
  0x8a   :  { %816 = vmatmul.mubr.f32.vlgmr.msra.gmra.mxu0 %v79_v51  ;;  %911 = vmatmul.mubr.f32.vlgmr.msra.gmra.mxu1 %v81_v52  ;;  %v140_v15 = vld [vmem:[%s3819_s20 + $0x228] sm:$0xff]  ;;  %v142_v16 = vld [vmem:[%s3819_s20 + $0x238] sm:$0xff]  ;;  %v1150_v17 = vld [vmem:[%s3791_s6] sm:$0xff]  ;;  %s2503_s6 = smov [#allocation3]  }
  0x8b   :  { %368 = vperm.xlu0 %2472, %v340_v53   ;;  %358 = vperm.xlu1 %2473, %v338_v54   ;;  %v139_v18 = vld [vmem:[%s3819_s20 + $0x220] sm:$0xff]  ;;  %v141_v19 = vld [vmem:[%s3819_s20 + $0x230] sm:$0xff]  ;;  %v1189_v20 = vld [vmem:[%s3793_s8 + $0x18] sm:$0xff]  ;;  %s3823_s20 = sld [smem:[#allocation15_spill]] }
  0x8c   :  { %820 = vmatprep.mubr.f32.mxu0 %v92_v56  ;;  %915 = vmatprep.mubr.f32.mxu1 %v94_v57  ;;  %v1188_v21 = vld [vmem:[%s3793_s8 + $0x10] sm:$0xff]  ;;  %v1187_v22 = vld [vmem:[%s3793_s8 + $0x8] sm:$0xff]  ;;  %v1186_v23 = vld [vmem:[%s3793_s8] sm:$0xff] }
  0x8d   :  { %v1316_v24 = vld [vmem:[%s3795_s10] sm:$0xff]  ;;  %v1317_v25 = vld [vmem:[%s3795_s10 + $0x8] sm:$0xff]  ;;  %v1318_v26 = vld [vmem:[%s3795_s10 + $0x10] sm:$0xff] }
  0x8e   :  { %821 = vmatmul.mubr.f32.gmra.mxu0 %v91_v58  ;;  %916 = vmatmul.mubr.f32.gmra.mxu1 %v93_v59  ;;  %v1319_v27 = vld [vmem:[%s3795_s10 + $0x18] sm:$0xff]  ;;  %v1483_v29 = vld [vmem:[%s3796_s11 + $0x10] sm:$0xff]  ;;  %v1482_v31 = vld [vmem:[%s3796_s11 + $0x8] sm:$0xff]  ;;  %s3822_s10 = sld [smem:[#allocation16_spill]] }
  0x8f   :  { %363 = vperm.xlu0 %2472, %v339_v60   ;;  %353 = vperm.xlu1 %2473, %v337_v61   ;;  %v1484_v28 = vld [vmem:[%s3796_s11 + $0x18] sm:$0xff]  ;;  %v1511_v32 = vld [vmem:[%s3797_s12 + $0x10] sm:$0xff]  ;;  %v1481_v33 = vld [vmem:[%s3796_s11] sm:$0xff] }
  0x90   :  { %825 = vmatprep.mubr.f32.mxu0 %v104_v62  ;;  %920 = vmatprep.mubr.f32.mxu1 %v106_v63  ;;  %v1512_v30 = vld [vmem:[%s3797_s12 + $0x18] sm:$0xff]  ;;  %v1510_v34 = vld [vmem:[%s3797_s12 + $0x8] sm:$0xff]  ;;  %v1509_v35 = vld [vmem:[%s3797_s12] sm:$0xff] }
  0x91   :  { %v1548_v36 = vld [vmem:[%s3799_s14 + $0x18] sm:$0xff]  ;;  %v1547_v37 = vld [vmem:[%s3799_s14 + $0x10] sm:$0xff]  ;;  %v1546_v38 = vld [vmem:[%s3799_s14 + $0x8] sm:$0xff] }
  0x92   :  { %826 = vmatmul.mubr.f32.gmra.mxu0 %v103_v0  ;;  %921 = vmatmul.mubr.f32.gmra.mxu1 %v105_v1  ;;  %v1545_v39 = vld [vmem:[%s3799_s14] sm:$0xff]  ;;  %v1675_v41 = vld [vmem:[%s3801_s16 + $0x8] sm:$0xff]  ;;  %v1676_v42 = vld [vmem:[%s3801_s16 + $0x10] sm:$0xff] }
  0x93   :  { %348 = vperm.xlu0 %2472, %v336_v2   ;;  %343 = vperm.xlu1 %2473, %v335_v3   ;;  %v1674_v40 = vld [vmem:[%s3801_s16] sm:$0xff]  ;;  %v1677_v43 = vld [vmem:[%s3801_s16 + $0x18] sm:$0xff]  ;;  %v1839_v45 = vld [vmem:[%s3802_s17 + $0x10] sm:$0xff] }
  0x94   :  { %830 = vmatprep.mubr.f32.mxu0 %v116_v4  ;;  %925 = vmatprep.mubr.f32.mxu1 %v118_v5  ;;  %v1840_v44 = vld [vmem:[%s3802_s17 + $0x18] sm:$0xff]  ;;  %v1838_v47 = vld [vmem:[%s3802_s17 + $0x8] sm:$0xff]  ;;  %v1867_v48 = vld [vmem:[%s3803_s18 + $0x10] sm:$0xff] }
  0x95   :  { %v1868_v46 = vld [vmem:[%s3803_s18 + $0x18] sm:$0xff]  ;;  %v1837_v49 = vld [vmem:[%s3802_s17] sm:$0xff]  ;;  %v1866_v50 = vld [vmem:[%s3803_s18 + $0x8] sm:$0xff] }
  0x96   :  { %831 = vmatmul.mubr.f32.gmra.mxu0 %v115_v6  ;;  %926 = vmatmul.mubr.f32.gmra.mxu1 %v117_v7  ;;  %v1865_v51 = vld [vmem:[%s3803_s18] sm:$0xff]  ;;  %v946_v59 = vld [vmem:[%s3822_s10 + $0x8] sm:$0xff]  ;;  %v947_v61 = vld [vmem:[%s3822_s10 + $0x10] sm:$0xff] }
  0x97   :  { %1171 = vperm.xlu0 %2472, %v1153_v8   ;;  %835 = vmatprep.mubr.f32.mxu0 %v128_v9  ;;  %v1898_v52 = vld [vmem:[#allocation2] sm:$0x1]  ;;  %v948_v63 = vld [vmem:[%s3822_s10 + $0x18] sm:$0xff] }
  0x98   :  { %930 = vmatprep.mubr.f32.mxu1 %v130_v10  ;;  %1166 = vperm.xlu1 %2473, %v1152_v11   ;;  %v949_v53 = vld [vmem:[%s3821_s23] sm:$0x7]  ;;  %s1989_s23 = sshll.u32 %s2503_s6, 4  ;;  %s1990_s23 = int_to_ptr.vmem [resolvable:$true] %s1989_s23 }
  0x99   :  { %2375 = vmatprep.subr.msk.mxu0 %vm963_vm0, %v949_v53  ;;  %v945_v55 = vld [vmem:[%s3822_s10] sm:$0xff]  ;;  %s2478_s17 = scalar_lea.vmem %s1990_s23, 16  ;;  %p2483_p1 = scmp.lt.s32.totalorder %s1990_s23, %s1990_s23 }
  0x9a   :  { %836 = vmatmul.mubr.f32.gmra.mxu0 %v127_v12  ;;  %931 = vmatmul.mubr.f32.gmra.mxu1 %v129_v13  ;;  %v941_v58 = vld [vmem:[%s3823_s20] sm:$0xff]  ;;  %p2479_p0 = scmp.ne.s32.totalorder %s1990_s23, %s2478_s17 }
  0x9b   :  { %1161 = vperm.xlu0 %2472, %v1151_v14   ;;  %840 = vmatprep.mubr.f32.mxu0 %v140_v15 }
  0x9c   :  { %935 = vmatprep.mubr.f32.mxu1 %v142_v16  ;;  %1156 = vperm.xlu1 %2473, %v1150_v17  }
  0x9d   :  { %2376 = vmatpush3.msk.msra.mxu0 %vm963_vm0, %v949_v53 }
  0x9e   :  { %841 = vmatmul.mubr.f32.gmra.mxu0 %v139_v18  ;;  %936 = vmatmul.mubr.f32.gmra.mxu1 %v141_v19 }
  0x9f   :  { %1207 = vperm.xlu0 %2472, %v1189_v20   ;;  %2377 = vmatprep.mubr.msk.f32.mxu0 %vm950_vm1, %v945_v55 }
  0xa0   :  { %1202 = vperm.xlu1 %2473, %v1188_v21   ;;  %2395 = vmatprep.mubr.msk.f32.mxu1 %vm1052_vm2, %v941_v58 }
  0xa2   :  { %2378 = vmatmul.mubr.msk.f32.vlgmr.msra.gmra.mxu0 %vm950_vm1, %v946_v59 }
  0xa3   :  { %1197 = vperm.xlu0 %2472, %v1187_v22   ;;  %2380 = vmatprep.mubr.msk.f32.mxu0 %vm950_vm1, %v947_v61 }
  0xa4   :  { %1192 = vperm.xlu1 %2473, %v1186_v23  }
  0xa6   :  { %2381 = vmatmul.mubr.msk.f32.gmra.mxu0 %vm950_vm1, %v948_v63 }
  0xa7   :  { %1322 = vperm.xlu0 %2472, %v1316_v24  }
  0xa8   :  { %1327 = vperm.xlu1 %2473, %v1317_v25  }
  0xab   :  { %1332 = vperm.xlu0 %2472, %v1318_v26  }
  0xac   :  { %1337 = vperm.xlu1 %2473, %v1319_v27  }
  0xaf   :  { %1502 = vperm.xlu0 %2472, %v1484_v28  }
  0xb0   :  { %1497 = vperm.xlu1 %2473, %v1483_v29  }
  0xb3   :  { %1530 = vperm.xlu0 %2472, %v1512_v30  }
  0xb4   :  { %1492 = vperm.xlu1 %2473, %v1482_v31  }
  0xb7   :  { %1525 = vperm.xlu0 %2472, %v1511_v32  }
  0xb8   :  { %1487 = vperm.xlu1 %2473, %v1481_v33  }
  0xbb   :  { %1520 = vperm.xlu0 %2472, %v1510_v34  }
  0xbc   :  { %1515 = vperm.xlu1 %2473, %v1509_v35  }
  0xbf   :  { %1566 = vperm.xlu0 %2472, %v1548_v36  }
  0xc0   :  { %1561 = vperm.xlu1 %2473, %v1547_v37  }
  0xc3   :  { %1556 = vperm.xlu0 %2472, %v1546_v38  }
  0xc4   :  { %1551 = vperm.xlu1 %2473, %v1545_v39  }
  0xc7   :  { %1680 = vperm.xlu0 %2472, %v1674_v40  }
  0xc8   :  { %1685 = vperm.xlu1 %2473, %v1675_v41  }
  0xcb   :  { %1690 = vperm.xlu0 %2472, %v1676_v42  }
  0xcc   :  { %1695 = vperm.xlu1 %2473, %v1677_v43  }
  0xcf   :  { %1858 = vperm.xlu0 %2472, %v1840_v44  }
  0xd0   :  { %1853 = vperm.xlu1 %2473, %v1839_v45  }
  0xd3   :  { %1886 = vperm.xlu0 %2472, %v1868_v46  }
  0xd4   :  { %1848 = vperm.xlu1 %2473, %v1838_v47  }
  0xd7   :  { %1881 = vperm.xlu0 %2472, %v1867_v48  }
  0xd8   :  { %1843 = vperm.xlu1 %2473, %v1837_v49  }
  0xdb   :  { %1876 = vperm.xlu0 %2472, %v1866_v50  }
  0xdc   :  { %1871 = vperm.xlu1 %2473, %v1865_v51  }
  0xdf   :  { %1901 = vperm.xlu0 %2472, %v1898_v52  }
  0xf0   :  { %v2055_v54 = vpop.f32.mrf.mxu0 }
  0xf2   :  { %v2105_v56 = vpop.f32.mrf.mxu1  ;;  %v2056_v57 = vpop.f32.mrf.mxu0 }
  0xf3   :  { %v2057_v60 = vadd.f32 %v2056_v57, %v2055_v54 }
  0xf4   :  { %v2106_v62 = vpop.f32.mrf.mxu1 }
  0xf5   :  { %v2107_v0 = vadd.f32 %v2106_v62, %v2105_v56 }
  0xfd   :  { %v2058_v1 = vpop.f32.mrf.mxu0 }
  0xff   :  { %v2059_v2 = vpop.f32.mrf.mxu0 }
 0x100   :  { %v2060_v3 = vadd.f32 %v2059_v2, %v2058_v1  ;;  %v2108_v4 = vpop.f32.mrf.mxu1 }
 0x102   :  { %v2109_v5 = vpop.f32.mrf.mxu1 }
 0x103   :  { %v3554_v6 = vpop.f32.mrf.mxu0  ;;  %v2110_v7 = vadd.f32 %v2109_v5, %v2108_v4 }
 0x105   :  { %v3556_v8 = vpop.f32.mrf.mxu0 }
 0x106   :  { %v3558_v9 = vpop.permute.xlu0 %368  ;;  %v3560_v10 = vpop.permute.xlu1 %358 }
 0x107   :  { %v3562_v11 = vpop.f32.mrf.mxu1 }
 0x109   :  { %v2064_v12 = vpop.f32.mrf.mxu0  ;;  %v3564_v13 = vpop.f32.mrf.mxu1 }
 0x10a   :  { %v364_v14 = vpop.permute.xlu0 %363  ;;  %v3566_v15 = vpop.permute.xlu1 %353 }
 0x10b   :  { %v2065_v16 = vpop.f32.mrf.mxu0 }
 0x10c   :  { %v3568_v17 = vpop.f32.mrf.mxu1  ;;  %v2066_v5 = vadd.f32 %v2065_v16, %v2064_v12 }
 0x10e   :  { %v349_v18 = vpop.permute.xlu0 %348  ;;  %v344_v19 = vpop.permute.xlu1 %343 }
 0x10f   :  { %v438_v20 = vadd.f32 %v2057_v60, %v344_v19  ;;  %v443_v21 = vadd.f32 %v2060_v3, %v349_v18  ;;  %v2067_v22 = vpop.f32.mrf.mxu0  ;;  %v2115_v23 = vpop.f32.mrf.mxu1  ;;  %v2063_v19 = vadd.f32 %v3556_v8, %v3554_v6  ;;  %v2113_v6 = vadd.f32 %v3564_v13, %v3562_v11 }
 0x111   :  { %v3570_v24 = vadd.f32 %v2107_v0, %v438_v20  ;;  %v3572_v25 = vadd.f32 %v2110_v7, %v443_v21  ;;  %v2068_v26 = vpop.f32.mrf.mxu0 }
 0x112   :  { %v2117_v27 = vpop.f32.mrf.mxu1  ;;  %v2069_v2 = vadd.f32 %v2068_v26, %v2067_v22  ;;  %v2116_v22 = vadd.f32 %v2115_v23, %v3568_v17 }
 0x114   :  { %v2118_v28 = vpop.f32.mrf.mxu1  ;;  %v458_v21 = vadd.f32 %v2069_v2, %v364_v14 }
 0x115   :  { %v2070_v29 = vpop.f32.mrf.mxu0 }
 0x117   :  { %v2071_v30 = vpop.f32.mrf.mxu0 }
 0x118   :  { %v2120_v31 = vpop.f32.mrf.mxu1  ;;  %v2072_v3 = vadd.f32 %v2071_v30, %v2070_v29  ;;  %v448_v30 = vadd.f32 %v2063_v19, %v3566_v15 }
 0x11a   :  { %v2121_v32 = vpop.f32.mrf.mxu1 }
 0x11c   :  { %v3574_v33 = vpop.f32.mrf.mxu0 }
 0x11e   :  { %v3576_v34 = vpop.f32.mrf.mxu1  ;;  %v3578_v35 = vpop.f32.mrf.mxu0 }
 0x120   :  { %v3580_v36 = vpop.f32.mrf.mxu1 }
 0x122   :  { %v3582_v37 = vpop.f32.mrf.mxu0 }
 0x124   :  { %v2159_v39 = vpop.f32.mrf.mxu0 }
 0x125   :  { %v3584_v38 = vpop.f32.mrf.mxu1 }
 0x127   :  { %v3586_v40 = vpop.f32.mrf.mxu1 }
 0x128   :  { %v2161_v41 = vpop.f32.mrf.mxu0 }
 0x12a   :  { %v2162_v43 = vpop.f32.mrf.mxu0 }
 0x12b   :  { %v3588_v42 = vpop.f32.mrf.mxu1 }
 0x12d   :  { %v3590_v44 = vpop.f32.mrf.mxu1 }
 0x12e   :  { %v2164_v45 = vpop.f32.mrf.mxu0 }
 0x130   :  { %v2165_v47 = vpop.f32.mrf.mxu0 }
 0x131   :  { %v2214_v46 = vpop.f32.mrf.mxu1  ;;  %v2166_v8 = vadd.f32 %v2165_v47, %v2164_v45  ;;  %v2157_v45 = vadd.f32 %v3578_v35, %v3574_v33 }
 0x133   :  { %v2215_v48 = vpop.f32.mrf.mxu1  ;;  %v628_v35 = vadd.f32 %v2157_v45, %v3570_v24 }
 0x134   :  { %v2167_v49 = vpop.f32.mrf.mxu0 }
 0x136   :  { %v2168_v51 = vpop.f32.mrf.mxu0 }
 0x137   :  { %v2169_v29 = vadd.f32 %v2168_v51, %v2167_v49  ;;  %v543_v51 = vadd.f32 %v2113_v6, %v448_v30 }
 0x138   :  { %v2217_v50 = vpop.f32.mrf.mxu1 }
 0x13a   :  { %v2218_v52 = vpop.f32.mrf.mxu1  ;;  %v2170_v53 = vpop.f32.mrf.mxu0 }
 0x13c   :  { %v2171_v55 = vpop.f32.mrf.mxu0 }
 0x13d   :  { %v2172_v12 = vadd.f32 %v2171_v55, %v2170_v53  ;;  %v2160_v53 = vadd.f32 %v2159_v39, %v3582_v37  ;;  %v2216_v55 = vadd.f32 %v2215_v48, %v2214_v46  ;;  %v2210_v39 = vadd.f32 %v3586_v40, %v3584_v38 }
 0x13e   :  { %v2220_v54 = vpop.f32.mrf.mxu1 }
 0x13f   :  { %v633_v37 = vadd.f32 %v2160_v53, %v3572_v25 }
 0x140   :  { %v2221_v56 = vpop.f32.mrf.mxu1 }
 0x141   :  { %v2222_v23 = vadd.f32 %v2221_v56, %v2220_v54 }
 0x14a   :  { %v3592_v57 = vpop.f32.mrf.mxu0  ;;  %v3594_v58 = vpop.f32.mrf.mxu1 }
 0x14b   :  { %3824 = vst [vmem:[#allocation6_spill] sm:$0xff] %v3594_v58  ;;  %v463_v58 = vadd.f32 %v2072_v3, %v3558_v9  ;;  %v2219_v3 = vadd.f32 %v2218_v52, %v2217_v50 }
 0x14c   :  { %v3596_v59 = vpop.f32.mrf.mxu0  ;;  %v3598_v60 = vpop.f32.mrf.mxu1 }
 0x14d   :  { %3825 = vst [vmem:[#allocation7_spill] sm:$0xff] %v3596_v59  ;;  %3826 = vst [vmem:[#allocation8_spill] sm:$0xff] %v3598_v60  ;;  %v2119_v60 = vadd.f32 %v2118_v28, %v2117_v27 }
 0x14e   :  { %v3600_v61 = vpop.f32.mrf.mxu0  ;;  %v3602_v62 = vpop.f32.mrf.mxu1 }
 0x14f   :  { %3827 = vst [vmem:[#allocation9_spill] sm:$0xff] %v3602_v62  ;;  %v2122_v62 = vadd.f32 %v2121_v32, %v2120_v31  ;;  %v553_v27 = vadd.f32 %v2119_v60, %v458_v21  ;;  %v2163_v32 = vadd.f32 %v2162_v43, %v2161_v41  ;;  %v2213_v41 = vadd.f32 %v3590_v44, %v3588_v42 }
 0x150   :  { %v3604_v63 = vpop.f32.mrf.mxu0  ;;  %v3606_v0 = vpop.f32.mrf.mxu1  ;;  %v2207_v42 = vadd.f32 %v3580_v36, %v3576_v34  ;;  %v728_v21 = vadd.f32 %v2210_v39, %v633_v37  ;;  %v1185_v37 = vld [vmem:[%s3792_s7 + $0x18] sm:$0xff]  ;;  %v1312_v39 = vld [vmem:[%s3794_s9] sm:$0xff] }
 0x151   :  { %3828 = vst [vmem:[#allocation10_spill] sm:$0xff] %v3606_v0  ;;  %v453_v0 = vadd.f32 %v2066_v5, %v3560_v10  ;;  %v558_v28 = vadd.f32 %v2122_v62, %v463_v58  ;;  %v648_v10 = vadd.f32 %v2169_v29, %v553_v27  ;;  %v638_v47 = vadd.f32 %v2163_v32, %v543_v51  ;;  %v1182_v27 = vld [vmem:[%s3792_s7] sm:$0xff]  ;;  %v1172_v32 = vpop.permute.xlu0 %1171 }
 0x152   :  { %v2261_v1 = vpop.f32.mrf.mxu0  ;;  %v3608_v4 = vpop.f32.mrf.mxu1  ;;  %v723_v24 = vadd.f32 %v2207_v42, %v628_v35  ;;  %2409 = vmatprep.mubr.msk.f32.mxu0 %vm1210_vm3, %v1182_v27 }
 0x153   :  { %v548_v31 = vadd.f32 %v2116_v22, %v453_v0  ;;  %v653_v17 = vadd.f32 %v2172_v12, %v558_v28  ;;  %v743_v50 = vadd.f32 %v2219_v3, %v648_v10  ;;  %v733_v44 = vadd.f32 %v2213_v41, %v638_v47  ;;  %v1167_v3 = vpop.permute.xlu1 %1166 }
 0x154   :  { %v2262_v7 = vpop.f32.mrf.mxu0  ;;  %v3610_v18 = vpop.f32.mrf.mxu1  ;;  %v2260_v0 = vadd.f32 %v3604_v63, %v3600_v61  ;;  %v3829_v38 = vld [vmem:[#allocation7_spill] sm:$0xff] }
 0x155   :  { %v643_v15 = vadd.f32 %v2166_v8, %v548_v31  ;;  %v748_v52 = vadd.f32 %v2222_v23, %v653_v17  ;;  %v2263_v48 = vadd.f32 %v2262_v7, %v2261_v1  ;;  %v2257_v40 = vadd.f32 %v3829_v38, %v3592_v57  ;;  %v3832_v57 = vld [vmem:[#allocation6_spill] sm:$0xff] }
 0x156   :  { %v2264_v20 = vpop.f32.mrf.mxu0  ;;  %v2314_v59 = vpop.f32.mrf.mxu1  ;;  %v2313_v34 = vadd.f32 %v3610_v18, %v3608_v4  ;;  %v3830_v63 = vld [vmem:[#allocation9_spill] sm:$0xff]  ;;  %v942_v4 = vld [vmem:[%s3823_s20 + $0x8] sm:$0xff]  ;;  %v943_v18 = vld [vmem:[%s3823_s20 + $0x10] sm:$0xff] }
 0x157   :  { %v738_v46 = vadd.f32 %v2216_v55, %v643_v15  ;;  %v828_v1 = vadd.f32 %v2263_v48, %v733_v44  ;;  %v818_v61 = vadd.f32 %v2257_v40, %v723_v24  ;;  %v1157_v41 = vpop.permute.xlu1 %1156  ;;  %v1315_v24 = vld [vmem:[%s3794_s9 + $0x18] sm:$0xff] }
 0x158   :  { %v2265_v26 = vpop.f32.mrf.mxu0  ;;  %v2315_v16 = vpop.f32.mrf.mxu1  ;;  %v3831_v29 = vld [vmem:[#allocation10_spill] sm:$0xff] }
 0x159   :  { %v2266_v54 = vadd.f32 %v2265_v26, %v2264_v20  ;;  %v2316_v7 = vadd.f32 %v2315_v16, %v2314_v59  ;;  %v823_v26 = vadd.f32 %v2260_v0, %v728_v21  ;;  %v2310_v12 = vadd.f32 %v3831_v29, %v3830_v63  ;;  %v3833_v59 = vld [vmem:[#allocation8_spill] sm:$0xff] }
 0x15a   :  { %v2267_v14 = vpop.f32.mrf.mxu0  ;;  %v2317_v9 = vpop.f32.mrf.mxu1  ;;  %v923_v30 = vadd.f32 %v2313_v34, %v828_v1  ;;  %v2307_v16 = vadd.f32 %v3833_v59, %v3832_v57 }
 0x15b   :  { %v833_v19 = vadd.f32 %v2266_v54, %v738_v46  ;;  %v918_v6 = vadd.f32 %v2310_v12, %v823_v26  ;;  %v1541_v26 = vld [vmem:[%s3798_s13] sm:$0xff] }
 0x15c   :  { %v2268_v2 = vpop.f32.mrf.mxu0  ;;  %v2318_v49 = vpop.f32.mrf.mxu1  ;;  %v913_v8 = vadd.f32 %v2307_v16, %v818_v61 }
 0x15d   :  { %v2269_v11 = vadd.f32 %v2268_v2, %v2267_v14  ;;  %v2319_v20 = vadd.f32 %v2318_v49, %v2317_v9  ;;  %v928_v36 = vadd.f32 %v2316_v7, %v833_v19  ;;  %v944_v14 = vld [vmem:[%s3823_s20 + $0x18] sm:$0xff]  ;;  %v1313_v7 = vld [vmem:[%s3794_s9 + $0x8] sm:$0xff] }
 0x15e   :  { %v2270_v5 = vpop.f32.mrf.mxu0  ;;  %v2320_v13 = vpop.f32.mrf.mxu1 }
 0x15f   :  { %v838_v60 = vadd.f32 %v2269_v11, %v743_v50  ;;  %v1162_v11 = vpop.permute.xlu0 %1161 }
 0x160   :  { %v2271_v43 = vpop.f32.mrf.mxu0  ;;  %v2321_v58 = vpop.f32.mrf.mxu1 }
 0x161   :  { %v2272_v56 = vadd.f32 %v2271_v43, %v2270_v5  ;;  %v2322_v33 = vadd.f32 %v2321_v58, %v2320_v13  ;;  %v933_v22 = vadd.f32 %v2319_v20, %v838_v60  ;;  %v1184_v58 = vld [vmem:[%s3792_s7 + $0x10] sm:$0xff]  ;;  %v1203_v60 = vpop.permute.xlu1 %1202 }
 0x162   :  { %v2379_v28 = vpop.f32.mrf.mxu0 }
 0x163   :  { %v843_v62 = vadd.f32 %v2272_v56, %v748_v52  ;;  %v1183_v56 = vld [vmem:[%s3792_s7 + $0x8] sm:$0xff]  ;;  %v1208_v46 = vpop.permute.xlu0 %1207 }
 0x164   :  { %v1033_v9 = vpop.f32.mrf.mxu0 }
 0x165   :  { %v938_v25 = vadd.f32 %v2322_v33, %v843_v62 }
 0x166   :  { %v2382_v10 = vpop.f32.mrf.mxu0 }
 0x167   :  { %2383 = vmatprep.subr.mxu1 %v938_v25  ;;  %v1198_v42 = vpop.permute.xlu0 %1197 }
 0x168   :  { %2384 = vmatpush3.msra.mxu1 %v938_v25  ;;  %v1043_v51 = vpop.f32.mrf.mxu0  ;;  %v1193_v25 = vpop.permute.xlu1 %1192 }
 0x169   :  { %2385 = vmatprep.subr.mxu1 %v933_v22 }
 0x16a   :  { %2386 = vmatpush3.msra.mxu1 %v933_v22  ;;  %v1314_v22 = vld [vmem:[%s3794_s9 + $0x10] sm:$0xff] }
 0x16b   :  { %2387 = vmatprep.subr.mxu1 %v928_v36  ;;  %v1323_v34 = vpop.permute.xlu0 %1322 }
 0x16c   :  { %2388 = vmatpush3.msra.mxu1 %v928_v36  ;;  %v1328_v36 = vpop.permute.xlu1 %1327 }
 0x16d   :  { %2389 = vmatprep.subr.mxu1 %v923_v30 }
 0x16e   :  { %2390 = vmatpush3.msra.mxu1 %v923_v30 }
 0x16f   :  { %2391 = vmatprep.subr.mxu1 %v918_v6  ;;  %v1333_v57 = vpop.permute.xlu0 %1332 }
 0x170   :  { %2392 = vmatpush3.msra.mxu1 %v918_v6  ;;  %v1338_v16 = vpop.permute.xlu1 %1337 }
 0x171   :  { %2393 = vmatprep.subr.mxu1 %v913_v8 }
 0x172   :  { %2394 = vmatpush3.msra.mxu1 %v913_v8 }
 0x173   :  { %2396 = vmatmul.mubr.msk.f32.vlgmr.msra.gmra.mxu1 %vm1052_vm2, %v942_v4 }
 0x174   :  { %2398 = vmatprep.mubr.msk.f32.mxu1 %vm1052_vm2, %v943_v18 }
 0x177   :  { %2399 = vmatmul.mubr.msk.f32.gmra.mxu1 %vm1052_vm2, %v944_v14 }
 0x178   :  { %2423 = vmatprep.mubr.msk.f32.mxu1 %vm1210_vm3, %v1312_v39 }
 0x233   :  { %v2397_v31 = vpop.f32.mrf.mxu1 }
 0x234   :  { %v1137_v23 = vadd.f32 %v2397_v31, %v2379_v28 }
 0x235   :  { %v1131_v2 = vpop.f32.mrf.mxu1 }
 0x236   :  { %v1132_v15 = vadd.f32 %v1131_v2, %v1033_v9  ;;  %v1175_v13 = vadd.f32 %v1162_v11, %v1137_v23 }
 0x237   :  { %v2400_v17 = vpop.f32.mrf.mxu1 }
 0x238   :  { %v1147_v49 = vadd.f32 %v2400_v17, %v2382_v10  ;;  %v1174_v43 = vadd.f32 %v1157_v41, %v1132_v15  ;;  %v3663_v52 = vmax.f32 %v1175_v13, 0.0 }
 0x239   :  { %v1141_v53 = vpop.f32.mrf.mxu1 }
 0x23a   :  { %v1177_v55 = vadd.f32 %v1172_v32, %v1147_v49  ;;  %v1142_v5 = vadd.f32 %v1141_v53, %v1043_v51  ;;  %v3667_v54 = vmax.f32 %v1174_v43, 0.0 }
 0x23c   :  { %v3657_v45 = vmax.f32 %v1177_v55, 0.0  ;;  %v1176_v47 = vadd.f32 %v1167_v3, %v1142_v5 }
 0x23e   :  { %v3659_v50 = vmax.f32 %v1176_v47, 0.0  ;;  %2401 = vmatprep.subr.mxu0 %v3657_v45 }
 0x23f   :  { %2402 = vmatpush3.msra.mxu0 %v3657_v45 }
 0x240   :  { %2403 = vmatprep.subr.mxu0 %v3659_v50 }
 0x241   :  { %2404 = vmatpush3.msra.mxu0 %v3659_v50 }
 0x242   :  { %2405 = vmatprep.subr.mxu0 %v3663_v52 }
 0x243   :  { %2406 = vmatpush3.msra.mxu0 %v3663_v52 }
 0x244   :  { %2407 = vmatprep.subr.mxu0 %v3667_v54 }
 0x245   :  { %2408 = vmatpush3.msra.mxu0 %v3667_v54 }
 0x246   :  { %2410 = vmatmul.mubr.msk.f32.vlgmr.msra.gmra.mxu0 %vm1210_vm3, %v1183_v56 }
 0x247   :  { %2412 = vmatprep.mubr.msk.f32.mxu0 %vm1210_vm3, %v1184_v58 }
 0x24a   :  { %2413 = vmatmul.mubr.msk.f32.gmra.mxu0 %vm1210_vm3, %v1185_v37 }
 0x24b   :  { %2437 = vmatprep.mubr.msk.f32.mxu0 %vm1210_vm3, %v1541_v26 }
 0x306   :  { %v2411_v48 = vpop.f32.mrf.mxu0 }
 0x307   :  { %v1295_v0 = vadd.f32 %v2411_v48, %v1198_v42 }
 0x308   :  { %v1289_v62 = vpop.f32.mrf.mxu0 }
 0x309   :  { %v1290_v21 = vadd.f32 %v1289_v62, %v1193_v25  ;;  %v1309_v40 = vmax.f32 %v1295_v0, 0.0 }
 0x30a   :  { %v2414_v33 = vpop.f32.mrf.mxu0 }
 0x30b   :  { %v1305_v35 = vadd.f32 %v2414_v33, %v1208_v46  ;;  %v1308_v1 = vmax.f32 %v1290_v21, 0.0 }
 0x30c   :  { %v1299_v44 = vpop.f32.mrf.mxu0 }
 0x30d   :  { %v1311_v19 = vmax.f32 %v1305_v35, 0.0  ;;  %v1300_v20 = vadd.f32 %v1299_v44, %v1203_v60 }
 0x30f   :  { %v1310_v38 = vmax.f32 %v1300_v20, 0.0  ;;  %2415 = vmatprep.subr.mxu1 %v1311_v19  ;;  %v1498_v20 = vpop.permute.xlu1 %1497 }
 0x310   :  { %2416 = vmatpush3.msra.mxu1 %v1311_v19  ;;  %v1503_v19 = vpop.permute.xlu0 %1502 }
 0x311   :  { %2417 = vmatprep.subr.mxu1 %v1310_v38 }
 0x312   :  { %2418 = vmatpush3.msra.mxu1 %v1310_v38 }
 0x313   :  { %2419 = vmatprep.subr.mxu1 %v1309_v40  ;;  %v1493_v21 = vpop.permute.xlu1 %1492 }
 0x314   :  { %2420 = vmatpush3.msra.mxu1 %v1309_v40  ;;  %v1531_v25 = vpop.permute.xlu0 %1530 }
 0x315   :  { %2421 = vmatprep.subr.mxu1 %v1308_v1 }
 0x316   :  { %2422 = vmatpush3.msra.mxu1 %v1308_v1 }
 0x317   :  { %2424 = vmatmul.mubr.msk.f32.vlgmr.msra.gmra.mxu1 %vm1210_vm3, %v1313_v7  ;;  %v1488_v26 = vpop.permute.xlu1 %1487 }
 0x318   :  { %2426 = vmatprep.mubr.msk.f32.mxu1 %vm1210_vm3, %v1314_v22  ;;  %v1526_v40 = vpop.permute.xlu0 %1525 }
 0x31b   :  { %2427 = vmatmul.mubr.msk.f32.gmra.mxu1 %vm1210_vm3, %v1315_v24 }
 0x3d7   :  { %v2425_v61 = vpop.f32.mrf.mxu1 }
 0x3d8   :  { %v1424_v29 = vadd.f32 %v2425_v61, %v1328_v36 }
 0x3d9   :  { %v1418_v63 = vpop.f32.mrf.mxu1 }
 0x3da   :  { %v1419_v12 = vadd.f32 %v1418_v63, %v1323_v34  ;;  %v1439_v8 = vsel %vm1437_vm4, %v1424_v29, 0.0 }
 0x3db   :  { %v2428_v30 = vpop.f32.mrf.mxu1 }
 0x3dc   :  { %v1438_v59 = vsel %vm1437_vm4, %v1419_v12, 0.0  ;;  %v1434_v4 = vadd.f32 %v2428_v30, %v1338_v16  ;;  %v1521_v30 = vpop.permute.xlu0 %1520  ;;  %v1516_v16 = vpop.permute.xlu1 %1515 }
 0x3dd   :  { %v1428_v6 = vpop.f32.mrf.mxu1  ;;  %v1440_v14 = vadd.f32 %v1439_v8, %v1438_v59 }
 0x3de   :  { %v1429_v18 = vadd.f32 %v1428_v6, %v1333_v57  ;;  %v1443_v9 = vsel %vm1437_vm4, %v1434_v4, 0.0 }
 0x3e0   :  { %v1441_v27 = vsel %vm1437_vm4, %v1429_v18, 0.0 }
 0x3e1   :  { %v1442_v28 = vadd.f32 %v1441_v27, %v1440_v14  ;;  %v1567_v14 = vpop.permute.xlu0 %1566 }
 0x3e3   :  { %v1444_v31 = vadd.f32 %v1443_v9, %v1442_v28  ;;  %v1562_v28 = vpop.permute.xlu1 %1561 }
 0x3e5   :  { %v1445_v32 = vrot.slane %v1444_v31, 4 }
 0x3e7   :  { %v1446_v2 = vadd.f32 %v1445_v32, %v1444_v31 }
 0x3e9   :  { %v1447_v10 = vrot.slane %v1446_v2, 2 }
 0x3eb   :  { %v1448_v3 = vadd.f32 %v1447_v10, %v1446_v2  ;;  %v1557_v2 = vpop.permute.xlu0 %1556 }
 0x3ed   :  { %v1449_v17 = vrot.slane %v1448_v3, 1 }
 0x3ef   :  { %v1450_v23 = vadd.f32 %v1449_v17, %v1448_v3 }
 0x3f1   :  { %v1452_v49 = vmul.f32 0.03125, %v1450_v23 }
 0x3f3   :  { %v1453_v51 = vsub.f32 %v1419_v12, %v1452_v49  ;;  %v1454_v53 = vsub.f32 %v1424_v29, %v1452_v49  ;;  %v1455_v15 = vsub.f32 %v1429_v18, %v1452_v49  ;;  %v1456_v55 = vsub.f32 %v1434_v4, %v1452_v49  ;;  %v1670_v18 = vld [vmem:[%s3800_s15] sm:$0xff]  ;;  %v1552_v49 = vpop.permute.xlu1 %1551 }
 0x3f4   :  { %2451 = vmatprep.mubr.msk.f32.mxu1 %vm1210_vm3, %v1670_v18 }
 0x3f5   :  { %v1457_v5 = vmul.f32 %v1453_v51, %v1453_v51  ;;  %v1458_v11 = vmul.f32 %v1454_v53, %v1454_v53  ;;  %v1459_v13 = vmul.f32 %v1455_v15, %v1455_v15  ;;  %v1460_v47 = vmul.f32 %v1456_v55, %v1456_v55 }
 0x3f7   :  { %v1461_v41 = vsel %vm1437_vm4, %v1457_v5, 0.0  ;;  %v1462_v43 = vsel %vm1437_vm4, %v1458_v11, 0.0  ;;  %v1464_v58 = vsel %vm1437_vm4, %v1459_v13, 0.0  ;;  %v1466_v39 = vsel %vm1437_vm4, %v1460_v47, 0.0  ;;  %v1671_v5 = vld [vmem:[%s3800_s15 + $0x8] sm:$0xff]  ;;  %v1672_v11 = vld [vmem:[%s3800_s15 + $0x10] sm:$0xff] }
 0x3f8   :  { %v1463_v56 = vadd.f32 %v1462_v43, %v1461_v41  ;;  %v1673_v13 = vld [vmem:[%s3800_s15 + $0x18] sm:$0xff]  ;;  %v2501_v47 = vmov 0.0   ;;  %v1681_v41 = vpop.permute.xlu0 %1680  ;;  %v1686_v43 = vpop.permute.xlu1 %1685 }
 0x3fa   :  { %v1465_v37 = vadd.f32 %v1464_v58, %v1463_v56 }
 0x3fc   :  { %v1467_v46 = vadd.f32 %v1466_v39, %v1465_v37 }
 0x3fe   :  { %v1468_v48 = vrot.slane %v1467_v46, 4 }
 0x400   :  { %v1469_v60 = vadd.f32 %v1468_v48, %v1467_v46  ;;  %v1691_v48 = vpop.permute.xlu0 %1690 }
 0x402   :  { %v1470_v62 = vrot.slane %v1469_v60, 2 }
 0x404   :  { %v1471_v33 = vadd.f32 %v1470_v62, %v1469_v60  ;;  %v1696_v62 = vpop.permute.xlu1 %1695 }
 0x406   :  { %v1472_v35 = vrot.slane %v1471_v33, 1 }
 0x408   :  { %v1473_v42 = vadd.f32 %v1472_v35, %v1471_v33 }
 0x40a   :  { %v1474_v44 = vmul.f32 0.03125, %v1473_v42 }
 0x40c   :  { %v1475_v0 = vadd.f32 1e-05, %v1474_v44 }
 0x40e   :  { %2474 = vrsqrt.f32 %v1475_v0 }
 0x41b   :  { %v2475_v38 = vpop.eup %2474 }
 0x41c   :  { %v1479_v1 = vmul.f32 %v2475_v38, %v1455_v15  ;;  %v1480_v7 = vmul.f32 %v2475_v38, %v1456_v55  ;;  %v1478_v22 = vmul.f32 %v2475_v38, %v1454_v53  ;;  %v1477_v24 = vmul.f32 %v2475_v38, %v1453_v51 }
 0x41e   :  { %v1507_v34 = vmul.f32 %v1498_v20, %v1479_v1  ;;  %v1508_v36 = vmul.f32 %v1503_v19, %v1480_v7  ;;  %v1506_v61 = vmul.f32 %v1493_v21, %v1478_v22  ;;  %v1505_v12 = vmul.f32 %v1488_v26, %v1477_v24 }
 0x420   :  { %v1536_v63 = vadd.f32 %v1531_v25, %v1508_v36  ;;  %v1535_v29 = vadd.f32 %v1526_v40, %v1507_v34  ;;  %v1534_v59 = vadd.f32 %v1521_v30, %v1506_v61  ;;  %v1533_v8 = vadd.f32 %v1516_v16, %v1505_v12 }
 0x422   :  { %v3714_v57 = vadd.f32 %v1536_v63, %v3657_v45  ;;  %v3718_v6 = vadd.f32 %v1535_v29, %v3659_v50  ;;  %v3723_v4 = vadd.f32 %v1534_v59, %v3663_v52  ;;  %v3728_v45 = vadd.f32 %v1533_v8, %v3667_v54  ;;  %v1542_v50 = vld [vmem:[%s3798_s13 + $0x8] sm:$0xff]  ;;  %v1543_v52 = vld [vmem:[%s3798_s13 + $0x10] sm:$0xff]  ;;  %v1544_v54 = vld [vmem:[%s3798_s13 + $0x18] sm:$0xff] }
 0x424   :  { %2429 = vmatprep.subr.mxu0 %v3714_v57 }
 0x425   :  { %2430 = vmatpush3.msra.mxu0 %v3714_v57 }
 0x426   :  { %2431 = vmatprep.subr.mxu0 %v3718_v6 }
 0x427   :  { %2432 = vmatpush3.msra.mxu0 %v3718_v6 }
 0x428   :  { %2433 = vmatprep.subr.mxu0 %v3723_v4 }
 0x429   :  { %2434 = vmatpush3.msra.mxu0 %v3723_v4 }
 0x42a   :  { %2435 = vmatprep.subr.mxu0 %v3728_v45 }
 0x42b   :  { %2436 = vmatpush3.msra.mxu0 %v3728_v45 }
 0x42c   :  { %2438 = vmatmul.mubr.msk.f32.vlgmr.msra.gmra.mxu0 %vm1210_vm3, %v1542_v50  ;;  %2457 = vmatprep.subr.mxu0 %v2501_v47 }
 0x42d   :  { %2440 = vmatprep.mubr.msk.f32.mxu0 %vm1210_vm3, %v1543_v52 }
 0x430   :  { %2441 = vmatmul.mubr.msk.f32.gmra.mxu0 %vm1210_vm3, %v1544_v54 }
 0x431   :  { %2465 = vmatprep.mubr.msk.f32.mxu0 %vm2502_vm5, %v2501_v47 }
 0x4ec   :  { %v2439_v27 = vpop.f32.mrf.mxu0 }
 0x4ed   :  { %v1653_v3 = vadd.f32 %v2439_v27, %v1557_v2 }
 0x4ee   :  { %v1647_v9 = vpop.f32.mrf.mxu0 }
 0x4ef   :  { %v1648_v51 = vadd.f32 %v1647_v9, %v1552_v49  ;;  %v1667_v15 = vmax.f32 %v1653_v3, 0.0 }
 0x4f0   :  { %v2442_v31 = vpop.f32.mrf.mxu0 }
 0x4f1   :  { %v1663_v32 = vadd.f32 %v2442_v31, %v1567_v14  ;;  %v1666_v55 = vmax.f32 %v1648_v51, 0.0 }
 0x4f2   :  { %v1657_v10 = vpop.f32.mrf.mxu0 }
 0x4f3   :  { %v1669_v17 = vmax.f32 %v1663_v32, 0.0  ;;  %v1658_v23 = vadd.f32 %v1657_v10, %v1562_v28 }
 0x4f5   :  { %v1668_v53 = vmax.f32 %v1658_v23, 0.0  ;;  %2443 = vmatprep.subr.mxu1 %v1669_v17  ;;  %v1854_v23 = vpop.permute.xlu1 %1853 }
 0x4f6   :  { %2444 = vmatpush3.msra.mxu1 %v1669_v17  ;;  %v1859_v17 = vpop.permute.xlu0 %1858 }
 0x4f7   :  { %2445 = vmatprep.subr.mxu1 %v1668_v53 }
 0x4f8   :  { %2446 = vmatpush3.msra.mxu1 %v1668_v53 }
 0x4f9   :  { %2447 = vmatprep.subr.mxu1 %v1667_v15  ;;  %v1849_v51 = vpop.permute.xlu1 %1848 }
 0x4fa   :  { %2448 = vmatpush3.msra.mxu1 %v1667_v15  ;;  %v1887_v49 = vpop.permute.xlu0 %1886 }
 0x4fb   :  { %2449 = vmatprep.subr.mxu1 %v1666_v55 }
 0x4fc   :  { %2450 = vmatpush3.msra.mxu1 %v1666_v55 }
 0x4fd   :  { %2452 = vmatmul.mubr.msk.f32.vlgmr.msra.gmra.mxu1 %vm1210_vm3, %v1671_v5 }
 0x4fe   :  { %2454 = vmatprep.mubr.msk.f32.mxu1 %vm1210_vm3, %v1672_v11  ;;  %v1882_v15 = vpop.permute.xlu0 %1881 }
 0x501   :  { %2455 = vmatmul.mubr.msk.f32.gmra.mxu1 %vm1210_vm3, %v1673_v13 }
 0x5bd   :  { %v2453_v56 = vpop.f32.mrf.mxu1 }
 0x5be   :  { %v1782_v37 = vadd.f32 %v2453_v56, %v1686_v43 }
 0x5bf   :  { %v1776_v58 = vpop.f32.mrf.mxu1 }
 0x5c0   :  { %v1777_v39 = vadd.f32 %v1776_v58, %v1681_v41  ;;  %v1796_v35 = vsel %vm1437_vm4, %v1782_v37, 0.0  ;;  %v1844_v41 = vpop.permute.xlu1 %1843 }
 0x5c1   :  { %v2456_v46 = vpop.f32.mrf.mxu1 }
 0x5c2   :  { %v1795_v60 = vsel %vm1437_vm4, %v1777_v39, 0.0  ;;  %v1792_v42 = vadd.f32 %v2456_v46, %v1696_v62 }
 0x5c3   :  { %v1786_v33 = vpop.f32.mrf.mxu1  ;;  %v1797_v0 = vadd.f32 %v1796_v35, %v1795_v60 }
 0x5c4   :  { %v1787_v44 = vadd.f32 %v1786_v33, %v1691_v48  ;;  %v1800_v25 = vsel %vm1437_vm4, %v1792_v42, 0.0  ;;  %v1877_v48 = vpop.permute.xlu0 %1876  ;;  %v1872_v33 = vpop.permute.xlu1 %1871 }
 0x5c6   :  { %v1798_v19 = vsel %vm1437_vm4, %v1787_v44, 0.0 }
 0x5c7   :  { %v1799_v20 = vadd.f32 %v1798_v19, %v1797_v0 }
 0x5c9   :  { %v1801_v21 = vadd.f32 %v1800_v25, %v1799_v20  ;;  %v1902_v25 = vpop.permute.xlu0 %1901 }
 0x5cb   :  { %v1802_v38 = vrot.slane %v1801_v21, 4 }
 0x5cd   :  { %v1803_v40 = vadd.f32 %v1802_v38, %v1801_v21 }
 0x5cf   :  { %v1804_v1 = vrot.slane %v1803_v40, 2 }
 0x5d1   :  { %v1805_v7 = vadd.f32 %v1804_v1, %v1803_v40 }
 0x5d3   :  { %v1806_v22 = vrot.slane %v1805_v7, 1 }
 0x5d5   :  { %v1807_v24 = vadd.f32 %v1806_v22, %v1805_v7 }
 0x5d7   :  { %v1808_v26 = vmul.f32 0.03125, %v1807_v24 }
 0x5d9   :  { %v1809_v34 = vsub.f32 %v1777_v39, %v1808_v26  ;;  %v1810_v36 = vsub.f32 %v1782_v37, %v1808_v26  ;;  %v1811_v61 = vsub.f32 %v1787_v44, %v1808_v26  ;;  %v1812_v63 = vsub.f32 %v1792_v42, %v1808_v26 }
 0x5db   :  { %v1813_v29 = vmul.f32 %v1809_v34, %v1809_v34  ;;  %v1814_v12 = vmul.f32 %v1810_v36, %v1810_v36  ;;  %v1815_v30 = vmul.f32 %v1811_v61, %v1811_v61  ;;  %v1816_v59 = vmul.f32 %v1812_v63, %v1812_v63 }
 0x5dd   :  { %v1817_v16 = vsel %vm1437_vm4, %v1813_v29, 0.0  ;;  %v1818_v8 = vsel %vm1437_vm4, %v1814_v12, 0.0  ;;  %v1820_v52 = vsel %vm1437_vm4, %v1815_v30, 0.0  ;;  %v1822_v18 = vsel %vm1437_vm4, %v1816_v59, 0.0 }
 0x5de   :  { %v1819_v50 = vadd.f32 %v1818_v8, %v1817_v16 }
 0x5e0   :  { %v1821_v54 = vadd.f32 %v1820_v52, %v1819_v50 }
 0x5e2   :  { %v1823_v14 = vadd.f32 %v1822_v18, %v1821_v54 }
 0x5e4   :  { %v1824_v27 = vrot.slane %v1823_v14, 4 }
 0x5e6   :  { %v1825_v28 = vadd.f32 %v1824_v27, %v1823_v14 }
 0x5e8   :  { %v1826_v9 = vrot.slane %v1825_v28, 2 }
 0x5ea   :  { %v1827_v31 = vadd.f32 %v1826_v9, %v1825_v28 }
 0x5ec   :  { %v1828_v32 = vrot.slane %v1827_v31, 1 }
 0x5ee   :  { %v1829_v2 = vadd.f32 %v1828_v32, %v1827_v31 }
 0x5f0   :  { %v1830_v10 = vmul.f32 0.03125, %v1829_v2 }
 0x5f2   :  { %v1831_v3 = vadd.f32 1e-05, %v1830_v10 }
 0x5f4   :  { %2476 = vrsqrt.f32 %v1831_v3 }
 0x601   :  { %v2477_v53 = vpop.eup %2476 }
 0x602   :  { %v1835_v55 = vmul.f32 %v2477_v53, %v1811_v61  ;;  %v1836_v5 = vmul.f32 %v2477_v53, %v1812_v63  ;;  %v1834_v11 = vmul.f32 %v2477_v53, %v1810_v36  ;;  %v1833_v13 = vmul.f32 %v2477_v53, %v1809_v34 }
 0x604   :  { %v1863_v43 = vmul.f32 %v1854_v23, %v1835_v55  ;;  %v1864_v56 = vmul.f32 %v1859_v17, %v1836_v5  ;;  %v1862_v58 = vmul.f32 %v1849_v51, %v1834_v11  ;;  %v1861_v46 = vmul.f32 %v1844_v41, %v1833_v13 }
 0x606   :  { %v1891_v37 = vadd.f32 %v1882_v15, %v1863_v43  ;;  %v1892_v39 = vadd.f32 %v1887_v49, %v1864_v56  ;;  %v1890_v62 = vadd.f32 %v1877_v48, %v1862_v58  ;;  %v1889_v42 = vadd.f32 %v1872_v33, %v1861_v46 }
 0x608   :  { %v1896_v60 = vadd.f32 %v1892_v39, %v3714_v57  ;;  %v1895_v35 = vadd.f32 %v1891_v37, %v3718_v6  ;;  %v1894_v44 = vadd.f32 %v1890_v62, %v3723_v4  ;;  %v1893_v0 = vadd.f32 %v1889_v42, %v3728_v45  ;;  %v1897_v57 = vld [vmem:[%s3804_s19] sm:$0x1]  ;;  %s2482_s19 = scalar_lea.vmem %s1990_s23, 32 }
 0x609   :  { %v1904_v6 = vlaneseq  ;;  %p2484_p2 = scmp.lt.s32.totalorder %s2482_s19, %s2478_s17 }
 0x60a   :  { %2458 = vmatpush3.msra.mxu0 %v1896_v60 }
 0x60b   :  { %2459 = vmatprep.subr.mxu0 %v2501_v47  ;;  %v1905_v19 = vshrl.u32 %v1904_v6, 7  ;;  %p2485_p3 = por %p2484_p2, %p2483_p1 }
 0x60c   :  { %2460 = vmatpush3.msra.mxu0 %v1895_v35 }
 0x60d   :  { %2461 = vmatprep.subr.mxu0 %v2501_v47  ;;  %v1906_v20 = vsub.s32 0, %v1905_v19  ;;  %p2486_p4 = pnand %p2485_p3, %p2479_p0 }
 0x60e   :  { %2462 = vmatpush3.msra.mxu0 %v1894_v44 }
 0x60f   :  { %2463 = vmatprep.subr.mxu0 %v2501_v47  ;;  %v1907_v4 = vrot.slane %v1902_v25, %v1906_v20 }
 0x610   :  { %2464 = vmatpush3.msra.mxu0 %v1893_v0 }
 0x611   :  { %2466 = vmatmul.mubr.msk.f32.vlgmr.msra.gmra.mxu0 %vm1210_vm3, %v1897_v57 }
 0x6d1   :  { %v1977_v21 = vpop.f32.mrf.mxu0 }
 0x6d2   :  { %v1978_v38 = vadd.f32 %v1977_v21, %v1907_v4 }
 0x6d3   :  { %v2467_v45 = vpop.f32.mrf.mxu0 }
 0x6d4   :  { %1982 = vst.msk [vmem:[#allocation3] sm:$0x1] %vm1981_vm6, %v1978_v38 }
 0x6d5   :  { %2489 = shalt.err (!%p2486_p4)
}
 0x6d6   :  { %1992 = dma.vmem_to_hbm [thread:$0]  %s1990_s23, 16, %s3806_s21, [#allocation4]  }
 0x6d7   :  { %2498 = dma.done.wait [#allocation4], 16  }
 0x6d8   :  { %2499 = vsyncadd [#allocation4], 4294967280 }
 0x6d9   :  { %1996 = vsyncpa [#allocation4], 1 }

</bundles_post_ra>
